<compile_context>
chip_gen: v7x
topology: tpu7x:2x2x1
jax: 0.10.0
libtpu: 0.0.40
codegen_flags: <defaults>
</compile_context>

<pallas_src>
import functools

import jax
import jax.numpy as jnp
from jax.experimental import pallas as pl
from jax.experimental.pallas import tpu as pltpu


_LN_EPS = 1e-5     # PyTorch nn.LayerNorm default eps
_C_PAD = 8         # xyz (3) zero-padded to 8 lanes (last block dim == full dim)


def _layer_norm(h, gamma, beta):
    mu = jnp.mean(h, axis=-1, keepdims=True)
    hc = h - mu
    var = jnp.mean(hc * hc, axis=-1, keepdims=True)
    return hc * jax.lax.rsqrt(var + _LN_EPS) * gamma + beta


def _embedding_kernel(x_ref, pos_ref,
                      w1_ref, b1_ref, g1_ref, be1_ref,
                      w2_ref, b2_ref,
                      w3g_ref, w3l_ref, b3_ref, g3_ref, be3_ref,
                      w4_ref, b4_ref,
                      o_ref, *, tp, G):
    """One grid step: tp patches x G points -> tp patch embeddings (+pos)."""
    f32 = jnp.float32
    bf16 = jnp.bfloat16
    x = x_ref[...]                                               # (R, 8) f32

    # ---- patch_embed_1: 3->128 (xyz zero-padded) -> LN(128) -> ReLU -> 128->256
    h = jnp.dot(x, w1_ref[...], preferred_element_type=f32) + b1_ref[...]
    h = jnp.maximum(_layer_norm(h, g1_ref[...], be1_ref[...]), 0.0)
    f1 = jnp.dot(h.astype(bf16), w2_ref[...],
                 preferred_element_type=f32) + b2_ref[...]       # (R, 256) f32

    # ---- patch_embed_2 first conv, split over the [global, local] channels:
    #   h2_row = f1_row @ w3_local + (max_G f1) @ w3_global + b3
    # (global half runs on tp pooled rows instead of tp*G; no concat/broadcast.)
    R, H1 = f1.shape
    gmax = jnp.max(f1.reshape(tp, G, H1), axis=1)                # (tp, 256)
    loc = jnp.dot(f1.astype(bf16), w3l_ref[...],
                  preferred_element_type=f32)                    # (R, 512)
    glb = jnp.dot(gmax.astype(bf16), w3g_ref[...],
                  preferred_element_type=f32)                    # (tp, 512)
    H2 = loc.shape[-1]
    h2 = (loc.reshape(tp, G, H2) + glb[:, None, :]).reshape(R, H2) + b3_ref[...]
    h2 = jnp.maximum(_layer_norm(h2, g3_ref[...], be3_ref[...]), 0.0)

    # ---- 512 -> E, per-patch max over the G points, add positional embedding
    f2 = jnp.dot(h2.astype(bf16), w4_ref[...],
                 preferred_element_type=f32) + b4_ref[...]       # (R, E)
    E = f2.shape[-1]
    patch = jnp.max(f2.reshape(tp, G, E), axis=1)                # (tp, E)
    o_ref[...] = (patch + pos_ref[...]).astype(o_ref.dtype)


def _pick_tp(S, G, target_rows=2048):
    """Largest multiple-of-8 divisor of S whose row block (tp*G) is <= ~2048."""
    divs = [d for d in range(8, S + 1, 8) if S % d == 0]
    assert divs, "seq_len must have a multiple-of-8 divisor"
    fitting = [d for d in divs if d * G <= max(target_rows, 8 * G)]
    return max(fitting)


def _vmem_limit_bytes():
    """Generation-aware scoped-VMEM budget (v7x has 64 MiB/TC vs 128 MiB)."""
    cap = 128 * 1024 * 1024
    try:
        info = pltpu.get_tpu_info()
        cap = int(getattr(info, "vmem_capacity_bytes", cap) or cap)
    except Exception:
        pass
    return min(64 * 1024 * 1024, (3 * cap) // 4)


@functools.partial(jax.jit, static_argnames=("pos",))
def embedding_pallas(x, params, *, pos=True):
    """x: (b, 2, S, G, 3) float32.  Returns (out1, out2), each (b, S+1, E)."""
    b, two, S, G, C = x.shape
    assert two == 2 and C == 3
    H0 = params["w1"].shape[1]           # 128
    H1 = params["w2"].shape[1]           # 256
    H2 = params["w3"].shape[1]           # 512
    E = params["w4"].shape[1]
    assert params["w3"].shape[0] == 2 * H1
    assert S % 8 == 0 and G % 8 == 0, "S and G must be multiples of 8"
    assert E % 128 == 0, "embedding_dim must be a multiple of 128 (lane-dense out)"

    tp = _pick_tp(S, G)            # patches per grid step (tp*G MXU rows/step)
    R = tp * G
    n_outer = 2 * b                # both point sets fused into one launch
    n_sblk = S // tp

    f32 = jnp.float32
    bf16 = jnp.bfloat16

    # Natural (batch, branch, patch, point) row order (pure reshape, free);
    # xyz padded 3 -> 8 lanes only.  Big matmul weights pre-cast to bf16.
    xp = x.reshape(b * 2 * S * G, C).astype(f32)
    xp = jnp.pad(xp, ((0, 0), (0, _C_PAD - C)))
    w1p = jnp.pad(params["w1"].astype(f32), ((0, _C_PAD - C), (0, 0)))  # zero rows
    w2b = params["w2"].astype(bf16)
    w3 = params["w3"]
    w3g = w3[:H1].astype(bf16)     # rows acting on the global (max-pooled) half
    w3l = w3[H1:].astype(bf16)     # rows acting on the local per-point half
    w4b = params["w4"].astype(bf16)
    pos_tab = params["pos_embedding"].astype(f32) if pos else jnp.zeros((S, E), f32)

    row2 = lambda v: v.astype(f32).reshape(1, -1)
    const = lambda n, s: (0, 0)
    rowmap = lambda n, s: (n * n_sblk + s, 0)

    flat = pl.pallas_call(
        functools.partial(_embedding_kernel, tp=tp, G=G),
        out_shape=jax.ShapeDtypeStruct((n_outer * S, E), x.dtype),
        grid_spec=pltpu.PrefetchScalarGridSpec(
            num_scalar_prefetch=0,
            grid=(n_outer, n_sblk),
            in_specs=[
                pl.BlockSpec((R, _C_PAD), rowmap),            # points (rows)
                pl.BlockSpec((tp, E), lambda n, s: (s, 0)),   # pos_embedding rows
                pl.BlockSpec((_C_PAD, H0), const),            # w1 (padded, f32)
                pl.BlockSpec((1, H0), const),                 # b1
                pl.BlockSpec((1, H0), const),                 # ln1 gamma
                pl.BlockSpec((1, H0), const),                 # ln1 beta
                pl.BlockSpec((H0, H1), const),                # w2 (bf16)
                pl.BlockSpec((1, H1), const),                 # b2
                pl.BlockSpec((H1, H2), const),                # w3 global half (bf16)
                pl.BlockSpec((H1, H2), const),                # w3 local half (bf16)
                pl.BlockSpec((1, H2), const),                 # b3
                pl.BlockSpec((1, H2), const),                 # ln2 gamma
                pl.BlockSpec((1, H2), const),                 # ln2 beta
                pl.BlockSpec((H2, E), const),                 # w4 (bf16)
                pl.BlockSpec((1, E), const),                  # b4
            ],
            out_specs=pl.BlockSpec((tp, E), rowmap),
        ),
        compiler_params=pltpu.CompilerParams(
            dimension_semantics=("parallel", "parallel"),
            vmem_limit_bytes=_vmem_limit_bytes(),
        ),
    )(xp, pos_tab, w1p,
      row2(params["b1"]), row2(params["g1"]), row2(params["be1"]),
      w2b, row2(params["b2"]),
      w3g, w3l, row2(params["b3"]), row2(params["g3"]), row2(params["be3"]),
      w4b, row2(params["b4"]))

    per_patch = flat.reshape(b, 2, S, E)
    # cls token row (tiny: one E-vector per batch) assembled with plain jnp.
    cls_row = params["cls_token"] + (params["cls_pos"] if pos else 0.0)
    cls_blk = jnp.broadcast_to(cls_row.reshape(1, 1, E), (b, 1, E)).astype(x.dtype)
    out1 = jnp.concatenate([per_patch[:, 0], cls_blk], axis=1)
    out2 = jnp.concatenate([per_patch[:, 1], cls_blk], axis=1)
    return out1, out2


def embedding_reference(x, params, *, pos=True):
    """Pure-JAX reference mirroring the (intended) PyTorch forward (f32 HIGHEST)."""
    b, _, S, G, C = x.shape
    E = params["w4"].shape[1]
    hi = jax.lax.Precision.HIGHEST

    def ln(h, gamma, beta):
        mu = jnp.mean(h, axis=-1, keepdims=True)
        var = jnp.mean((h - mu) ** 2, axis=-1, keepdims=True)
        return (h - mu) / jnp.sqrt(var + _LN_EPS) * gamma + beta

    def branch(pts):                                   # (b, S, G, 3)
        h = pts.reshape(b * S, G, C)
        h = jnp.einsum("mgc,cd->mgd", h, params["w1"], precision=hi) + params["b1"]
        h = jnp.maximum(ln(h, params["g1"], params["be1"]), 0.0)
        f1 = jnp.einsum("mgc,cd->mgd", h, params["w2"], precision=hi) + params["b2"]
        g = jnp.max(f1, axis=1, keepdims=True)
        cat = jnp.concatenate([jnp.broadcast_to(g, f1.shape), f1], axis=-1)
        h2 = jnp.einsum("mgc,cd->mgd", cat, params["w3"], precision=hi) + params["b3"]
        h2 = jnp.maximum(ln(h2, params["g3"], params["be3"]), 0.0)
        f2 = jnp.einsum("mgc,cd->mgd", h2, params["w4"], precision=hi) + params["b4"]
        return jnp.max(f2, axis=1).reshape(b, S, E)

    p1, p2 = branch(x[:, 0]), branch(x[:, 1])
    if pos:
        p1 = p1 + params["pos_embedding"][None]
        p2 = p2 + params["pos_embedding"][None]
    cls_row = params["cls_token"] + (params["cls_pos"] if pos else 0.0)
    cls_blk = jnp.broadcast_to(cls_row.reshape(1, 1, E), (b, 1, E))
    return (jnp.concatenate([p1, cls_blk], axis=1),
            jnp.concatenate([p2, cls_blk], axis=1))


if __name__ == "__main__":
    # Small shapes: batch=2, two point sets, seq_len=8 patches, 16 points/patch,
    # 3-d coords, embedding_dim=256 (constructor group == seq_len for pos add).
    b, S, G, C, E = 2, 8, 16, 3, 256

    key = jax.random.PRNGKey(0)
    ks = jax.random.split(key, 12)

    def uni(k, shape, fan_in):
        bound = 1.0 / (fan_in ** 0.5)
        return jax.random.uniform(k, shape, minval=-bound, maxval=bound,
                                  dtype=jnp.float32)

    params = {
        "w1": uni(ks[0], (C, 128), C),     "b1": uni(ks[1], (128,), C),
        "g1": jnp.ones((128,), jnp.float32),
        "be1": jnp.zeros((128,), jnp.float32),
        "w2": uni(ks[2], (128, 256), 128), "b2": uni(ks[3], (256,), 128),
        "w3": uni(ks[4], (512, 512), 512), "b3": uni(ks[5], (512,), 512),
        "g3": jnp.ones((512,), jnp.float32),
        "be3": jnp.zeros((512,), jnp.float32),
        "w4": uni(ks[6], (512, E), 512),   "b4": uni(ks[7], (E,), 512),
        "pos_embedding": 0.02 * jax.random.normal(ks[8], (S, E), jnp.float32),
        "cls_token": 0.02 * jax.random.normal(ks[9], (E,), jnp.float32),
        "cls_pos": 0.02 * jax.random.normal(ks[10], (E,), jnp.float32),
    }
    x = jax.random.normal(ks[11], (b, 2, S, G, C), dtype=jnp.float32)

    out1, out2 = embedding_pallas(x, params, pos=True)
    out1 = jax.block_until_ready(out1)
    out2 = jax.block_until_ready(out2)

    ref1, ref2 = embedding_reference(x, params, pos=True)
    assert out1.shape == (b, S + 1, E) and out2.shape == (b, S + 1, E)
    # Tolerance covers bf16 MXU operands (f32 accumulation) vs. the f32 HIGHEST
    # reference across the three large matmuls.
    assert jnp.allclose(out1, ref1, atol=5e-2, rtol=5e-2), \
        float(jnp.max(jnp.abs(out1 - ref1)))
    assert jnp.allclose(out2, ref2, atol=5e-2, rtol=5e-2), \
        float(jnp.max(jnp.abs(out2 - ref2)))

    print("KERNEL_OK")
</pallas_src>

<mosaic_0001>
module attributes {stable_mosaic.version = 11 : i64} {
  func.func @_embedding_kernel(%arg0: i32, %arg1: i32, %arg2: memref<128x8xf32, #tpu.memory_space<vmem>>, %arg3: memref<8x256xf32, #tpu.memory_space<vmem>>, %arg4: memref<8x128xf32, #tpu.memory_space<vmem>>, %arg5: memref<1x128xf32, #tpu.memory_space<vmem>>, %arg6: memref<1x128xf32, #tpu.memory_space<vmem>>, %arg7: memref<1x128xf32, #tpu.memory_space<vmem>>, %arg8: memref<128x256xbf16, #tpu.memory_space<vmem>>, %arg9: memref<1x256xf32, #tpu.memory_space<vmem>>, %arg10: memref<256x512xbf16, #tpu.memory_space<vmem>>, %arg11: memref<256x512xbf16, #tpu.memory_space<vmem>>, %arg12: memref<1x512xf32, #tpu.memory_space<vmem>>, %arg13: memref<1x512xf32, #tpu.memory_space<vmem>>, %arg14: memref<1x512xf32, #tpu.memory_space<vmem>>, %arg15: memref<512x256xbf16, #tpu.memory_space<vmem>>, %arg16: memref<1x256xf32, #tpu.memory_space<vmem>>, %arg17: memref<8x256xf32, #tpu.memory_space<vmem>>) attributes {dimension_semantics = [#tpu.dimension_semantics<parallel>, #tpu.dimension_semantics<parallel>], iteration_bounds = array<i64: 4, 1>, scalar_prefetch = 0 : i64, scratch_operands = 0 : i64, tpu.core_type = #tpu.core_type<tc>, window_params = [{transform_indices = @transform_0, window_bounds = array<i64: 128, 8>}, {transform_indices = @transform_1, window_bounds = array<i64: 8, 256>}, {pipeline_mode = #tpu.pipeline_mode<synchronous>, transform_indices = @transform_2, window_bounds = array<i64: 8, 128>}, {pipeline_mode = #tpu.pipeline_mode<synchronous>, transform_indices = @transform_3, window_bounds = array<i64: 1, 128>}, {pipeline_mode = #tpu.pipeline_mode<synchronous>, transform_indices = @transform_4, window_bounds = array<i64: 1, 128>}, {pipeline_mode = #tpu.pipeline_mode<synchronous>, transform_indices = @transform_5, window_bounds = array<i64: 1, 128>}, {pipeline_mode = #tpu.pipeline_mode<synchronous>, transform_indices = @transform_6, window_bounds = array<i64: 128, 256>}, {pipeline_mode = #tpu.pipeline_mode<synchronous>, transform_indices = @transform_7, window_bounds = array<i64: 1, 256>}, {pipeline_mode = #tpu.pipeline_mode<synchronous>, transform_indices = @transform_8, window_bounds = array<i64: 256, 512>}, {pipeline_mode = #tpu.pipeline_mode<synchronous>, transform_indices = @transform_9, window_bounds = array<i64: 256, 512>}, {pipeline_mode = #tpu.pipeline_mode<synchronous>, transform_indices = @transform_10, window_bounds = array<i64: 1, 512>}, {pipeline_mode = #tpu.pipeline_mode<synchronous>, transform_indices = @transform_11, window_bounds = array<i64: 1, 512>}, {pipeline_mode = #tpu.pipeline_mode<synchronous>, transform_indices = @transform_12, window_bounds = array<i64: 1, 512>}, {pipeline_mode = #tpu.pipeline_mode<synchronous>, transform_indices = @transform_13, window_bounds = array<i64: 512, 256>}, {pipeline_mode = #tpu.pipeline_mode<synchronous>, transform_indices = @transform_14, window_bounds = array<i64: 1, 256>}, {transform_indices = @transform_15, window_bounds = array<i64: 8, 256>}]} {
    %c0 = arith.constant 0 : index
    %c0_0 = arith.constant 0 : index
    %0 = vector.load %arg2[%c0, %c0_0] : memref<128x8xf32, #tpu.memory_space<vmem>>, vector<128x8xf32>
    %c0_1 = arith.constant 0 : index
    %c0_2 = arith.constant 0 : index
    %1 = vector.load %arg4[%c0_1, %c0_2] : memref<8x128xf32, #tpu.memory_space<vmem>>, vector<8x128xf32>
    %cst = arith.constant dense<0.000000e+00> : vector<128x128xf32>
    %2 = tpu.matmul %0, %1, %cst {dimension_numbers = #tpu.dot_dimension_numbers<[1], [0], [0], [1], [0, 0, 1, 1], [], []>} : vector<128x8xf32>, vector<8x128xf32>, vector<128x128xf32> -> vector<128x128xf32>
    %c0_3 = arith.constant 0 : index
    %c0_4 = arith.constant 0 : index
    %3 = vector.load %arg5[%c0_3, %c0_4] : memref<1x128xf32, #tpu.memory_space<vmem>>, vector<1x128xf32>
    %4 = vector.broadcast %3 : vector<1x128xf32> to vector<128x128xf32>
    %5 = arith.addf %2, %4 : vector<128x128xf32>
    %c0_5 = arith.constant 0 : index
    %c0_6 = arith.constant 0 : index
    %6 = vector.load %arg6[%c0_5, %c0_6] : memref<1x128xf32, #tpu.memory_space<vmem>>, vector<1x128xf32>
    %c0_7 = arith.constant 0 : index
    %c0_8 = arith.constant 0 : index
    %7 = vector.load %arg7[%c0_7, %c0_8] : memref<1x128xf32, #tpu.memory_space<vmem>>, vector<1x128xf32>
    %cst_9 = arith.constant dense<0.000000e+00> : vector<128xf32>
    %8 = vector.multi_reduction <add>, %5, %cst_9 [1] : vector<128x128xf32> to vector<128xf32>
    %9 = vector.shape_cast %8 : vector<128xf32> to vector<128x1xf32>
    %cst_10 = arith.constant 1.280000e+02 : f32
    %10 = vector.broadcast %cst_10 : f32 to vector<128x1xf32>
    %11 = arith.divf %9, %10 : vector<128x1xf32>
    %12 = vector.broadcast %11 : vector<128x1xf32> to vector<128x128xf32>
    %13 = arith.subf %5, %12 : vector<128x128xf32>
    %14 = arith.mulf %13, %13 : vector<128x128xf32>
    %cst_11 = arith.constant dense<0.000000e+00> : vector<128xf32>
    %15 = vector.multi_reduction <add>, %14, %cst_11 [1] : vector<128x128xf32> to vector<128xf32>
    %16 = vector.shape_cast %15 : vector<128xf32> to vector<128x1xf32>
    %cst_12 = arith.constant 1.280000e+02 : f32
    %17 = vector.broadcast %cst_12 : f32 to vector<128x1xf32>
    %18 = arith.divf %16, %17 : vector<128x1xf32>
    %cst_13 = arith.constant 9.99999974E-6 : f32
    %19 = vector.broadcast %cst_13 : f32 to vector<128x1xf32>
    %20 = arith.addf %18, %19 : vector<128x1xf32>
    %21 = math.rsqrt %20 : vector<128x1xf32>
    %22 = vector.broadcast %21 : vector<128x1xf32> to vector<128x128xf32>
    %23 = arith.mulf %13, %22 : vector<128x128xf32>
    %24 = vector.broadcast %6 : vector<1x128xf32> to vector<128x128xf32>
    %25 = arith.mulf %23, %24 : vector<128x128xf32>
    %26 = vector.broadcast %7 : vector<1x128xf32> to vector<128x128xf32>
    %27 = arith.addf %25, %26 : vector<128x128xf32>
    %cst_14 = arith.constant 0.000000e+00 : f32
    %28 = vector.broadcast %cst_14 : f32 to vector<128x128xf32>
    %29 = arith.maximumf %27, %28 : vector<128x128xf32>
    %30 = arith.truncf %29 : vector<128x128xf32> to vector<128x128xbf16>
    %c0_15 = arith.constant 0 : index
    %c0_16 = arith.constant 0 : index
    %31 = vector.load %arg8[%c0_15, %c0_16] : memref<128x256xbf16, #tpu.memory_space<vmem>>, vector<128x256xbf16>
    %cst_17 = arith.constant dense<0.000000e+00> : vector<128x256xf32>
    %32 = tpu.matmul %30, %31, %cst_17 {dimension_numbers = #tpu.dot_dimension_numbers<[1], [0], [0], [1], [0, 0, 1, 1], [], []>} : vector<128x128xbf16>, vector<128x256xbf16>, vector<128x256xf32> -> vector<128x256xf32>
    %c0_18 = arith.constant 0 : index
    %c0_19 = arith.constant 0 : index
    %33 = vector.load %arg9[%c0_18, %c0_19] : memref<1x256xf32, #tpu.memory_space<vmem>>, vector<1x256xf32>
    %34 = vector.broadcast %33 : vector<1x256xf32> to vector<128x256xf32>
    %35 = arith.addf %32, %34 : vector<128x256xf32>
    %36 = vector.shape_cast %35 : vector<128x256xf32> to vector<8x16x256xf32>
    %cst_20 = arith.constant dense<0xFF800000> : vector<8x256xf32>
    %37 = vector.multi_reduction <maximumf>, %36, %cst_20 [1] : vector<8x16x256xf32> to vector<8x256xf32>
    %38 = arith.truncf %35 : vector<128x256xf32> to vector<128x256xbf16>
    %c0_21 = arith.constant 0 : index
    %c0_22 = arith.constant 0 : index
    %39 = vector.load %arg11[%c0_21, %c0_22] : memref<256x512xbf16, #tpu.memory_space<vmem>>, vector<256x512xbf16>
    %cst_23 = arith.constant dense<0.000000e+00> : vector<128x512xf32>
    %40 = tpu.matmul %38, %39, %cst_23 {dimension_numbers = #tpu.dot_dimension_numbers<[1], [0], [0], [1], [0, 0, 1, 1], [], []>} : vector<128x256xbf16>, vector<256x512xbf16>, vector<128x512xf32> -> vector<128x512xf32>
    %41 = arith.truncf %37 : vector<8x256xf32> to vector<8x256xbf16>
    %c0_24 = arith.constant 0 : index
    %c0_25 = arith.constant 0 : index
    %42 = vector.load %arg10[%c0_24, %c0_25] : memref<256x512xbf16, #tpu.memory_space<vmem>>, vector<256x512xbf16>
    %cst_26 = arith.constant dense<0.000000e+00> : vector<8x512xf32>
    %43 = tpu.matmul %41, %42, %cst_26 {dimension_numbers = #tpu.dot_dimension_numbers<[1], [0], [0], [1], [0, 0, 1, 1], [], []>} : vector<8x256xbf16>, vector<256x512xbf16>, vector<8x512xf32> -> vector<8x512xf32>
    %44 = vector.shape_cast %40 : vector<128x512xf32> to vector<8x16x512xf32>
    %45 = vector.shape_cast %43 : vector<8x512xf32> to vector<8x1x512xf32>
    %46 = vector.broadcast %45 : vector<8x1x512xf32> to vector<8x16x512xf32>
    %47 = arith.addf %44, %46 : vector<8x16x512xf32>
    %48 = vector.shape_cast %47 : vector<8x16x512xf32> to vector<128x512xf32>
    %c0_27 = arith.constant 0 : index
    %c0_28 = arith.constant 0 : index
    %49 = vector.load %arg12[%c0_27, %c0_28] : memref<1x512xf32, #tpu.memory_space<vmem>>, vector<1x512xf32>
    %50 = vector.broadcast %49 : vector<1x512xf32> to vector<128x512xf32>
    %51 = arith.addf %48, %50 : vector<128x512xf32>
    %c0_29 = arith.constant 0 : index
    %c0_30 = arith.constant 0 : index
    %52 = vector.load %arg13[%c0_29, %c0_30] : memref<1x512xf32, #tpu.memory_space<vmem>>, vector<1x512xf32>
    %c0_31 = arith.constant 0 : index
    %c0_32 = arith.constant 0 : index
    %53 = vector.load %arg14[%c0_31, %c0_32] : memref<1x512xf32, #tpu.memory_space<vmem>>, vector<1x512xf32>
    %cst_33 = arith.constant dense<0.000000e+00> : vector<128xf32>
    %54 = vector.multi_reduction <add>, %51, %cst_33 [1] : vector<128x512xf32> to vector<128xf32>
    %55 = vector.shape_cast %54 : vector<128xf32> to vector<128x1xf32>
    %cst_34 = arith.constant 5.120000e+02 : f32
    %56 = vector.broadcast %cst_34 : f32 to vector<128x1xf32>
    %57 = arith.divf %55, %56 : vector<128x1xf32>
    %58 = vector.broadcast %57 : vector<128x1xf32> to vector<128x512xf32>
    %59 = arith.subf %51, %58 : vector<128x512xf32>
    %60 = arith.mulf %59, %59 : vector<128x512xf32>
    %cst_35 = arith.constant dense<0.000000e+00> : vector<128xf32>
    %61 = vector.multi_reduction <add>, %60, %cst_35 [1] : vector<128x512xf32> to vector<128xf32>
    %62 = vector.shape_cast %61 : vector<128xf32> to vector<128x1xf32>
    %cst_36 = arith.constant 5.120000e+02 : f32
    %63 = vector.broadcast %cst_36 : f32 to vector<128x1xf32>
    %64 = arith.divf %62, %63 : vector<128x1xf32>
    %cst_37 = arith.constant 9.99999974E-6 : f32
    %65 = vector.broadcast %cst_37 : f32 to vector<128x1xf32>
    %66 = arith.addf %64, %65 : vector<128x1xf32>
    %67 = math.rsqrt %66 : vector<128x1xf32>
    %68 = vector.broadcast %67 : vector<128x1xf32> to vector<128x512xf32>
    %69 = arith.mulf %59, %68 : vector<128x512xf32>
    %70 = vector.broadcast %52 : vector<1x512xf32> to vector<128x512xf32>
    %71 = arith.mulf %69, %70 : vector<128x512xf32>
    %72 = vector.broadcast %53 : vector<1x512xf32> to vector<128x512xf32>
    %73 = arith.addf %71, %72 : vector<128x512xf32>
    %cst_38 = arith.constant 0.000000e+00 : f32
    %74 = vector.broadcast %cst_38 : f32 to vector<128x512xf32>
    %75 = arith.maximumf %73, %74 : vector<128x512xf32>
    %76 = arith.truncf %75 : vector<128x512xf32> to vector<128x512xbf16>
    %c0_39 = arith.constant 0 : index
    %c0_40 = arith.constant 0 : index
    %77 = vector.load %arg15[%c0_39, %c0_40] : memref<512x256xbf16, #tpu.memory_space<vmem>>, vector<512x256xbf16>
    %cst_41 = arith.constant dense<0.000000e+00> : vector<128x256xf32>
    %78 = tpu.matmul %76, %77, %cst_41 {dimension_numbers = #tpu.dot_dimension_numbers<[1], [0], [0], [1], [0, 0, 1, 1], [], []>} : vector<128x512xbf16>, vector<512x256xbf16>, vector<128x256xf32> -> vector<128x256xf32>
    %c0_42 = arith.constant 0 : index
    %c0_43 = arith.constant 0 : index
    %79 = vector.load %arg16[%c0_42, %c0_43] : memref<1x256xf32, #tpu.memory_space<vmem>>, vector<1x256xf32>
    %80 = vector.broadcast %79 : vector<1x256xf32> to vector<128x256xf32>
    %81 = arith.addf %78, %80 : vector<128x256xf32>
    %82 = vector.shape_cast %81 : vector<128x256xf32> to vector<8x16x256xf32>
    %cst_44 = arith.constant dense<0xFF800000> : vector<8x256xf32>
    %83 = vector.multi_reduction <maximumf>, %82, %cst_44 [1] : vector<8x16x256xf32> to vector<8x256xf32>
    %c0_45 = arith.constant 0 : index
    %c0_46 = arith.constant 0 : index
    %84 = vector.load %arg3[%c0_45, %c0_46] : memref<8x256xf32, #tpu.memory_space<vmem>>, vector<8x256xf32>
    %85 = arith.addf %83, %84 : vector<8x256xf32>
    %c0_47 = arith.constant 0 : index
    %c0_48 = arith.constant 0 : index
    %86 = vector.load %arg17[%c0_47, %c0_48] : memref<8x256xf32, #tpu.memory_space<vmem>>, vector<8x256xf32>
    tpu.vector_store %arg17[%c0_47, %c0_48], %85 {strides = array<i32>} : memref<8x256xf32, #tpu.memory_space<vmem>>, vector<8x256xf32>,
    return
  }
  func.func @transform_0(%arg0: i32, %arg1: i32) -> (i32, i32) {
    %c1_i32 = arith.constant 1 : i32
    %0 = arith.muli %arg0, %c1_i32 : i32
    %1 = arith.addi %0, %arg1 : i32
    %c0_i32 = arith.constant 0 : i32
    %c0_i32_0 = arith.constant 0 : i32
    return %1, %c0_i32 : i32, i32
  }
  func.func @transform_1(%arg0: i32, %arg1: i32) -> (i32, i32) {
    %c0_i32 = arith.constant 0 : i32
    %c0_i32_0 = arith.constant 0 : i32
    return %arg1, %c0_i32 : i32, i32
  }
  func.func @transform_2(%arg0: i32, %arg1: i32) -> (i32, i32) {
    %c0_i32 = arith.constant 0 : i32
    %c0_i32_0 = arith.constant 0 : i32
    %c0_i32_1 = arith.constant 0 : i32
    return %c0_i32, %c0_i32_0 : i32, i32
  }
  func.func @transform_3(%arg0: i32, %arg1: i32) -> (i32, i32) {
    %c0_i32 = arith.constant 0 : i32
    %c0_i32_0 = arith.constant 0 : i32
    %c0_i32_1 = arith.constant 0 : i32
    return %c0_i32, %c0_i32_0 : i32, i32
  }
  func.func @transform_4(%arg0: i32, %arg1: i32) -> (i32, i32) {
    %c0_i32 = arith.constant 0 : i32
    %c0_i32_0 = arith.constant 0 : i32
    %c0_i32_1 = arith.constant 0 : i32
    return %c0_i32, %c0_i32_0 : i32, i32
  }
  func.func @transform_5(%arg0: i32, %arg1: i32) -> (i32, i32) {
    %c0_i32 = arith.constant 0 : i32
    %c0_i32_0 = arith.constant 0 : i32
    %c0_i32_1 = arith.constant 0 : i32
    return %c0_i32, %c0_i32_0 : i32, i32
  }
  func.func @transform_6(%arg0: i32, %arg1: i32) -> (i32, i32) {
    %c0_i32 = arith.constant 0 : i32
    %c0_i32_0 = arith.constant 0 : i32
    %c0_i32_1 = arith.constant 0 : i32
    return %c0_i32, %c0_i32_0 : i32, i32
  }
  func.func @transform_7(%arg0: i32, %arg1: i32) -> (i32, i32) {
    %c0_i32 = arith.constant 0 : i32
    %c0_i32_0 = arith.constant 0 : i32
    %c0_i32_1 = arith.constant 0 : i32
    return %c0_i32, %c0_i32_0 : i32, i32
  }
  func.func @transform_8(%arg0: i32, %arg1: i32) -> (i32, i32) {
    %c0_i32 = arith.constant 0 : i32
    %c0_i32_0 = arith.constant 0 : i32
    %c0_i32_1 = arith.constant 0 : i32
    return %c0_i32, %c0_i32_0 : i32, i32
  }
  func.func @transform_9(%arg0: i32, %arg1: i32) -> (i32, i32) {
    %c0_i32 = arith.constant 0 : i32
    %c0_i32_0 = arith.constant 0 : i32
    %c0_i32_1 = arith.constant 0 : i32
    return %c0_i32, %c0_i32_0 : i32, i32
  }
  func.func @transform_10(%arg0: i32, %arg1: i32) -> (i32, i32) {
    %c0_i32 = arith.constant 0 : i32
    %c0_i32_0 = arith.constant 0 : i32
    %c0_i32_1 = arith.constant 0 : i32
    return %c0_i32, %c0_i32_0 : i32, i32
  }
  func.func @transform_11(%arg0: i32, %arg1: i32) -> (i32, i32) {
    %c0_i32 = arith.constant 0 : i32
    %c0_i32_0 = arith.constant 0 : i32
    %c0_i32_1 = arith.constant 0 : i32
    return %c0_i32, %c0_i32_0 : i32, i32
  }
  func.func @transform_12(%arg0: i32, %arg1: i32) -> (i32, i32) {
    %c0_i32 = arith.constant 0 : i32
    %c0_i32_0 = arith.constant 0 : i32
    %c0_i32_1 = arith.constant 0 : i32
    return %c0_i32, %c0_i32_0 : i32, i32
  }
  func.func @transform_13(%arg0: i32, %arg1: i32) -> (i32, i32) {
    %c0_i32 = arith.constant 0 : i32
    %c0_i32_0 = arith.constant 0 : i32
    %c0_i32_1 = arith.constant 0 : i32
    return %c0_i32, %c0_i32_0 : i32, i32
  }
  func.func @transform_14(%arg0: i32, %arg1: i32) -> (i32, i32) {
    %c0_i32 = arith.constant 0 : i32
    %c0_i32_0 = arith.constant 0 : i32
    %c0_i32_1 = arith.constant 0 : i32
    return %c0_i32, %c0_i32_0 : i32, i32
  }
  func.func @transform_15(%arg0: i32, %arg1: i32) -> (i32, i32) {
    %c1_i32 = arith.constant 1 : i32
    %0 = arith.muli %arg0, %c1_i32 : i32
    %1 = arith.addi %0, %arg1 : i32
    %c0_i32 = arith.constant 0 : i32
    %c0_i32_0 = arith.constant 0 : i32
    return %1, %c0_i32 : i32, i32
  }
}

</mosaic_0001>

<bundles_post_ra>
// kernel: embedding_pallas.1
= control target key start
LH: loop header
LB: loop body
LE: loop exit
PB: predicated region body
PF: predicated region fallthrough
CT: control target
= control target key end

     0   :  { %s8547_s0 = inlined_call_operand.hbm [shape: f32[512,8], index: 0, kind: input, shape index: {}]   ;;  %s8548_s1 = inlined_call_operand.hbm [shape: f32[8,256], index: 1, kind: input, shape index: {}]   ;;  %s8549_s2 = inlined_call_operand.hbm [shape: f32[8,128], index: 2, kind: input, shape index: {}]   ;;  %s8550_s3 = inlined_call_operand.hbm [shape: f32[1,128], index: 3, kind: input, shape index: {}]   ;;  %s8551_s4 = inlined_call_operand.hbm [shape: f32[1,128], index: 4, kind: input, shape index: {}]   ;;  %s8552_s5 = inlined_call_operand.hbm [shape: f32[1,128], index: 5, kind: input, shape index: {}]   ;;  %s8553_s6 = inlined_call_operand.hbm [shape: bf16[128,256], index: 6, kind: input, shape index: {}]   ;;  %s8554_s7 = inlined_call_operand.hbm [shape: f32[1,256], index: 7, kind: input, shape index: {}]   ;;  %s8555_s8 = inlined_call_operand.hbm [shape: bf16[256,512], index: 8, kind: input, shape index: {}]   ;;  %s8556_s9 = inlined_call_operand.hbm [shape: bf16[256,512], index: 9, kind: input, shape index: {}]   ;;  %s8557_s10 = inlined_call_operand.hbm [shape: f32[1,512], index: 10, kind: input, shape index: {}]   ;;  %s8558_s11 = inlined_call_operand.hbm [shape: f32[1,512], index: 11, kind: input, shape index: {}]   ;;  %s8559_s12 = inlined_call_operand.hbm [shape: f32[1,512], index: 12, kind: input, shape index: {}]   ;;  %s8560_s13 = inlined_call_operand.hbm [shape: bf16[512,256], index: 13, kind: input, shape index: {}]   ;;  %s8561_s14 = inlined_call_operand.hbm [shape: f32[1,256], index: 14, kind: input, shape index: {}]   ;;  %s8562_s15 = inlined_call_operand.hbm [shape: f32[32,256], index: 15, kind: output, shape index: {}]  }
   0x1   :  { %8635 = sst [smem:[#allocation81_spill]] %s8547_s0 }
   0x2   :  { %8636 = sst [smem:[#allocation82_spill]] %s8548_s1 }
   0x3   :  { %8637 = sst [smem:[#allocation83_spill]] %s8549_s2 }
   0x4   :  { %8638 = sst [smem:[#allocation84_spill]] %s8550_s3 }
   0x5   :  { %8639 = sst [smem:[#allocation85_spill]] %s8551_s4 }
   0x6   :  { %8640 = sst [smem:[#allocation86_spill]] %s8562_s15 }
   0x7   :  { %20 = vsyncpa [#allocation3], 0 }
   0x8   :  { %22 = vsyncpa [#allocation3 + $0x1], 0 }
   0x9   :  { %23 = vsyncpa [#allocation6], 0 }
   0xa   :  { %24 = vsyncpa [#allocation9], 0 }
   0xb   :  { %25 = vsyncpa [#allocation12], 0 }
   0xc   :  { %26 = vsyncpa [#allocation15], 0 }
   0xd   :  { %27 = vsyncpa [#allocation18], 0 }
   0xe   :  { %28 = vsyncpa [#allocation21], 0 }
   0xf   :  { %29 = vsyncpa [#allocation24], 0 }
  0x10   :  { %30 = vsyncpa [#allocation4], 0 }
  0x11   :  { %32 = vsyncpa [#allocation4 + $0x1], 0  ;;  %s6418_s18 = smov 0   ;;  %s6420_s19 = smov 0  }
  0x12   :  { %s6422_s20 = smov 0   ;;  %s6424_s21 = smov 0  }
  0x13   :  { %s6426_s22 = smov 0   ;;  %s6428_s23 = smov 0  }
  0x14 LB: > { %8641 = sst [smem:[#allocation36_spill]] %s6294_s18  ;;  %s8563_s24 = sadd.s32 4294967295, %s6314_s23   ;;  %s6314_s23 = sphi %s6428_s23, %s38_s23   ;;  %s6310_s22 = sphi %s6426_s22, %s8845_s22   ;;  %s6306_s21 = sphi %s6424_s21, %s8844_s21   ;;  %s6302_s20 = sphi %s6422_s20, %s8843_s20   ;;  %s6298_s19 = sphi %s6420_s19, %s8842_s19   ;;  %s6294_s18 = sphi %s6418_s18, %s8841_s18  }
  0x15   : > { %8642 = sst [smem:[#allocation37_spill]] %s6298_s19  ;;  %p4820_p0 = scmp.ge.s32.totalorder %s6314_s23, 1 }
  0x16   : > { %8643 = sst [smem:[#allocation38_spill]] %s6306_s21  ;;  %p6452_p1 = scmp.eq.s32.totalorder %s8563_s24, 0 }
  0x17   : > { %p410_p2 = scmp.lt.s32.totalorder %s6314_s23, 5  ;;  %s6316_s27 = smov [#allocation5]  }
  0x18   : > { %s8644_s25 = scalar_select %p6452_p1, 1, 0 }
  0x19   : > { %p6457_p3 = pnand %p4820_p0, %p410_p2  ;;  %s426_s28 = sshll.u32 %s6316_s27, 4  ;;  %s427_s28 = int_to_ptr.vmem [resolvable:$true] %s426_s28 }
  0x1a   : > { %8645 = sst [smem:[#allocation39_spill]] %s8644_s25  ;;  %s6317_s29 = smov [#allocation8]  }
  0x1b   : > { %s8646_s26 = scalar_select %p6457_p3, 1, 0 }
  0x1c   : > { %p5257_p4 = pneg %p6457_p3  ;;  %s448_s30 = sshll.u32 %s6317_s29, 4  ;;  %s6469_s30 = int_to_ptr.vmem [resolvable:$true] %s448_s30 }
  0x1d   : > { %8647 = sst [smem:[#allocation40_spill]] %s8646_s26  ;;  %s6318_s17 = smov [#allocation11]  }
  0x1e   : > { %p6465_p5 = pnand %p5257_p4, %p6452_p1  ;;  %s470_s24 = sshll.u32 %s6318_s17, 4  ;;  %s6471_s24 = int_to_ptr.vmem [resolvable:$true] %s470_s24 }
  0x1f   : > { %s8649_s1 = sld [smem:[#allocation82_spill]] }
  0x20   : > { %p6481_p7 = pneg %p6465_p5 }
  0x25   : > { %s5782_s27 = scalar_lea.hbm %s8649_s1, 256 }
  0x26   : > { %p5783_p6 = scmp.ne.s32.totalorder %s8649_s1, %s5782_s27  ;;  %p5789_p10 = scmp.lt.u32.totalorder %s5782_s27, %s8649_s1 }
  0x28   : > { %p5785_p8 = pnand %p6481_p7, %p5783_p6 }
  0x2a   : > { %p5786_p9 = pneg %p5785_p8 }
  0x2c   : > { %p5791_p11 = pnand %p5789_p10, %p5786_p9 }
  0x2e   : > { %5794 = shalt.err (!%p5791_p11)
}
  0x2f   : > { %s5795_s15 = scalar_lea.vmem %s427_s28, 256  ;;  %p5803_p2 = scmp.lt.s32.totalorder %s427_s28, %s427_s28 }
  0x30   : > { %p5796_p12 = scmp.ne.s32.totalorder %s427_s28, %s5795_s15  ;;  %p5804_p4 = scmp.lt.s32.totalorder %s5795_s15, %s5795_s15 }
  0x32   : > { %p5798_p13 = pnand %p5796_p12, %p6481_p7  ;;  %p5805_p3 = por %p5804_p4, %p5803_p2 }
  0x34   : > { %p5799_p0 = pneg %p5798_p13 }
  0x36   : > { %p5806_p1 = pnand %p5805_p3, %p5799_p0 }
  0x38   : > { %5809 = shalt.err (!%p5806_p1)
}
  0x39   : > { %5260 = dma.hbm_to_vmem [thread:$0]  (!%p6465_p5), %s8649_s1, 256, %s427_s28, [#allocation6]  }
  0x3a   : > { %s8651_s3 = sld [smem:[#allocation84_spill]] }
  0x40   : > { %s5810_s27 = scalar_lea.hbm %s8651_s3, 16 }
  0x41   : > { %p5811_p6 = scmp.ne.s32.totalorder %s8651_s3, %s5810_s27  ;;  %p5817_p1 = scmp.lt.u32.totalorder %s5810_s27, %s8651_s3 }
  0x43   : > { %p5813_p8 = pnand %p5811_p6, %p6481_p7 }
  0x45   : > { %p5814_p9 = pneg %p5813_p8 }
  0x47   : > { %p5819_p3 = pnand %p5817_p1, %p5814_p9 }
  0x49   : > { %5822 = shalt.err (!%p5819_p3)
}
  0x4a   : > { %s5823_s28 = scalar_lea.vmem %s6469_s30, 16  ;;  %s5830_s18 = scalar_lea.vmem %s6469_s30, 32 }
  0x4b   : > { %p5824_p10 = scmp.ne.s32.totalorder %s6469_s30, %s5823_s28  ;;  %p5831_p13 = scmp.lt.s32.totalorder %s6469_s30, %s6469_s30 }
  0x4c   : > { %p5832_p0 = scmp.lt.s32.totalorder %s5830_s18, %s5823_s28 }
  0x4d   : > { %p5826_p11 = pnand %p5824_p10, %p6481_p7 }
  0x4e   : > { %p5833_p2 = por %p5832_p0, %p5831_p13 }
  0x4f   : > { %p5827_p12 = pneg %p5826_p11 }
  0x51   : > { %p5834_p4 = pnand %p5833_p2, %p5827_p12 }
  0x53   : > { %5837 = shalt.err (!%p5834_p4)
}
  0x54   : > { %5266 = dma.hbm_to_vmem [thread:$0]  (!%p6465_p5), %s8651_s3, 16, %s6469_s30, [#allocation9]  }
  0x55   : > { %s5838_s26 = scalar_lea.hbm %s8552_s5, 16 }
  0x56   : > { %p5839_p6 = scmp.ne.s32.totalorder %s8552_s5, %s5838_s26  ;;  %p5845_p1 = scmp.lt.u32.totalorder %s5838_s26, %s8552_s5 }
  0x58   : > { %p5841_p8 = pnand %p5839_p6, %p6481_p7 }
  0x5a   : > { %p5842_p9 = pneg %p5841_p8 }
  0x5c   : > { %p5847_p3 = pnand %p5845_p1, %p5842_p9 }
  0x5e   : > { %5850 = shalt.err (!%p5847_p3)
}
  0x5f   : > { %s5851_s30 = scalar_lea.vmem %s6471_s24, 16  ;;  %s5858_s18 = scalar_lea.vmem %s6471_s24, 32 }
  0x60   : > { %p5852_p10 = scmp.ne.s32.totalorder %s6471_s24, %s5851_s30  ;;  %p5859_p13 = scmp.lt.s32.totalorder %s6471_s24, %s6471_s24 }
  0x61   : > { %p5860_p0 = scmp.lt.s32.totalorder %s5858_s18, %s5851_s30 }
  0x62   : > { %p5854_p11 = pnand %p5852_p10, %p6481_p7 }
  0x63   : > { %p5861_p2 = por %p5860_p0, %p5859_p13 }
  0x64   : > { %p5855_p12 = pneg %p5854_p11 }
  0x66   : > { %p5862_p4 = pnand %p5861_p2, %p5855_p12 }
  0x68   : > { %5865 = shalt.err (!%p5862_p4)
}
  0x69   : > { %5272 = dma.hbm_to_vmem [thread:$0]  (!%p6465_p5), %s8552_s5, 16, %s6471_s24, [#allocation12]  }
  0x6a   : > { %s6319_s21 = smov [#allocation14]   ;;  %s5866_s17 = scalar_lea.hbm %s8554_s7, 32 }
  0x6b   : > { %s494_s25 = sshll.u32 %s6319_s21, 4  ;;  %p5867_p6 = scmp.ne.s32.totalorder %s8554_s7, %s5866_s17  ;;  %s495_s25 = int_to_ptr.vmem [resolvable:$true] %s494_s25 }
  0x6c   : > { %p5873_p1 = scmp.lt.u32.totalorder %s5866_s17, %s8554_s7 }
  0x6d   : > { %p5869_p8 = pnand %p5867_p6, %p6481_p7 }
  0x6f   : > { %p5870_p9 = pneg %p5869_p8 }
  0x71   : > { %p5875_p3 = pnand %p5873_p1, %p5870_p9 }
  0x73   : > { %5878 = shalt.err (!%p5875_p3)
}
  0x74   : > { %s5879_s24 = scalar_lea.vmem %s495_s25, 32  ;;  %p5887_p13 = scmp.lt.s32.totalorder %s495_s25, %s495_s25 }
  0x75   : > { %p5880_p10 = scmp.ne.s32.totalorder %s495_s25, %s5879_s24  ;;  %p5888_p0 = scmp.lt.s32.totalorder %s5879_s24, %s5879_s24 }
  0x77   : > { %p5882_p11 = pnand %p5880_p10, %p6481_p7  ;;  %p5889_p2 = por %p5888_p0, %p5887_p13 }
  0x79   : > { %p5883_p12 = pneg %p5882_p11 }
  0x7b   : > { %p5890_p4 = pnand %p5889_p2, %p5883_p12 }
  0x7d   : > { %5893 = shalt.err (!%p5890_p4)
}
  0x7e   : > { %5278 = dma.hbm_to_vmem [thread:$0]  (!%p6465_p5), %s8554_s7, 32, %s495_s25, [#allocation15]  }
  0x7f   : > { %s6320_s21 = smov [#allocation17]   ;;  %s6321_s27 = smov [#allocation20]  }
  0x80   : > { %s517_s26 = sshll.u32 %s6320_s21, 4  ;;  %s542_s17 = sshll.u32 %s6321_s27, 4  ;;  %s518_s26 = int_to_ptr.vmem [resolvable:$true] %s517_s26  ;;  %s6563_s17 = int_to_ptr.vmem [resolvable:$true] %s542_s17 }
  0x81   : > { %s5894_s30 = scalar_lea.hbm %s8556_s9, 8192 }
  0x82   : > { %p5895_p6 = scmp.ne.s32.totalorder %s8556_s9, %s5894_s30  ;;  %p5901_p1 = scmp.lt.u32.totalorder %s5894_s30, %s8556_s9 }
  0x84   : > { %p5897_p8 = pnand %p5895_p6, %p6481_p7 }
  0x86   : > { %p5898_p9 = pneg %p5897_p8 }
  0x88   : > { %p5903_p3 = pnand %p5901_p1, %p5898_p9 }
  0x8a   : > { %5906 = shalt.err (!%p5903_p3)
}
  0x8b   : > { %s5907_s0 = scalar_lea.vmem %s518_s26, 8192  ;;  %p5915_p13 = scmp.lt.s32.totalorder %s518_s26, %s518_s26 }
  0x8c   : > { %p5908_p10 = scmp.ne.s32.totalorder %s518_s26, %s5907_s0  ;;  %p5916_p0 = scmp.lt.s32.totalorder %s5907_s0, %s5907_s0 }
  0x8e   : > { %p5910_p11 = pnand %p5908_p10, %p6481_p7  ;;  %p5917_p2 = por %p5916_p0, %p5915_p13 }
  0x90   : > { %p5911_p12 = pneg %p5910_p11 }
  0x92   : > { %p5918_p4 = pnand %p5917_p2, %p5911_p12 }
  0x94   : > { %5921 = shalt.err (!%p5918_p4)
}
  0x95   : > { %s8573_s21 = smov 256   ;;  %s8574_s27 = smov 16  }
  0x96   : > { %5284 = dma.hbm_to_vmem [thread:$0]  (!%p6465_p5), %s8556_s9, 8192, %s518_s26, [#allocation18], %s8573_s21, %s8573_s21, %s8574_s27  }
  0x97   : > { %s5922_s24 = scalar_lea.hbm %s8558_s11, 64 }
  0x98   : > { %p5923_p6 = scmp.ne.s32.totalorder %s8558_s11, %s5922_s24  ;;  %p5929_p1 = scmp.lt.u32.totalorder %s5922_s24, %s8558_s11 }
  0x9a   : > { %p5925_p8 = pnand %p5923_p6, %p6481_p7 }
  0x9c   : > { %p5926_p9 = pneg %p5925_p8 }
  0x9e   : > { %p5931_p3 = pnand %p5929_p1, %p5926_p9 }
  0xa0   : > { %5934 = shalt.err (!%p5931_p3)
}
  0xa1   : > { %s5935_s26 = scalar_lea.vmem %s6563_s17, 64  ;;  %p5943_p13 = scmp.lt.s32.totalorder %s6563_s17, %s6563_s17 }
  0xa2   : > { %p5936_p10 = scmp.ne.s32.totalorder %s6563_s17, %s5935_s26  ;;  %p5944_p0 = scmp.lt.s32.totalorder %s5935_s26, %s5935_s26 }
  0xa4   : > { %p5938_p11 = pnand %p5936_p10, %p6481_p7  ;;  %p5945_p2 = por %p5944_p0, %p5943_p13 }
  0xa6   : > { %p5939_p12 = pneg %p5938_p11 }
  0xa8   : > { %p5946_p4 = pnand %p5945_p2, %p5939_p12 }
  0xaa   : > { %5949 = shalt.err (!%p5946_p4)
}
  0xab   : > { %5290 = dma.hbm_to_vmem [thread:$0]  (!%p6465_p5), %s8558_s11, 64, %s6563_s17, [#allocation21]  }
  0xac   : > { %s6324_s28 = smov [#allocation23]   ;;  %s6325_s18 = smov [#allocation7]  }
  0xad   : > { %s563_s30 = sshll.u32 %s6324_s28, 4  ;;  %s437_s24 = sshll.u32 %s6325_s18, 4  ;;  %s564_s30 = int_to_ptr.vmem [resolvable:$true] %s563_s30  ;;  %s6609_s24 = int_to_ptr.vmem [resolvable:$true] %s437_s24 }
  0xae   : > { %s5950_s0 = scalar_lea.hbm %s8560_s13, 8192 }
  0xaf   : > { %p5951_p6 = scmp.ne.s32.totalorder %s8560_s13, %s5950_s0  ;;  %p5957_p1 = scmp.lt.u32.totalorder %s5950_s0, %s8560_s13 }
  0xb1   : > { %p5953_p8 = pnand %p5951_p6, %p6481_p7 }
  0xb3   : > { %p5954_p9 = pneg %p5953_p8 }
  0xb5   : > { %p5959_p3 = pnand %p5957_p1, %p5954_p9 }
  0xb7   : > { %5962 = shalt.err (!%p5959_p3)
}
  0xb8   : > { %s5963_s15 = scalar_lea.vmem %s564_s30, 8192  ;;  %p5971_p13 = scmp.lt.s32.totalorder %s564_s30, %s564_s30 }
  0xb9   : > { %p5964_p10 = scmp.ne.s32.totalorder %s564_s30, %s5963_s15  ;;  %p5972_p0 = scmp.lt.s32.totalorder %s5963_s15, %s5963_s15 }
  0xbb   : > { %p5966_p11 = pnand %p5964_p10, %p6481_p7  ;;  %p5973_p2 = por %p5972_p0, %p5971_p13 }
  0xbd   : > { %p5967_p12 = pneg %p5966_p11 }
  0xbf   : > { %p5974_p4 = pnand %p5973_p2, %p5967_p12 }
  0xc1   : > { %5977 = shalt.err (!%p5974_p4)
}
  0xc2   : > { %s8575_s21 = smov 128   ;;  %s8577_s28 = smov 8  }
  0xc3   : > { %5296 = dma.hbm_to_vmem [thread:$0]  (!%p6465_p5), %s8560_s13, 8192, %s564_s30, [#allocation24], %s8575_s21, %s8575_s21, %s8577_s28  }
  0xc4   : > { %s8652_s2 = sld [smem:[#allocation83_spill]] }
  0xca   : > { %s5978_s26 = scalar_lea.hbm %s8652_s2, 128 }
  0xcb   : > { %p5979_p6 = scmp.ne.s32.totalorder %s8652_s2, %s5978_s26  ;;  %p5985_p1 = scmp.lt.u32.totalorder %s5978_s26, %s8652_s2 }
  0xcd   : > { %p5981_p8 = pnand %p5979_p6, %p6481_p7 }
  0xcf   : > { %p5982_p9 = pneg %p5981_p8 }
  0xd1   : > { %p5987_p3 = pnand %p5985_p1, %p5982_p9 }
  0xd3   : > { %5990 = shalt.err (!%p5987_p3)
}
  0xd4   : > { %s5991_s30 = scalar_lea.vmem %s6609_s24, 128  ;;  %p5999_p13 = scmp.lt.s32.totalorder %s6609_s24, %s6609_s24 }
  0xd5   : > { %p5992_p10 = scmp.ne.s32.totalorder %s6609_s24, %s5991_s30  ;;  %p6000_p0 = scmp.lt.s32.totalorder %s5991_s30, %s5991_s30 }
  0xd7   : > { %p5994_p11 = pnand %p5992_p10, %p6481_p7  ;;  %p6001_p2 = por %p6000_p0, %p5999_p13 }
  0xd9   : > { %p5995_p12 = pneg %p5994_p11 }
  0xdb   : > { %p6002_p4 = pnand %p6001_p2, %p5995_p12 }
  0xdd   : > { %6005 = shalt.err (!%p6002_p4)
}
  0xde   : > { %5263 = dma.hbm_to_vmem [thread:$0]  (!%p6465_p5), %s8652_s2, 128, %s6609_s24, [#allocation6]  }
  0xdf   : > { %s6328_s19 = smov [#allocation10]   ;;  %s6329_s0 = smov [#allocation13]  }
  0xe0   : > { %s459_s25 = sshll.u32 %s6328_s19, 4  ;;  %s480_s26 = sshll.u32 %s6329_s0, 4  ;;  %s460_s25 = int_to_ptr.vmem [resolvable:$true] %s459_s25  ;;  %s6655_s26 = int_to_ptr.vmem [resolvable:$true] %s480_s26 }
  0xe1   : > { %s8653_s4 = sld [smem:[#allocation85_spill]] }
  0xe7   : > { %s6006_s15 = scalar_lea.hbm %s8653_s4, 16 }
  0xe8   : > { %p6007_p6 = scmp.ne.s32.totalorder %s8653_s4, %s6006_s15  ;;  %p6013_p1 = scmp.lt.u32.totalorder %s6006_s15, %s8653_s4 }
  0xea   : > { %p6009_p8 = pnand %p6007_p6, %p6481_p7 }
  0xec   : > { %p6010_p9 = pneg %p6009_p8 }
  0xee   : > { %p6015_p3 = pnand %p6013_p1, %p6010_p9 }
  0xf0   : > { %6018 = shalt.err (!%p6015_p3)
}
  0xf1   : > { %s6019_s18 = scalar_lea.vmem %s460_s25, 16  ;;  %s6026_s19 = scalar_lea.vmem %s460_s25, 32 }
  0xf2   : > { %p6020_p10 = scmp.ne.s32.totalorder %s460_s25, %s6019_s18  ;;  %p6027_p13 = scmp.lt.s32.totalorder %s460_s25, %s460_s25 }
  0xf3   : > { %p6028_p0 = scmp.lt.s32.totalorder %s6026_s19, %s6019_s18 }
  0xf4   : > { %p6022_p11 = pnand %p6020_p10, %p6481_p7 }
  0xf5   : > { %p6029_p2 = por %p6028_p0, %p6027_p13 }
  0xf6   : > { %p6023_p12 = pneg %p6022_p11 }
  0xf8   : > { %p6030_p4 = pnand %p6029_p2, %p6023_p12 }
  0xfa   : > { %6033 = shalt.err (!%p6030_p4)
}
  0xfb   : > { %5269 = dma.hbm_to_vmem [thread:$0]  (!%p6465_p5), %s8653_s4, 16, %s460_s25, [#allocation9]  }
  0xfc   : > { %s6034_s15 = scalar_lea.hbm %s8553_s6, 2048 }
  0xfd   : > { %p6035_p6 = scmp.ne.s32.totalorder %s8553_s6, %s6034_s15  ;;  %p6041_p1 = scmp.lt.u32.totalorder %s6034_s15, %s8553_s6 }
  0xff   : > { %p6037_p8 = pnand %p6035_p6, %p6481_p7 }
 0x101   : > { %p6038_p9 = pneg %p6037_p8 }
 0x103   : > { %p6043_p3 = pnand %p6041_p1, %p6038_p9 }
 0x105   : > { %6046 = shalt.err (!%p6043_p3)
}
 0x106   : > { %s6047_s25 = scalar_lea.vmem %s6655_s26, 2048  ;;  %p6055_p13 = scmp.lt.s32.totalorder %s6655_s26, %s6655_s26 }
 0x107   : > { %p6048_p10 = scmp.ne.s32.totalorder %s6655_s26, %s6047_s25  ;;  %p6056_p0 = scmp.lt.s32.totalorder %s6047_s25, %s6047_s25 }
 0x109   : > { %p6050_p11 = pnand %p6048_p10, %p6481_p7  ;;  %p6057_p2 = por %p6056_p0, %p6055_p13 }
 0x10b   : > { %p6051_p12 = pneg %p6050_p11 }
 0x10d   : > { %p6058_p4 = pnand %p6057_p2, %p6051_p12 }
 0x10f   : > { %6061 = shalt.err (!%p6058_p4)
}
 0x110   : > { %s8654_s19 = smov 128   ;;  %s6330_s1 = smov [#allocation16]  }
 0x111   : > { %5275 = dma.hbm_to_vmem [thread:$0]  (!%p6465_p5), %s8553_s6, 2048, %s6655_s26, [#allocation12], %s8654_s19, %s8654_s19, %s8577_s28  }
 0x112   : > { %s504_s17 = sshll.u32 %s6330_s1, 4  ;;  %s6331_s15 = smov [#allocation19]   ;;  %s505_s17 = int_to_ptr.vmem [resolvable:$true] %s504_s17 }
 0x113   : > { %s531_s30 = sshll.u32 %s6331_s15, 4  ;;  %s6062_s18 = scalar_lea.hbm %s8555_s8, 8192  ;;  %s6701_s30 = int_to_ptr.vmem [resolvable:$true] %s531_s30 }
 0x114   : > { %p6063_p6 = scmp.ne.s32.totalorder %s8555_s8, %s6062_s18  ;;  %p6069_p1 = scmp.lt.u32.totalorder %s6062_s18, %s8555_s8 }
 0x116   : > { %p6065_p8 = pnand %p6063_p6, %p6481_p7 }
 0x118   : > { %p6066_p9 = pneg %p6065_p8 }
 0x11a   : > { %p6071_p3 = pnand %p6069_p1, %p6066_p9 }
 0x11c   : > { %6074 = shalt.err (!%p6071_p3)
}
 0x11d   : > { %s6075_s0 = scalar_lea.vmem %s505_s17, 8192  ;;  %p6083_p13 = scmp.lt.s32.totalorder %s505_s17, %s505_s17 }
 0x11e   : > { %p6076_p10 = scmp.ne.s32.totalorder %s505_s17, %s6075_s0  ;;  %p6084_p0 = scmp.lt.s32.totalorder %s6075_s0, %s6075_s0 }
 0x120   : > { %p6078_p11 = pnand %p6076_p10, %p6481_p7  ;;  %p6085_p2 = por %p6084_p0, %p6083_p13 }
 0x122   : > { %p6079_p12 = pneg %p6078_p11 }
 0x124   : > { %p6086_p4 = pnand %p6085_p2, %p6079_p12 }
 0x126   : > { %6089 = shalt.err (!%p6086_p4)
}
 0x127   : > { %s8655_s2 = smov 16   ;;  %s8656_s1 = smov 256  }
 0x128   : > { %5281 = dma.hbm_to_vmem [thread:$0]  (!%p6465_p5), %s8555_s8, 8192, %s505_s17, [#allocation15], %s8656_s1, %s8656_s1, %s8655_s2  }
 0x129   : > { %s6090_s25 = scalar_lea.hbm %s8557_s10, 64 }
 0x12a   : > { %p6091_p6 = scmp.ne.s32.totalorder %s8557_s10, %s6090_s25  ;;  %p6097_p1 = scmp.lt.u32.totalorder %s6090_s25, %s8557_s10 }
 0x12c   : > { %p6093_p8 = pnand %p6091_p6, %p6481_p7 }
 0x12e   : > { %p6094_p9 = pneg %p6093_p8 }
 0x130   : > { %p6099_p3 = pnand %p6097_p1, %p6094_p9 }
 0x132   : > { %6102 = shalt.err (!%p6099_p3)
}
 0x133   : > { %s6103_s17 = scalar_lea.vmem %s6701_s30, 64  ;;  %p6111_p13 = scmp.lt.s32.totalorder %s6701_s30, %s6701_s30 }
 0x134   : > { %p6104_p10 = scmp.ne.s32.totalorder %s6701_s30, %s6103_s17  ;;  %p6112_p0 = scmp.lt.s32.totalorder %s6103_s17, %s6103_s17 }
 0x136   : > { %p6106_p11 = pnand %p6104_p10, %p6481_p7  ;;  %p6113_p2 = por %p6112_p0, %p6111_p13 }
 0x138   : > { %p6107_p12 = pneg %p6106_p11 }
 0x13a   : > { %p6114_p4 = pnand %p6113_p2, %p6107_p12 }
 0x13c   : > { %6117 = shalt.err (!%p6114_p4)
}
 0x13d   : > { %5287 = dma.hbm_to_vmem [thread:$0]  (!%p6465_p5), %s8557_s10, 64, %s6701_s30, [#allocation18]  }
 0x13e   : > { %s6332_s1 = smov [#allocation22]   ;;  %s6333_s27 = smov [#allocation25]  }
 0x13f   : > { %s553_s15 = sshll.u32 %s6332_s1, 4  ;;  %s577_s24 = sshll.u32 %s6333_s27, 4  ;;  %s554_s15 = int_to_ptr.vmem [resolvable:$true] %s553_s15  ;;  %s6747_s24 = int_to_ptr.vmem [resolvable:$true] %s577_s24 }
 0x140   : > { %s6118_s21 = scalar_lea.hbm %s8559_s12, 64 }
 0x141   : > { %p6119_p6 = scmp.ne.s32.totalorder %s8559_s12, %s6118_s21  ;;  %p6125_p1 = scmp.lt.u32.totalorder %s6118_s21, %s8559_s12 }
 0x143   : > { %p6121_p8 = pnand %p6119_p6, %p6481_p7 }
 0x145   : > { %p6122_p9 = pneg %p6121_p8 }
 0x147   : > { %p6127_p3 = pnand %p6125_p1, %p6122_p9 }
 0x149   : > { %6130 = shalt.err (!%p6127_p3)
}
 0x14a   : > { %s6131_s28 = scalar_lea.vmem %s554_s15, 64  ;;  %p6139_p13 = scmp.lt.s32.totalorder %s554_s15, %s554_s15 }
 0x14b   : > { %p6132_p10 = scmp.ne.s32.totalorder %s554_s15, %s6131_s28  ;;  %p6140_p0 = scmp.lt.s32.totalorder %s6131_s28, %s6131_s28 }
 0x14d   : > { %p6134_p11 = pnand %p6132_p10, %p6481_p7  ;;  %p6141_p2 = por %p6140_p0, %p6139_p13 }
 0x14f   : > { %p6135_p12 = pneg %p6134_p11 }
 0x151   : > { %p6142_p4 = pnand %p6141_p2, %p6135_p12 }
 0x153   : > { %6145 = shalt.err (!%p6142_p4)
}
 0x154   : > { %5293 = dma.hbm_to_vmem [thread:$0]  (!%p6465_p5), %s8559_s12, 64, %s554_s15, [#allocation21]  }
 0x155   : > { %s6146_s25 = scalar_lea.hbm %s8561_s14, 32 }
 0x156   : > { %p6147_p6 = scmp.ne.s32.totalorder %s8561_s14, %s6146_s25  ;;  %p6153_p1 = scmp.lt.u32.totalorder %s6146_s25, %s8561_s14 }
 0x158   : > { %p6149_p8 = pnand %p6147_p6, %p6481_p7 }
 0x15a   : > { %p6150_p9 = pneg %p6149_p8 }
 0x15c   : > { %p6155_p3 = pnand %p6153_p1, %p6150_p9 }
 0x15e   : > { %6158 = shalt.err (!%p6155_p3)
}
 0x15f   : > { %s6159_s15 = scalar_lea.vmem %s6747_s24, 32  ;;  %p6167_p13 = scmp.lt.s32.totalorder %s6747_s24, %s6747_s24 }
 0x160   : > { %p6160_p10 = scmp.ne.s32.totalorder %s6747_s24, %s6159_s15  ;;  %p6168_p0 = scmp.lt.s32.totalorder %s6159_s15, %s6159_s15 }
 0x162   : > { %p6162_p11 = pnand %p6160_p10, %p6481_p7  ;;  %p6169_p2 = por %p6168_p0, %p6167_p13 }
 0x164   : > { %p6163_p12 = pneg %p6162_p11 }
 0x166   : > { %p6170_p4 = pnand %p6169_p2, %p6163_p12 }
 0x168   : > { %6173 = shalt.err (!%p6170_p4)
}
 0x169   : > { %s8657_s2 = sld [smem:[#allocation37_spill]]  ;;  %s8658_s29 = sld [smem:[#allocation36_spill]] }
 0x16a   : > { %s8659_s1 = sld [smem:[#allocation39_spill]]  ;;  %s4819_s27 = sadd.s32 4294967294, %s6314_s23  }
 0x16b   : > { %5299 = dma.hbm_to_vmem [thread:$0]  (!%p6465_p5), %s8561_s14, 32, %s6747_s24, [#allocation24]  }
 0x16c   : > { %s50_s18 = sadd.s32 1, %s6310_s22  ;;  %s59_s16 = sadd.s32 1, %s6302_s20 }
 0x16d   : > { %p52_p7 = scmp.ge.s32.totalorder %s50_s18, 4  ;;  %p67_p8 = scmp.eq.s32.totalorder %s6314_s23, 0 }
 0x16e   : > { %s8661_s21 = sadd.s32 4294967295, %s6314_s23   ;;  %p403_p13 = scmp.eq.s32.totalorder %s4819_s27, 3 }
 0x16f   : > { %p66_p6 = scmp.ne.s32.totalorder %s6302_s20, %s8657_s2  ;;  %s8847_s18 = smov (%p52_p7, %s50_s18), 0 }
 0x170   : > { %p72_p1 = scmp.ne.s32.totalorder %s8657_s2, %s8658_s29  ;;  %s56_s24 = ssub.s32 %s6310_s22, %s8847_s18 }
 0x171   : > { %p6798_p9 = por %p67_p8, %p66_p6  ;;  %p397_p5 = scmp.eq.s32.totalorder %s8661_s21, 3 }
 0x172   : > { %p57_p3 = scmp.eq.s32.totalorder %s56_s24, 0  ;;  %p8662_p10 = scmp.ne.s32.totalorder %s8659_s1, 0 }
 0x173   : > { %p6814_p12 = por %p397_p5, %p66_p6  ;;  %p6821_p0 = por %p403_p13, %p72_p1 }
 0x174   : > { %p6810_p11 = por %p8662_p10, %p72_p1  ;;  %p5322_p2 = scmp.lt.s32.totalorder %s6314_s23, 4 }
 0x175   : > { %s8664_s0 = scalar_select %p6814_p12, 1, 0 }
 0x176   : > { %s6819_s17 = scalar_select %p57_p3, %s6302_s20, %s59_s16  }
 0x177   : > { %s8665_s15 = scalar_select %p6821_p0, 1, 0 }
 0x178   : > { %s588_s30 = sand.u32 1, %s6302_s20   ;;  %s5088_s28 = sshll.u32 %s6310_s22, 11 }
 0x179   : > { %s4836_s2 = sshll.u32 %s588_s30, 7  ;;  %s8666_s24 = sld [smem:[#allocation81_spill]] }
 0x17a   : > { %s592_s27 = scalar_lea.vmem [#allocation2], %s4836_s2  ;;  %p6835_p4 = pnand %p5322_p2, %p6798_p9 }
 0x17b   : > { %s600_s16 = sshll.u32 %s592_s27, 4  ;;  %s6841_s4 = scalar_lea.sflag [#allocation3], %s588_s30  ;;  %s6839_s16 = int_to_ptr.vmem [resolvable:$true] %s600_s16 }
 0x17c   : > { %p6176_p6 = pneg %p6835_p4 }
 0x17f   : > { %s6831_s21 = scalar_lea.hbm %s8666_s24, %s5088_s28  ;;  %s6179_s2 = scalar_lea.hbm %s8666_s24, 8192 }
 0x180   : > { %s6174_s29 = scalar_lea.hbm %s6831_s21, 2048  ;;  %p6180_p9 = scmp.lt.u32.totalorder %s6831_s21, %s8666_s24 }
 0x181   : > { %p6175_p7 = scmp.ne.s32.totalorder %s6831_s21, %s6174_s29  ;;  %p6181_p5 = scmp.lt.u32.totalorder %s6179_s2, %s6174_s29 }
 0x182   : > { %p6183_p10 = scmp.lt.u32.totalorder %s6174_s29, %s6831_s21 }
 0x183   : > { %p6177_p8 = pnand %p6176_p6, %p6175_p7  ;;  %p6182_p3 = por %p6181_p5, %p6180_p9 }
 0x185   : > { %p6178_p1 = pneg %p6177_p8  ;;  %p6184_p13 = por %p6183_p10, %p6182_p3 }
 0x187   : > { %p6185_p2 = pnand %p6184_p13, %p6178_p1 }
 0x189   : > { %6188 = shalt.err (!%p6185_p2)
}
 0x18a   : > { %s6189_s30 = scalar_lea.vmem %s6839_s16, 2048  ;;  %s6334_s28 = smov [#allocation2]  }
 0x18b   : > { %p6190_p7 = scmp.ne.s32.totalorder %s6839_s16, %s6189_s30  ;;  %s6194_s25 = sshll.u32 %s6334_s28, 4  ;;  %s6195_s25 = int_to_ptr.vmem [resolvable:$false] %s6194_s25 }
 0x18c   : > { %s6196_s1 = scalar_lea.vmem %s6195_s25, 4096  ;;  %p6197_p12 = scmp.lt.s32.totalorder %s6839_s16, %s6195_s25 }
 0x18d   : > { %p6192_p8 = pnand %p6190_p7, %p6176_p6  ;;  %p6198_p9 = scmp.lt.s32.totalorder %s6196_s1, %s6189_s30 }
 0x18f   : > { %p6193_p0 = pneg %p6192_p8  ;;  %p6199_p5 = por %p6198_p9, %p6197_p12 }
 0x191   : > { %p6200_p3 = pnand %p6199_p5, %p6193_p0 }
 0x193   : > { %6203 = shalt.err (!%p6200_p3)
}
 0x194   : > { %s8668_s29 = smov 8   ;;  %s8669_s2 = sld [smem:[#allocation40_spill]] }
 0x195   : > { %5303 = dma.hbm_to_vmem [thread:$0]  (!%p6835_p4), %s6831_s21, 2048, %s6839_s16, %s6841_s4, %s8654_s19, %s8654_s19, %s8668_s29  }
 0x19a   : > { %p8670_p6 = scmp.ne.s32.totalorder %s8669_s2, 0 }
 0x19c   : > { %612 = sbr.rel (%p8670_p6) target bundleno = 2261 (0x8d5), region = 80 }
 0x1a3   : > { %s8671_s27 = sld [smem:[#allocation37_spill]] }
 0x1a9   : > { %s6875_s28 = sand.u32 1, %s8671_s27  }
 0x1aa   : > { %s4840_s30 = sshll.u32 %s6875_s28, 7  ;;  %s615_s25 = scalar_lea.sflag [#allocation3], %s6875_s28 }
 0x1ab   : > { %s6879_s1 = scalar_lea.vmem [#allocation2], %s4840_s30 }
 0x1ac   : > { %6257 = dma.done.wait (%p6810_p11), %s615_s25, 2048  }
 0x1ad   : > { %6259 = vsyncadd (%p6810_p11), %s615_s25, 4294965248  ;;  %s8672_s3 = sld [smem:[#allocation39_spill]] }
 0x1b3   : > { %p8673_p12 = scmp.ne.s32.totalorder %s8672_s3, 0 }
 0x1b5   : > { %6261 = dma.done.wait (%p8673_p12), [#allocation6], 384  }
 0x1b6   : > { %6263 = vsyncadd (%p8673_p12), [#allocation6], 4294966912 }
 0x1b7   : > { %6265 = dma.done.wait (%p8673_p12), [#allocation9], 32  }
 0x1b8   : > { %6267 = vsyncadd (%p8673_p12), [#allocation9], 4294967264 }
 0x1b9   : > { %6269 = dma.done.wait (%p8673_p12), [#allocation12], 2064  }
 0x1ba   : > { %6271 = vsyncadd (%p8673_p12), [#allocation12], 4294965232 }
 0x1bb   : > { %6273 = dma.done.wait (%p8673_p12), [#allocation15], 8224  }
 0x1bc   : > { %6275 = vsyncadd (%p8673_p12), [#allocation15], 4294959072 }
 0x1bd   : > { %6277 = dma.done.wait (%p8673_p12), [#allocation18], 8256  }
 0x1be   : > { %6279 = vsyncadd (%p8673_p12), [#allocation18], 4294959040 }
 0x1bf   : > { %6281 = dma.done.wait (%p8673_p12), [#allocation21], 128  }
 0x1c0   : > { %6283 = vsyncadd (%p8673_p12), [#allocation21], 4294967168 }
 0x1c1   : > { %6285 = dma.done.wait (%p8673_p12), [#allocation24], 8224  }
 0x1c2   : > { %6287 = vsyncadd (%p8673_p12), [#allocation24], 4294959072  ;;  %vm749_vm0 = vcmask 64512   ;;  %v741_v0 = vld [vmem:[#allocation7] sm:$0xff]  ;;  %v725_v1 = vld [vmem:[%s6879_s1] sm:$0xff]  ;;  %vm2261_vm1 = vcmask 1041409  }
 0x1c3   : > { %v726_v2 = vld [vmem:[%s6879_s1 + $0x8] sm:$0xff]  ;;  %5107 = vmatprep.subr.mxu1 %v741_v0  ;;  %5109 = vmatprep.mubr.msk.f32.mxu1 %vm749_vm0, %v725_v1  ;;  %v727_v3 = vld [vmem:[%s6879_s1 + $0x10] sm:$0xff]  ;;  %v728_v4 = vld [vmem:[%s6879_s1 + $0x18] sm:$0xff]  ;;  %vm2263_vm2 = vcmask 1042434   ;;  %vm2265_vm3 = vcmask 1043459   ;;  %vm2267_vm4 = vcmask 1044484  }
 0x1c4   : > { %5108 = vmatpush3.msra.mxu1 %v741_v0  ;;  %v729_v5 = vld [vmem:[%s6879_s1 + $0x20] sm:$0xff]  ;;  %v730_v6 = vld [vmem:[%s6879_s1 + $0x28] sm:$0xff]  ;;  %v731_v7 = vld [vmem:[%s6879_s1 + $0x30] sm:$0xff]  ;;  %vm2269_vm5 = vcmask 1045509   ;;  %vm2271_vm6 = vcmask 1046534   ;;  %vm2273_vm7 = vcmask 1047559  }
 0x1c5   : > { %5110 = vmatmul.mubr.msk.f32.vlgmr.msra.gmra.mrb[0].mxu1 %vm749_vm0, %v726_v2  ;;  %v732_v8 = vld [vmem:[%s6879_s1 + $0x38] sm:$0xff]  ;;  %v733_v9 = vld [vmem:[%s6879_s1 + $0x40] sm:$0xff]  ;;  %v734_v10 = vld [vmem:[%s6879_s1 + $0x48] sm:$0xff]  ;;  %s8834_s4 = sld [smem:[#allocation38_spill]]  ;;  %s4855_s19 = sshll.u32 %s6875_s28, 4 }
 0x1c6   : > { %5112 = vmatprep.mubr.msk.f32.mxu1 %vm749_vm0, %v727_v3  ;;  %v735_v11 = vld [vmem:[%s6879_s1 + $0x50] sm:$0xff]  ;;  %v736_v12 = vld [vmem:[%s6879_s1 + $0x58] sm:$0xff]  ;;  %v737_v13 = vld [vmem:[%s6879_s1 + $0x60] sm:$0xff]  ;;  %s720_s21 = scalar_lea.vmem [#allocation26], %s4855_s19  ;;  %s8835_s27 = sld [smem:[#allocation86_spill]] }
 0x1c7   : > { %v738_v14 = vld [vmem:[%s6879_s1 + $0x68] sm:$0xff]  ;;  %v739_v15 = vld [vmem:[%s6879_s1 + $0x70] sm:$0xff]  ;;  %v740_v16 = vld [vmem:[%s6879_s1 + $0x78] sm:$0xff]  ;;  %s4603_s16 = sshll.u32 %s720_s21, 4  ;;  %s4588_s25 = scalar_lea.sflag [#allocation4], %s6875_s28  ;;  %s8500_s16 = int_to_ptr.vmem [resolvable:$true] %s4603_s16 }
 0x1c8   : > { %v4856_v17 = vld [vmem:[#allocation8] ss:$0 sm:$0xff]  ;;  %v5406_v50 = vld [vmem:[#allocation13] ss:$8 sps:$4 sm:$0xff]   ;;  %v5408_v51 = vld [vmem:[#allocation13 + $0x4] ss:$8 sps:$4 sm:$0xff]  }
 0x1c9   : > { %5113 = vmatmul.mubr.msk.f32.gmra.mrb[2].mxu1 %vm749_vm0, %v728_v4  ;;  %1298 = vmatprep.subr.bf16.mxu1 %v5408_v51  ;;  %s6204_s1 = scalar_lea.vmem %s8500_s16, 256  ;;  %p8836_p0 = scmp.ne.s32.totalorder %s8664_s0, 0 }
 0x1ca   : > { %5115 = vmatprep.mubr.msk.f32.mxu1 %vm749_vm0, %v729_v5  ;;  %1299 = vmatpush1.bf16.msra.mxu1 %v5406_v50  ;;  %p6205_p11 = scmp.ne.s32.totalorder %s8500_s16, %s6204_s1  ;;  %s6337_s3 = smov [#allocation26]  }
 0x1cb   : > { %s5089_s26 = sshll.u32 %s8834_s4, 8  ;;  %s6208_s4 = sshll.u32 %s6337_s3, 4  ;;  %s6209_s4 = int_to_ptr.vmem [resolvable:$false] %s6208_s4 }
 0x1cc   : > { %s8498_s30 = scalar_lea.hbm %s8835_s27, %s5089_s26  ;;  %p6206_p4 = pnand %p6205_p11, %p8836_p0 }
 0x1cd   : > { %5116 = vmatmul.mubr.msk.f32.gmra.mrb[4].mxu1 %vm749_vm0, %v730_v6  ;;  %s6210_s19 = scalar_lea.vmem %s6209_s4, 512  ;;  %p6211_p10 = scmp.lt.s32.totalorder %s8500_s16, %s6209_s4 }
 0x1ce   : > { %5118 = vmatprep.mubr.msk.f32.mxu1 %vm749_vm0, %v731_v7  ;;  %p6207_p1 = pneg %p6206_p4  ;;  %p6212_p13 = scmp.lt.s32.totalorder %s6210_s19, %s6204_s1 }
 0x1d0   : > { %p6213_p2 = por %p6212_p13, %p6211_p10 }
 0x1d1   : > { %5119 = vmatmul.mubr.msk.f32.gmra.mrb[6].mxu1 %vm749_vm0, %v732_v8 }
 0x1d2   : > { %5121 = vmatprep.mubr.msk.f32.mxu1 %vm749_vm0, %v733_v9  ;;  %p6214_p7 = pnand %p6213_p2, %p6207_p1 }
 0x1d5   : > { %5122 = vmatmul.mubr.msk.f32.gmra.mrb[8].mxu1 %vm749_vm0, %v734_v10 }
 0x1d6   : > { %5124 = vmatprep.mubr.msk.f32.mxu1 %vm749_vm0, %v735_v11 }
 0x1d9   : > { %5125 = vmatmul.mubr.msk.f32.gmra.mrb[10].mxu1 %vm749_vm0, %v736_v12 }
 0x1da   : > { %5127 = vmatprep.mubr.msk.f32.mxu1 %vm749_vm0, %v737_v13 }
 0x1dd   : > { %5128 = vmatmul.mubr.msk.f32.gmra.mrb[12].mxu1 %vm749_vm0, %v738_v14 }
 0x1de   : > { %5130 = vmatprep.mubr.msk.f32.mxu1 %vm749_vm0, %v739_v15 }
 0x1e1   : > { %5131 = vmatmul.mubr.msk.f32.gmra.mrb[14].mxu1 %vm749_vm0, %v740_v16 }
 0x298   : > { %v5111_v18 = vpop.f32.mrb[0].mxu1 }
 0x299   : > { %v864_v19 = vpop.f32.mrb[1].mxu1  ;;  %v870_v23 = vadd.f32 %v5111_v18, %v4856_v17 }
 0x29a   : > { %v865_v20 = vadd.f32 %v4856_v17, %v864_v19 }
 0x29c   : > { %v5114_v21 = vpop.f32.mrb[2].mxu1  ;;  %945 = vadd.xlane.f32.xlu0 %v865_v20 }
 0x29d   : > { %v874_v22 = vpop.f32.mrb[3].mxu1  ;;  %v880_v25 = vadd.f32 %v5114_v21, %v4856_v17 }
 0x29e   : > { %v875_v24 = vadd.f32 %v4856_v17, %v874_v22 }
 0x2a0   : > { %v5117_v26 = vpop.f32.mrb[4].mxu1  ;;  %949 = vadd.xlane.f32.xlu1 %v875_v24  ;;  %947 = vadd.xlane.f32.xlu0 %v870_v23 }
 0x2a1   : > { %v884_v27 = vpop.f32.mrb[5].mxu1  ;;  %v6945_v29 = vadd.f32 %v5117_v26, %v4856_v17 }
 0x2a2   : > { %v885_v28 = vadd.f32 %v4856_v17, %v884_v27 }
 0x2a4   : > { %v5120_v30 = vpop.f32.mrb[6].mxu1  ;;  %951 = vadd.xlane.f32.xlu1 %v880_v25  ;;  %953 = vadd.xlane.f32.xlu0 %v885_v28 }
 0x2a5   : > { %v894_v31 = vpop.f32.mrb[7].mxu1  ;;  %v6947_v33 = vadd.f32 %v5120_v30, %v4856_v17 }
 0x2a6   : > { %v895_v32 = vadd.f32 %v4856_v17, %v894_v31 }
 0x2a8   : > { %v5123_v34 = vpop.f32.mrb[8].mxu1  ;;  %955 = vadd.xlane.f32.xlu1 %v6945_v29  ;;  %957 = vadd.xlane.f32.xlu0 %v895_v32 }
 0x2a9   : > { %v904_v35 = vpop.f32.mrb[9].mxu1  ;;  %v6952_v37 = vadd.f32 %v5123_v34, %v4856_v17 }
 0x2aa   : > { %v6950_v36 = vadd.f32 %v4856_v17, %v904_v35 }
 0x2ac   : > { %v5126_v38 = vpop.f32.mrb[10].mxu1  ;;  %959 = vadd.xlane.f32.xlu1 %v6947_v33  ;;  %961 = vadd.xlane.f32.xlu0 %v6950_v36 }
 0x2ad   : > { %v914_v39 = vpop.f32.mrb[11].mxu1  ;;  %v6958_v41 = vadd.f32 %v5126_v38, %v4856_v17 }
 0x2ae   : > { %v6956_v40 = vadd.f32 %v4856_v17, %v914_v39  ;;  %v5414_v39 = vld [vmem:[#allocation13 + $0x24] ss:$8 sps:$4 sm:$0xff]  }
 0x2b0   : > { %v5129_v42 = vpop.f32.mrb[12].mxu1  ;;  %963 = vadd.xlane.f32.xlu1 %v6952_v37  ;;  %965 = vadd.xlane.f32.xlu0 %v6956_v40 }
 0x2b1   : > { %v924_v43 = vpop.f32.mrb[13].mxu1  ;;  %v6964_v45 = vadd.f32 %v5129_v42, %v4856_v17  ;;  %v5412_v42 = vld [vmem:[#allocation13 + $0x20] ss:$8 sps:$4 sm:$0xff]  }
 0x2b2   : > { %v6962_v44 = vadd.f32 %v4856_v17, %v924_v43 }
 0x2b4   : > { %v5132_v46 = vpop.f32.mrb[14].mxu1  ;;  %967 = vadd.xlane.f32.xlu1 %v6958_v41  ;;  %969 = vadd.xlane.f32.xlu0 %v6962_v44 }
 0x2b5   : > { %v934_v47 = vpop.f32.mrb[15].mxu1  ;;  %v6970_v49 = vadd.f32 %v5132_v46, %v4856_v17 }
 0x2b6   : > { %v6968_v48 = vadd.f32 %v4856_v17, %v934_v47 }
 0x2b8   : > { %971 = vadd.xlane.f32.xlu1 %v6964_v45  ;;  %973 = vadd.xlane.f32.xlu0 %v6968_v48 }
 0x2bc   : > { %975 = vadd.xlane.f32.xlu1 %v6970_v49 }
 0x329   : > { %v946_v52 = vpop.xlane.xlu0 %945 }
 0x32a   : > { %v978_v53 = vmul.f32 0.0078125, %v946_v52 }
 0x32c   : > { %v6975_v54 = vsub.f32 %v865_v20, %v978_v53  ;;  %v5417_v53 = vld [vmem:[#allocation13 + $0x34] ss:$8 sps:$4 sm:$0xff]  }
 0x32d   : > { %v950_v55 = vpop.xlane.xlu1 %949  ;;  %v948_v56 = vpop.xlane.xlu0 %947 }
 0x32e   : > { %v980_v57 = vmul.f32 0.0078125, %v950_v55  ;;  %v979_v58 = vmul.f32 0.0078125, %v948_v56  ;;  %v1010_v59 = vmul.f32 %v6975_v54, %v6975_v54 }
 0x330   : > { %v6979_v60 = vsub.f32 %v875_v24, %v980_v57  ;;  %v6981_v61 = vsub.f32 %v870_v23, %v979_v58  ;;  %1026 = vadd.xlane.f32.xlu0 %v1010_v59  ;;  %v5411_v24 = vld [vmem:[#allocation13 + $0x14] ss:$8 sps:$4 sm:$0xff]  }
 0x331   : > { %v952_v62 = vpop.xlane.xlu1 %951  ;;  %v954_v63 = vpop.xlane.xlu0 %953  ;;  %1300 = vmatprep.subr.bf16.mxu1 %v5411_v24 }
 0x332   : > { %v981_v0 = vmul.f32 0.0078125, %v952_v62  ;;  %v982_v1 = vmul.f32 0.0078125, %v954_v63  ;;  %v1012_v2 = vmul.f32 %v6979_v60, %v6979_v60  ;;  %v1011_v3 = vmul.f32 %v6981_v61, %v6981_v61  ;;  %v5420_v62 = vld [vmem:[#allocation13 + $0x44] ss:$8 sps:$4 sm:$0xff]   ;;  %v5418_v63 = vld [vmem:[#allocation13 + $0x40] ss:$8 sps:$4 sm:$0xff]  }
 0x334   : > { %v6987_v4 = vsub.f32 %v880_v25, %v981_v0  ;;  %v6989_v5 = vsub.f32 %v885_v28, %v982_v1  ;;  %1030 = vadd.xlane.f32.xlu0 %v1012_v2  ;;  %1028 = vadd.xlane.f32.xlu1 %v1011_v3  ;;  %v5423_v0 = vld [vmem:[#allocation13 + $0x54] ss:$8 sps:$4 sm:$0xff]   ;;  %v5421_v1 = vld [vmem:[#allocation13 + $0x50] ss:$8 sps:$4 sm:$0xff]   ;;  %v5426_v2 = vld [vmem:[#allocation13 + $0x64] ss:$8 sps:$4 sm:$0xff]  }
 0x335   : > { %v956_v6 = vpop.xlane.xlu1 %955  ;;  %v958_v7 = vpop.xlane.xlu0 %957  ;;  %v5424_v3 = vld [vmem:[#allocation13 + $0x60] ss:$8 sps:$4 sm:$0xff]  }
 0x336   : > { %v983_v8 = vmul.f32 0.0078125, %v956_v6  ;;  %v984_v9 = vmul.f32 0.0078125, %v958_v7  ;;  %v1013_v10 = vmul.f32 %v6987_v4, %v6987_v4  ;;  %v1014_v11 = vmul.f32 %v6989_v5, %v6989_v5  ;;  %v5429_v6 = vld [vmem:[#allocation13 + $0x74] ss:$8 sps:$4 sm:$0xff]   ;;  %v5427_v7 = vld [vmem:[#allocation13 + $0x70] ss:$8 sps:$4 sm:$0xff]  }
 0x338   : > { %v6996_v12 = vsub.f32 %v6945_v29, %v983_v8  ;;  %v6998_v13 = vsub.f32 %v895_v32, %v984_v9  ;;  %1032 = vadd.xlane.f32.xlu1 %v1013_v10  ;;  %1034 = vadd.xlane.f32.xlu0 %v1014_v11  ;;  %v5409_v29 = vld [vmem:[#allocation13 + $0x10] ss:$8 sps:$4 sm:$0xff]  }
 0x339   : > { %v960_v14 = vpop.xlane.xlu1 %959  ;;  %v962_v15 = vpop.xlane.xlu0 %961  ;;  %1301 = vmatpush1.bf16.msra.mxu1 %v5409_v29  ;;  %v5432_v8 = vld [vmem:[#allocation17 + $0x4] ss:$16 sps:$4 sm:$0xff]  }
 0x33a   : > { %v985_v16 = vmul.f32 0.0078125, %v960_v14  ;;  %v986_v17 = vmul.f32 0.0078125, %v962_v15  ;;  %v1015_v18 = vmul.f32 %v6996_v12, %v6996_v12  ;;  %v1016_v19 = vmul.f32 %v6998_v13, %v6998_v13  ;;  %1302 = vmatprep.subr.bf16.mxu1 %v5414_v39 }
 0x33c   : > { %v7005_v20 = vsub.f32 %v6947_v33, %v985_v16  ;;  %v7008_v21 = vsub.f32 %v6950_v36, %v986_v17  ;;  %1036 = vadd.xlane.f32.xlu1 %v1015_v18  ;;  %1038 = vadd.xlane.f32.xlu0 %v1016_v19 }
 0x33d   : > { %v964_v22 = vpop.xlane.xlu1 %963  ;;  %v966_v23 = vpop.xlane.xlu0 %965  ;;  %1303 = vmatpush1.bf16.msra.mxu1 %v5412_v42 }
 0x33e   : > { %v987_v25 = vmul.f32 0.0078125, %v964_v22  ;;  %v988_v26 = vmul.f32 0.0078125, %v966_v23  ;;  %v1017_v27 = vmul.f32 %v7005_v20, %v7005_v20  ;;  %v1018_v28 = vmul.f32 %v7008_v21, %v7008_v21  ;;  %1304 = vmatprep.subr.bf16.mxu1 %v5417_v53 }
 0x340   : > { %v7015_v30 = vsub.f32 %v6952_v37, %v987_v25  ;;  %v7018_v31 = vsub.f32 %v6956_v40, %v988_v26  ;;  %1040 = vadd.xlane.f32.xlu1 %v1017_v27  ;;  %1042 = vadd.xlane.f32.xlu0 %v1018_v28 }
 0x341   : > { %v968_v32 = vpop.xlane.xlu1 %967  ;;  %v970_v33 = vpop.xlane.xlu0 %969 }
 0x342   : > { %v989_v34 = vmul.f32 0.0078125, %v968_v32  ;;  %v990_v35 = vmul.f32 0.0078125, %v970_v33  ;;  %v1019_v36 = vmul.f32 %v7015_v30, %v7015_v30  ;;  %v1020_v38 = vmul.f32 %v7018_v31, %v7018_v31 }
 0x344   : > { %v7025_v37 = vsub.f32 %v6958_v41, %v989_v34  ;;  %v7028_v40 = vsub.f32 %v6962_v44, %v990_v35  ;;  %1044 = vadd.xlane.f32.xlu1 %v1019_v36  ;;  %1046 = vadd.xlane.f32.xlu0 %v1020_v38  ;;  %v5415_v41 = vld [vmem:[#allocation13 + $0x30] ss:$8 sps:$4 sm:$0xff]   ;;  %v7050_v34 = vld [vmem:[#allocation10] ss:$0 sm:$0xff] }
 0x345   : > { %v972_v43 = vpop.xlane.xlu1 %971  ;;  %v974_v46 = vpop.xlane.xlu0 %973  ;;  %1305 = vmatpush1.bf16.msra.mxu1 %v5415_v41 }
 0x346   : > { %v991_v47 = vmul.f32 0.0078125, %v972_v43  ;;  %v992_v50 = vmul.f32 0.0078125, %v974_v46  ;;  %v1021_v51 = vmul.f32 %v7025_v37, %v7025_v37  ;;  %v1022_v52 = vmul.f32 %v7028_v40, %v7028_v40  ;;  %1306 = vmatprep.subr.bf16.mxu1 %v5420_v62 }
 0x348   : > { %v7035_v55 = vsub.f32 %v6964_v45, %v991_v47  ;;  %v7038_v44 = vsub.f32 %v6968_v48, %v992_v50  ;;  %1048 = vadd.xlane.f32.xlu1 %v1021_v51  ;;  %1050 = vadd.xlane.f32.xlu0 %v1022_v52  ;;  %v7054_v50 = vld [vmem:[#allocation11] ss:$0 sm:$0xff] }
 0x349   : > { %v976_v56 = vpop.xlane.xlu1 %975  ;;  %1307 = vmatpush1.bf16.msra.mxu1 %v5418_v63 }
 0x34a   : > { %v993_v57 = vmul.f32 0.0078125, %v976_v56  ;;  %v1023_v58 = vmul.f32 %v7035_v55, %v7035_v55  ;;  %v1024_v59 = vmul.f32 %v7038_v44, %v7038_v44  ;;  %1308 = vmatprep.subr.bf16.mxu1 %v5423_v0 }
 0x34c   : > { %v7045_v45 = vsub.f32 %v6970_v49, %v993_v57  ;;  %1052 = vadd.xlane.f32.xlu1 %v1023_v58  ;;  %1054 = vadd.xlane.f32.xlu0 %v1024_v59  ;;  %v6335_v49 = vmov 0  }
 0x34d   : > { %1309 = vmatpush1.bf16.msra.mxu1 %v5421_v1  ;;  %1330 = vmatprep.mubr.bf16.mxu1 %v6335_v49 }
 0x34e   : > { %v1025_v48 = vmul.f32 %v7045_v45, %v7045_v45  ;;  %1310 = vmatprep.subr.bf16.mxu1 %v5426_v2 }
 0x350   : > { %1056 = vadd.xlane.f32.xlu1 %v1025_v48 }
 0x351   : > { %1311 = vmatpush1.bf16.msra.mxu1 %v5424_v3 }
 0x352   : > { %1312 = vmatprep.subr.bf16.mxu1 %v5429_v6 }
 0x355   : > { %1313 = vmatpush1.bf16.msra.mxu1 %v5427_v7 }
 0x356   : > { %1923 = vmatprep.subr.bf16.mxu1 %v5432_v8 }
 0x3bd   : > { %v1027_v9 = vpop.xlane.xlu0 %1026 }
 0x3be   : > { %v1058_v10 = vmul.f32 0.0078125, %v1027_v9  ;;  %v5430_v9 = vld [vmem:[#allocation17] ss:$16 sps:$4 sm:$0xff]  }
 0x3c0   : > { %v1074_v11 = vadd.f32 1e-05, %v1058_v10 }
 0x3c1   : > { %v1029_v14 = vpop.xlane.xlu1 %1028  ;;  %v1031_v15 = vpop.xlane.xlu0 %1030 }
 0x3c2   : > { %5718 = vrsqrt.f32 %v1074_v11  ;;  %v1059_v16 = vmul.f32 0.0078125, %v1029_v14  ;;  %v1060_v17 = vmul.f32 0.0078125, %v1031_v15  ;;  %v5435_v15 = vld [vmem:[#allocation17 + $0x24] ss:$16 sps:$4 sm:$0xff]  }
 0x3c4   : > { %v1075_v18 = vadd.f32 1e-05, %v1059_v16  ;;  %v1076_v19 = vadd.f32 1e-05, %v1060_v17 }
 0x3c5   : > { %v1033_v22 = vpop.xlane.xlu1 %1032  ;;  %v1035_v23 = vpop.xlane.xlu0 %1034 }
 0x3c6   : > { %5720 = vrsqrt.f32 %v1075_v18  ;;  %v1061_v24 = vmul.f32 0.0078125, %v1033_v22  ;;  %v1062_v25 = vmul.f32 0.0078125, %v1035_v23  ;;  %v5433_v22 = vld [vmem:[#allocation17 + $0x20] ss:$16 sps:$4 sm:$0xff]  }
 0x3c7   : > { %5722 = vrsqrt.f32 %v1076_v19 }
 0x3c8   : > { %v1077_v26 = vadd.f32 1e-05, %v1061_v24  ;;  %v1078_v27 = vadd.f32 1e-05, %v1062_v25  ;;  %v5438_v25 = vld [vmem:[#allocation17 + $0x44] ss:$16 sps:$4 sm:$0xff]  }
 0x3c9   : > { %v1037_v28 = vpop.xlane.xlu1 %1036  ;;  %v1039_v32 = vpop.xlane.xlu0 %1038 }
 0x3ca   : > { %5724 = vrsqrt.f32 %v1077_v26  ;;  %v1063_v29 = vmul.f32 0.0078125, %v1037_v28  ;;  %v1064_v39 = vmul.f32 0.0078125, %v1039_v32 }
 0x3cb   : > { %5726 = vrsqrt.f32 %v1078_v27 }
 0x3cc   : > { %v5719_v33 = vpop.eup %5718  ;;  %v1079_v35 = vadd.f32 1e-05, %v1063_v29  ;;  %v1080_v41 = vadd.f32 1e-05, %v1064_v39  ;;  %v5441_v39 = vld [vmem:[#allocation17 + $0x64] ss:$16 sps:$4 sm:$0xff]  }
 0x3cd   : > { %v1106_v36 = vmul.f32 %v5719_v33, %v6975_v54  ;;  %v1041_v38 = vpop.xlane.xlu1 %1040  ;;  %v1043_v57 = vpop.xlane.xlu0 %1042 }
 0x3ce   : > { %5728 = vrsqrt.f32 %v1079_v35  ;;  %v1065_v42 = vmul.f32 0.0078125, %v1041_v38  ;;  %v1066_v0 = vmul.f32 0.0078125, %v1043_v57 }
 0x3cf   : > { %v1128_v43 = vmul.f32 %v7050_v34, %v1106_v36 }
 0x3d0   : > { %v5721_v46 = vpop.eup %5720  ;;  %v1081_v47 = vadd.f32 1e-05, %v1065_v42 }
 0x3d1   : > { %v5723_v51 = vpop.eup %5722  ;;  %v1107_v52 = vmul.f32 %v5721_v46, %v6981_v61  ;;  %v1045_v53 = vpop.xlane.xlu1 %1044  ;;  %v1150_v54 = vadd.f32 %v7054_v50, %v1128_v43 }
 0x3d2   : > { %v1108_v58 = vmul.f32 %v5723_v51, %v6979_v60  ;;  %5730 = vrsqrt.f32 %v1081_v47  ;;  %v1067_v62 = vmul.f32 0.0078125, %v1045_v53  ;;  %v1047_v16 = vpop.xlane.xlu0 %1046 }
 0x3d3   : > { %v1129_v56 = vmul.f32 %v7050_v34, %v1107_v52  ;;  %5732 = vrsqrt.f32 %v1080_v41  ;;  %v1166_v61 = vmax.f32 %v1150_v54, 0.0  ;;  %v1068_v26 = vmul.f32 0.0078125, %v1047_v16  ;;  %v5439_v52 = vld [vmem:[#allocation17 + $0x60] ss:$16 sps:$4 sm:$0xff]  }
 0x3d4   : > { %v5725_v59 = vpop.eup %5724  ;;  %v1130_v3 = vmul.f32 %v7050_v34, %v1108_v58  ;;  %v1083_v8 = vadd.f32 1e-05, %v1067_v62 }
 0x3d5   : > { %v1151_v63 = vadd.f32 %v7054_v50, %v1129_v56  ;;  %v1109_v48 = vmul.f32 %v5725_v59, %v6987_v4  ;;  %v5727_v1 = vpop.eup %5726  ;;  %v1049_v60 = vpop.xlane.xlu1 %1048  ;;  %v1082_v4 = vadd.f32 1e-05, %v1066_v0  ;;  %v1084_v42 = vadd.f32 1e-05, %v1068_v26  ;;  %v5451_v26 = vld [vmem:[#allocation17 + $0xe0] ss:$16 sps:$4 sm:$0xff]  }
 0x3d6   : > { %v1152_v17 = vadd.f32 %v7054_v50, %v1130_v3  ;;  %v1110_v18 = vmul.f32 %v5727_v1, %v6989_v5  ;;  %5734 = vrsqrt.f32 %v1083_v8  ;;  %v1069_v19 = vmul.f32 0.0078125, %v1049_v60  ;;  %v5436_v5 = vld [vmem:[#allocation17 + $0x40] ss:$16 sps:$4 sm:$0xff]   ;;  %v1051_v43 = vpop.xlane.xlu0 %1050 }
 0x3d7   : > { %v1167_v2 = vmax.f32 %v1151_v63, 0.0  ;;  %v1131_v6 = vmul.f32 %v7050_v34, %v1109_v48  ;;  %5736 = vrsqrt.f32 %v1082_v4  ;;  %v1070_v57 = vmul.f32 0.0078125, %v1051_v43 }
 0x3d8   : > { %v5729_v7 = vpop.eup %5728  ;;  %v1168_v27 = vmax.f32 %v1152_v17, 0.0  ;;  %v1132_v28 = vmul.f32 %v7050_v34, %v1110_v18  ;;  %v1085_v32 = vadd.f32 1e-05, %v1069_v19 }
 0x3d9   : > { %v1182_v10 = vpack.c.bf16 %v1167_v2, %v1166_v61  ;;  %v1153_v11 = vadd.f32 %v7054_v50, %v1131_v6  ;;  %v1111_v14 = vmul.f32 %v5729_v7, %v6996_v12  ;;  %v1053_v33 = vpop.xlane.xlu1 %1052  ;;  %v5447_v61 = vld [vmem:[#allocation17 + $0xa4] ss:$16 sps:$4 sm:$0xff]   ;;  %v1086_v2 = vadd.f32 1e-05, %v1070_v57 }
 0x3da   : > { %v1154_v46 = vadd.f32 %v7054_v50, %v1132_v28  ;;  %5738 = vrsqrt.f32 %v1085_v32  ;;  %v1071_v51 = vmul.f32 0.0078125, %v1053_v33  ;;  %v1055_v3 = vpop.xlane.xlu0 %1054 }
 0x3db   : > { %1331 = vmatmul.mubr.bf16.vlgmr.msra.gmra.mrb[16].mxu1 %v1182_v10  ;;  %v1169_v23 = vmax.f32 %v1153_v11, 0.0  ;;  %v1133_v24 = vmul.f32 %v7050_v34, %v1111_v14  ;;  %5740 = vrsqrt.f32 %v1084_v42  ;;  %v1072_v14 = vmul.f32 0.0078125, %v1055_v3 }
 0x3dc   : > { %1340 = vmatprep.mubr.bf16.mxu1 %v6335_v49  ;;  %1924 = vmatpush1.bf16.msra.mxu1 %v5430_v9  ;;  %v5731_v12 = vpop.eup %5730  ;;  %v1170_v54 = vmax.f32 %v1154_v46, 0.0  ;;  %v1087_v62 = vadd.f32 1e-05, %v1071_v51  ;;  %v5445_v9 = vld [vmem:[#allocation17 + $0xa0] ss:$16 sps:$4 sm:$0xff]  }
 0x3dd   : > { %1925 = vmatprep.subr.bf16.mxu1 %v5435_v15  ;;  %v5733_v29 = vpop.eup %5732  ;;  %v1183_v35 = vpack.c.bf16 %v1169_v23, %v1168_v27  ;;  %v1155_v36 = vadd.f32 %v7054_v50, %v1133_v24  ;;  %v1113_v38 = vmul.f32 %v5731_v12, %v7005_v20  ;;  %v5444_v20 = vld [vmem:[#allocation17 + $0x84] ss:$16 sps:$4 sm:$0xff]   ;;  %v1057_v63 = vpop.xlane.xlu1 %1056  ;;  %v1088_v24 = vadd.f32 1e-05, %v1072_v14  ;;  %v5457_v46 = vld [vmem:[#allocation17 + $0x120] ss:$16 sps:$4 sm:$0xff]  }
 0x3de   : > { %v1112_v47 = vmul.f32 %v5733_v29, %v6998_v13  ;;  %v5442_v13 = vld [vmem:[#allocation17 + $0x80] ss:$16 sps:$4 sm:$0xff]   ;;  %5742 = vrsqrt.f32 %v1087_v62  ;;  %v1073_v8 = vmul.f32 0.0078125, %v1057_v63  ;;  %v5453_v23 = vld [vmem:[#allocation17 + $0xe4] ss:$16 sps:$4 sm:$0xff]  }
 0x3df   : > { %v1171_v53 = vmax.f32 %v1155_v36, 0.0  ;;  %v1135_v41 = vmul.f32 %v7050_v34, %v1113_v38  ;;  %5744 = vrsqrt.f32 %v1086_v2  ;;  %v5456_v29 = vld [vmem:[#allocation17 + $0x104] ss:$16 sps:$4 sm:$0xff]   ;;  %v5480_v14 = vld [vmem:[#allocation17 + $0xc] ss:$16 sps:$4 sm:$0xff]  }
 0x3e0   : > { %1926 = vmatpush1.bf16.msra.mxu1 %v5433_v22  ;;  %v5735_v56 = vpop.eup %5734  ;;  %v1134_v58 = vmul.f32 %v7050_v34, %v1112_v47  ;;  %v1089_v17 = vadd.f32 1e-05, %v1073_v8 }
 0x3e1   : > { %1927 = vmatprep.subr.bf16.mxu1 %v5438_v25  ;;  %v5737_v59 = vpop.eup %5736  ;;  %v1184_v48 = vpack.c.bf16 %v1171_v53, %v1170_v54  ;;  %v1157_v0 = vadd.f32 %v7054_v50, %v1135_v41  ;;  %v1115_v1 = vmul.f32 %v5735_v56, %v7015_v30  ;;  %v5450_v30 = vld [vmem:[#allocation17 + $0xc4] ss:$16 sps:$4 sm:$0xff]   ;;  %v5460_v56 = vld [vmem:[#allocation17 + $0x140] ss:$16 sps:$4 sm:$0xff]  }
 0x3e2   : > { %v1156_v6 = vadd.f32 %v7054_v50, %v1134_v58  ;;  %v1114_v7 = vmul.f32 %v5737_v59, %v7008_v21  ;;  %v5448_v21 = vld [vmem:[#allocation17 + $0xc0] ss:$16 sps:$4 sm:$0xff]   ;;  %5746 = vrsqrt.f32 %v1089_v17  ;;  %v5465_v58 = vld [vmem:[#allocation17 + $0x164] ss:$16 sps:$4 sm:$0xff]  }
 0x3e3   : > { %1341 = vmatmul.mubr.bf16.gmra.mrb[20].mxu1 %v1183_v35  ;;  %v1173_v60 = vmax.f32 %v1157_v0, 0.0  ;;  %v1137_v10 = vmul.f32 %v7050_v34, %v1115_v1  ;;  %5748 = vrsqrt.f32 %v1088_v24  ;;  %v5454_v35 = vld [vmem:[#allocation17 + $0x100] ss:$16 sps:$4 sm:$0xff]   ;;  %v5468_v0 = vld [vmem:[#allocation17 + $0x184] ss:$16 sps:$4 sm:$0xff]  }
 0x3e4   : > { %1350 = vmatprep.mubr.bf16.mxu1 %v6335_v49  ;;  %1928 = vmatpush1.bf16.msra.mxu1 %v5436_v5  ;;  %v5739_v11 = vpop.eup %5738  ;;  %v1172_v15 = vmax.f32 %v1156_v6, 0.0  ;;  %v1136_v4 = vmul.f32 %v7050_v34, %v1114_v7  ;;  %v5471_v6 = vld [vmem:[#allocation17 + $0x1a4] ss:$16 sps:$4 sm:$0xff]   ;;  %v5469_v7 = vld [vmem:[#allocation17 + $0x1a0] ss:$16 sps:$4 sm:$0xff]  }
 0x3e5   : > { %1929 = vmatprep.subr.bf16.mxu1 %v5441_v39  ;;  %v5741_v16 = vpop.eup %5740  ;;  %v1159_v19 = vadd.f32 %v7054_v50, %v1137_v10  ;;  %v1117_v22 = vmul.f32 %v5739_v11, %v7025_v37  ;;  %v5459_v39 = vld [vmem:[#allocation17 + $0x124] ss:$16 sps:$4 sm:$0xff]   ;;  %v5475_v11 = vld [vmem:[#allocation17 + $0x1e0] ss:$16 sps:$4 sm:$0xff]  }
 0x3e6   : > { %v1185_v18 = vpack.c.bf16 %v1173_v60, %v1172_v15  ;;  %v1158_v25 = vadd.f32 %v7054_v50, %v1136_v4  ;;  %v1116_v12 = vmul.f32 %v5741_v16, %v7018_v31  ;;  %v5474_v10 = vld [vmem:[#allocation17 + $0x1c4] ss:$16 sps:$4 sm:$0xff]   ;;  %v5498_v4 = vld [vmem:[#allocation16 + $0x20] ss:$16 sps:$4 sm:$0xff]  }
 0x3e7   : > { %v1175_v27 = vmax.f32 %v1159_v19, 0.0  ;;  %v1139_v28 = vmul.f32 %v7050_v34, %v1117_v22  ;;  %v5496_v15 = vld [vmem:[#allocation16 + $0x24] ss:$16 sps:$4 sm:$0xff]   ;;  %v5504_v17 = vld [vmem:[#allocation16 + $0x40] ss:$16 sps:$4 sm:$0xff]  }
 0x3e8   : > { %1930 = vmatpush1.bf16.msra.mxu1 %v5439_v52  ;;  %v5743_v32 = vpop.eup %5742  ;;  %v1174_v37 = vmax.f32 %v1158_v25, 0.0  ;;  %v1138_v5 = vmul.f32 %v7050_v34, %v1116_v12  ;;  %v5462_v52 = vld [vmem:[#allocation17 + $0x144] ss:$16 sps:$4 sm:$0xff]   ;;  %v5516_v22 = vld [vmem:[#allocation16 + $0x80] ss:$16 sps:$4 sm:$0xff]  }
 0x3e9   : > { %1931 = vmatprep.subr.bf16.mxu1 %v5444_v20  ;;  %v5745_v33 = vpop.eup %5744  ;;  %v1161_v31 = vadd.f32 %v7054_v50, %v1139_v28  ;;  %v1119_v38 = vmul.f32 %v5743_v32, %v7035_v55  ;;  %v5502_v16 = vld [vmem:[#allocation16 + $0x44] ss:$16 sps:$4 sm:$0xff]   ;;  %v5522_v24 = vld [vmem:[#allocation16 + $0xa0] ss:$16 sps:$4 sm:$0xff]  }
 0x3ea   : > { %v1186_v36 = vpack.c.bf16 %v1175_v27, %v1174_v37  ;;  %v1160_v42 = vadd.f32 %v7054_v50, %v1138_v5  ;;  %v1118_v43 = vmul.f32 %v5745_v33, %v7028_v40  ;;  %v5514_v19 = vld [vmem:[#allocation16 + $0x84] ss:$16 sps:$4 sm:$0xff]   ;;  %v5528_v12 = vld [vmem:[#allocation16 + $0xc0] ss:$16 sps:$4 sm:$0xff]  }
 0x3eb   : > { %1351 = vmatmul.mubr.bf16.gmra.mrb[24].mxu1 %v1184_v48  ;;  %v1177_v47 = vmax.f32 %v1161_v31, 0.0  ;;  %v1141_v51 = vmul.f32 %v7050_v34, %v1119_v38  ;;  %v5526_v25 = vld [vmem:[#allocation16 + $0xc4] ss:$16 sps:$4 sm:$0xff]   ;;  %v5534_v27 = vld [vmem:[#allocation16 + $0xe0] ss:$16 sps:$4 sm:$0xff]  }
 0x3ec   : > { %1360 = vmatprep.mubr.bf16.mxu1 %v6335_v49  ;;  %1932 = vmatpush1.bf16.msra.mxu1 %v5442_v13  ;;  %v5747_v53 = vpop.eup %5746  ;;  %v1176_v41 = vmax.f32 %v1160_v42, 0.0  ;;  %v1140_v55 = vmul.f32 %v7050_v34, %v1118_v43  ;;  %v5463_v13 = vld [vmem:[#allocation17 + $0x160] ss:$16 sps:$4 sm:$0xff]   ;;  %v5538_v28 = vld [vmem:[#allocation16 + $0x104] ss:$16 sps:$4 sm:$0xff]  }
 0x3ed   : > { %1933 = vmatprep.subr.bf16.mxu1 %v5447_v61  ;;  %v5749_v20 = vpop.eup %5748  ;;  %v1163_v54 = vadd.f32 %v7054_v50, %v1141_v51  ;;  %v1121_v40 = vmul.f32 %v5747_v53, %v7045_v45  ;;  %v5466_v45 = vld [vmem:[#allocation17 + $0x180] ss:$16 sps:$4 sm:$0xff]   ;;  %v5544_v32 = vld [vmem:[#allocation16 + $0x124] ss:$16 sps:$4 sm:$0xff]  }
 0x3ee   : > { %v1187_v57 = vpack.c.bf16 %v1177_v47, %v1176_v41  ;;  %v1162_v59 = vadd.f32 %v7054_v50, %v1140_v55  ;;  %v1120_v62 = vmul.f32 %v5749_v20, %v7038_v44  ;;  %v5546_v37 = vld [vmem:[#allocation16 + $0x120] ss:$16 sps:$4 sm:$0xff]   ;;  %v5550_v5 = vld [vmem:[#allocation16 + $0x144] ss:$16 sps:$4 sm:$0xff]   ;;  %v1206_v55 = vld [vmem:[#allocation14] sm:$0x3] }
 0x3ef   : > { %v1179_v63 = vmax.f32 %v1163_v54, 0.0  ;;  %v1143_v48 = vmul.f32 %v7050_v34, %v1121_v40  ;;  %v5552_v33 = vld [vmem:[#allocation16 + $0x140] ss:$16 sps:$4 sm:$0xff]   ;;  %v5562_v31 = vld [vmem:[#allocation16 + $0x184] ss:$16 sps:$4 sm:$0xff]  }
 0x3f0   : > { %1934 = vmatpush1.bf16.msra.mxu1 %v5445_v9  ;;  %v1178_v1 = vmax.f32 %v1162_v59, 0.0  ;;  %v1142_v61 = vmul.f32 %v7050_v34, %v1120_v62  ;;  %v5472_v34 = vld [vmem:[#allocation17 + $0x1c0] ss:$16 sps:$4 sm:$0xff]   ;;  %v5571_v43 = vld [vmem:[#allocation16 + $0x1c4] ss:$16 sps:$4 sm:$0xff]  }
 0x3f1   : > { %1935 = vmatprep.subr.bf16.mxu1 %v5450_v30  ;;  %v1165_v3 = vadd.f32 %v7054_v50, %v1143_v48  ;;  %v5477_v30 = vld [vmem:[#allocation17 + $0x1e4] ss:$16 sps:$4 sm:$0xff]   ;;  %v5564_v38 = vld [vmem:[#allocation16 + $0x180] ss:$16 sps:$4 sm:$0xff]  }
 0x3f2   : > { %v1188_v2 = vpack.c.bf16 %v1179_v63, %v1178_v1  ;;  %v1164_v44 = vadd.f32 %v7054_v50, %v1142_v61  ;;  %v5490_v50 = vld [vmem:[#allocation16 + $0x4] ss:$16 sps:$4 sm:$0xff]   ;;  %v5570_v42 = vld [vmem:[#allocation16 + $0x1a0] ss:$16 sps:$4 sm:$0xff]  }
 0x3f3   : > { %1361 = vmatmul.mubr.bf16.gmra.mrb[28].mxu1 %v1185_v18  ;;  %v1181_v8 = vmax.f32 %v1165_v3, 0.0  ;;  %2606 = vmatprep.subr.bf16.mxu0 %v5490_v50  ;;  %v5510_v18 = vld [vmem:[#allocation16 + $0x60] ss:$16 sps:$4 sm:$0xff]   ;;  %v5577_v47 = vld [vmem:[#allocation16 + $0x1e4] ss:$16 sps:$4 sm:$0xff]  }
 0x3f4   : > { %1370 = vmatprep.mubr.bf16.mxu1 %v6335_v49  ;;  %1936 = vmatpush1.bf16.msra.mxu1 %v5448_v21  ;;  %v1180_v9 = vmax.f32 %v1164_v44, 0.0  ;;  %v5508_v21 = vld [vmem:[#allocation16 + $0x64] ss:$16 sps:$4 sm:$0xff]   ;;  %v5582_v51 = vld [vmem:[#allocation16 + $0x1e0] ss:$16 sps:$4 sm:$0xff]  }
 0x3f5   : > { %1937 = vmatprep.subr.bf16.mxu1 %v5453_v23  ;;  %v5520_v23 = vld [vmem:[#allocation16 + $0xa4] ss:$16 sps:$4 sm:$0xff]  }
 0x3f6   : > { %v1189_v60 = vpack.c.bf16 %v1181_v8, %v1180_v9 }
 0x3f8   : > { %1938 = vmatpush1.bf16.msra.mxu1 %v5451_v26  ;;  %v5532_v26 = vld [vmem:[#allocation16 + $0xe4] ss:$16 sps:$4 sm:$0xff]  }
 0x3f9   : > { %1939 = vmatprep.subr.bf16.mxu1 %v5456_v29  ;;  %v5540_v29 = vld [vmem:[#allocation16 + $0x100] ss:$16 sps:$4 sm:$0xff]  }
 0x3fb   : > { %1371 = vmatmul.mubr.bf16.gmra.mrb[32].mxu1 %v1186_v36  ;;  %v5558_v36 = vld [vmem:[#allocation16 + $0x160] ss:$16 sps:$4 sm:$0xff]  }
 0x3fc   : > { %1380 = vmatprep.mubr.bf16.mxu1 %v6335_v49  ;;  %1940 = vmatpush1.bf16.msra.mxu1 %v5454_v35  ;;  %v5556_v35 = vld [vmem:[#allocation16 + $0x164] ss:$16 sps:$4 sm:$0xff]  }
 0x3fd   : > { %1941 = vmatprep.subr.bf16.mxu1 %v5459_v39  ;;  %v5565_v39 = vld [vmem:[#allocation16 + $0x1a4] ss:$16 sps:$4 sm:$0xff]  }
 0x400   : > { %1942 = vmatpush1.bf16.msra.mxu1 %v5457_v46  ;;  %v5576_v46 = vld [vmem:[#allocation16 + $0x1c0] ss:$16 sps:$4 sm:$0xff]  }
 0x401   : > { %1943 = vmatprep.subr.bf16.mxu1 %v5462_v52  ;;  %v1208_v52 = vlaneseq }
 0x403   : > { %1381 = vmatmul.mubr.bf16.gmra.mrb[36].mxu1 %v1187_v57  ;;  %v7109_v53 = vshrl.u32 %v1208_v52, 7 }
 0x404   : > { %1390 = vmatprep.mubr.bf16.mxu1 %v6335_v49  ;;  %1944 = vmatpush1.bf16.msra.mxu1 %v5460_v56 }
 0x405   : > { %1945 = vmatprep.subr.bf16.mxu1 %v5465_v58  ;;  %v7112_v41 = vsub.s32 0, %v7109_v53  ;;  %v7115_v20 = vsub.s32 1, %v7109_v53 }
 0x407   : > { %8674 = vst [vmem:[#allocation41_spill] sm:$0xff] %v7112_v41  ;;  %8675 = vst [vmem:[#allocation42_spill] sm:$0xff] %v7115_v20  ;;  %v7118_v56 = vrot.slane %v1206_v55, %v7112_v41  ;;  %v7121_v54 = vrot.slane %v1206_v55, %v7115_v20 }
 0x408   : > { %1946 = vmatpush1.bf16.msra.mxu1 %v5463_v13 }
 0x409   : > { %1947 = vmatprep.subr.bf16.mxu1 %v5468_v0 }
 0x40b   : > { %1391 = vmatmul.mubr.bf16.gmra.mrb[40].mxu1 %v1188_v2  ;;  %v5478_v2 = vld [vmem:[#allocation17 + $0x8] ss:$16 sps:$4 sm:$0xff]  }
 0x40c   : > { %1400 = vmatprep.mubr.bf16.mxu1 %v6335_v49  ;;  %1948 = vmatpush1.bf16.msra.mxu1 %v5466_v45  ;;  %v5492_v49 = vld [vmem:[#allocation16] ss:$16 sps:$4 sm:$0xff]  }
 0x40d   : > { %1949 = vmatprep.subr.bf16.mxu1 %v5471_v6  ;;  %2607 = vmatpush1.bf16.msra.mxu0 %v5492_v49  ;;  %v5483_v6 = vld [vmem:[#allocation17 + $0x2c] ss:$16 sps:$4 sm:$0xff]  }
 0x40e   : > { %2608 = vmatprep.subr.bf16.mxu0 %v5496_v15  ;;  %v5486_v49 = vld [vmem:[#allocation17 + $0x4c] ss:$16 sps:$4 sm:$0xff]  }
 0x410   : > { %1950 = vmatpush1.bf16.msra.mxu1 %v5469_v7 }
 0x411   : > { %1951 = vmatprep.subr.bf16.mxu1 %v5474_v10  ;;  %2609 = vmatpush1.bf16.msra.mxu0 %v5498_v4  ;;  %v5481_v10 = vld [vmem:[#allocation17 + $0x28] ss:$16 sps:$4 sm:$0xff]  }
 0x412   : > { %2610 = vmatprep.subr.bf16.mxu0 %v5502_v16 }
 0x413   : > { %1401 = vmatmul.mubr.bf16.gmra.mrb[44].mxu1 %v1189_v60 }
 0x414   : > { %1952 = vmatpush1.bf16.msra.mxu1 %v5472_v34 }
 0x415   : > { %1953 = vmatprep.subr.bf16.mxu1 %v5477_v30  ;;  %2611 = vmatpush1.bf16.msra.mxu0 %v5504_v17 }
 0x416   : > { %2612 = vmatprep.subr.bf16.mxu0 %v5508_v21 }
 0x418   : > { %1954 = vmatpush1.bf16.msra.mxu1 %v5475_v11 }
 0x419   : > { %2036 = vmatprep.subr.bf16.mxu1 %v5480_v14  ;;  %2613 = vmatpush1.bf16.msra.mxu0 %v5510_v18 }
 0x41a   : > { %2614 = vmatprep.subr.bf16.mxu0 %v5514_v19 }
 0x41d   : > { %2615 = vmatpush1.bf16.msra.mxu0 %v5516_v22 }
 0x41e   : > { %2616 = vmatprep.subr.bf16.mxu0 %v5520_v23 }
 0x421   : > { %2617 = vmatpush1.bf16.msra.mxu0 %v5522_v24  ;;  %v5484_v24 = vld [vmem:[#allocation17 + $0x48] ss:$16 sps:$4 sm:$0xff]  }
 0x422   : > { %2618 = vmatprep.subr.bf16.mxu0 %v5526_v25 }
 0x425   : > { %2619 = vmatpush1.bf16.msra.mxu0 %v5528_v12 }
 0x426   : > { %2620 = vmatprep.subr.bf16.mxu0 %v5532_v26  ;;  %v5489_v26 = vld [vmem:[#allocation17 + $0x6c] ss:$16 sps:$4 sm:$0xff]  }
 0x429   : > { %2621 = vmatpush1.bf16.msra.mxu0 %v5534_v27 }
 0x42a   : > { %2622 = vmatprep.subr.bf16.mxu0 %v5538_v28 }
 0x42d   : > { %2623 = vmatpush1.bf16.msra.mxu0 %v5540_v29 }
 0x42e   : > { %2624 = vmatprep.subr.bf16.mxu0 %v5544_v32 }
 0x431   : > { %2625 = vmatpush1.bf16.msra.mxu0 %v5546_v37 }
 0x432   : > { %2626 = vmatprep.subr.bf16.mxu0 %v5550_v5 }
 0x435   : > { %2627 = vmatpush1.bf16.msra.mxu0 %v5552_v33 }
 0x436   : > { %2628 = vmatprep.subr.bf16.mxu0 %v5556_v35 }
 0x439   : > { %2629 = vmatpush1.bf16.msra.mxu0 %v5558_v36 }
 0x43a   : > { %2630 = vmatprep.subr.bf16.mxu0 %v5562_v31  ;;  %v5487_v31 = vld [vmem:[#allocation17 + $0x68] ss:$16 sps:$4 sm:$0xff]  }
 0x43d   : > { %2631 = vmatpush1.bf16.msra.mxu0 %v5564_v38 }
 0x43e   : > { %2632 = vmatprep.subr.bf16.mxu0 %v5565_v39 }
 0x441   : > { %2633 = vmatpush1.bf16.msra.mxu0 %v5570_v42 }
 0x442   : > { %2634 = vmatprep.subr.bf16.mxu0 %v5571_v43 }
 0x445   : > { %2635 = vmatpush1.bf16.msra.mxu0 %v5576_v46  ;;  %v5495_v46 = vld [vmem:[#allocation17 + $0x8c] ss:$16 sps:$4 sm:$0xff]  }
 0x446   : > { %2636 = vmatprep.subr.bf16.mxu0 %v5577_v47 }
 0x449   : > { %2637 = vmatpush1.bf16.msra.mxu0 %v5582_v51 }
 0x4ae   : > { %v1332_v57 = vpop.f32.mrb[16].mxu1 }
 0x4af   : > { %v1334_v40 = vpop.f32.mrb[17].mxu1  ;;  %v1333_v59 = vadd.f32 %v1332_v57, %v7118_v56 }
 0x4b0   : > { %v1336_v58 = vpop.f32.mrb[18].mxu1  ;;  %v1335_v63 = vadd.f32 %v1334_v40, %v7121_v54 }
 0x4b1   : > { %v1337_v62 = vadd.f32 %v1336_v58, %v7118_v56  ;;  %v1338_v13 = vpop.f32.mrb[19].mxu1 }
 0x4b2   : > { %v1339_v48 = vadd.f32 %v1338_v13, %v7121_v54 }
 0x4b3   : > { %v1411_v0 = vmax.f32 %v1333_v59, %v1337_v62  ;;  %v7127_v1 = vpack.c.bf16 %v1337_v62, %v1333_v59 }
 0x4b4   : > { %v1418_v61 = vmax.f32 %v1335_v63, %v1339_v48  ;;  %v7129_v45 = vpack.c.bf16 %v1339_v48, %v1335_v63  ;;  %v5493_v48 = vld [vmem:[#allocation17 + $0x88] ss:$16 sps:$4 sm:$0xff]  }
 0x4b5   : > { %v1412_v3 = vrot.slane %v1411_v0, 4 }
 0x4b6   : > { %v1419_v44 = vrot.slane %v1418_v61, 4  ;;  %v1342_v7 = vpop.f32.mrb[20].mxu1  ;;  %1955 = vmatprep.mubr.bf16.mxu1 %v7129_v45 }
 0x4b7   : > { %v1413_v8 = vmax.f32 %v1411_v0, %v1412_v3  ;;  %v1344_v9 = vpop.f32.mrb[21].mxu1  ;;  %1956 = vmatmul.mubr.bf16.vlgmr.msra.gmra.mrb[48].mxu1 %v7127_v1  ;;  %v1343_v11 = vadd.f32 %v1342_v7, %v7118_v56 }
 0x4b8   : > { %v1420_v60 = vmax.f32 %v1418_v61, %v1419_v44  ;;  %2037 = vmatpush1.bf16.msra.mxu1 %v5478_v2  ;;  %v1346_v34 = vpop.f32.mrb[22].mxu1  ;;  %v1345_v4 = vadd.f32 %v1344_v9, %v7121_v54  ;;  %v5501_v2 = vld [vmem:[#allocation17 + $0xac] ss:$16 sps:$4 sm:$0xff]  }
 0x4b9   : > { %v1414_v30 = vrot.slane %v1413_v8, 2  ;;  %v1347_v14 = vadd.f32 %v1346_v34, %v7118_v56  ;;  %v1348_v50 = vpop.f32.mrb[23].mxu1  ;;  %2038 = vmatprep.subr.bf16.mxu1 %v5483_v6 }
 0x4ba   : > { %v1421_v15 = vrot.slane %v1420_v60, 2  ;;  %v1349_v16 = vadd.f32 %v1348_v50, %v7121_v54 }
 0x4bb   : > { %v1415_v17 = vmax.f32 %v1413_v8, %v1414_v30  ;;  %v1425_v21 = vmax.f32 %v1343_v11, %v1347_v14  ;;  %v7137_v18 = vpack.c.bf16 %v1347_v14, %v1343_v11  ;;  %v5499_v14 = vld [vmem:[#allocation17 + $0xa8] ss:$16 sps:$4 sm:$0xff]  }
 0x4bc   : > { %v1422_v19 = vmax.f32 %v1420_v60, %v1421_v15  ;;  %v1432_v22 = vmax.f32 %v1345_v4, %v1349_v16  ;;  %v7139_v23 = vpack.c.bf16 %v1349_v16, %v1345_v4  ;;  %2039 = vmatpush1.bf16.msra.mxu1 %v5481_v10 }
 0x4bd   : > { %v1416_v25 = vrot.slane %v1415_v17, 1  ;;  %v1426_v12 = vrot.slane %v1425_v21, 4  ;;  %2040 = vmatprep.subr.bf16.mxu1 %v5486_v49 }
 0x4be   : > { %v1423_v27 = vrot.slane %v1422_v19, 1  ;;  %v1433_v28 = vrot.slane %v1432_v22, 4  ;;  %v1352_v29 = vpop.f32.mrb[24].mxu1  ;;  %1965 = vmatprep.mubr.bf16.mxu1 %v7139_v23 }
 0x4bf   : > { %v1417_v32 = vmax.f32 %v1415_v17, %v1416_v25  ;;  %v1427_v37 = vmax.f32 %v1425_v21, %v1426_v12  ;;  %v1354_v5 = vpop.f32.mrb[25].mxu1  ;;  %1966 = vmatmul.mubr.bf16.gmra.mrb[52].mxu1 %v7137_v18  ;;  %v1353_v39 = vadd.f32 %v1352_v29, %v7118_v56  ;;  %v5507_v17 = vld [vmem:[#allocation17 + $0xcc] ss:$16 sps:$4 sm:$0xff]  }
 0x4c0   : > { %v1424_v33 = vmax.f32 %v1422_v19, %v1423_v27  ;;  %v1434_v35 = vmax.f32 %v1432_v22, %v1433_v28  ;;  %2041 = vmatpush1.bf16.msra.mxu1 %v5484_v24  ;;  %v1356_v36 = vpop.f32.mrb[26].mxu1  ;;  %v1355_v51 = vadd.f32 %v1354_v5, %v7121_v54  ;;  %v5505_v5 = vld [vmem:[#allocation17 + $0xc8] ss:$16 sps:$4 sm:$0xff]  }
 0x4c1   : > { %v1428_v38 = vrot.slane %v1427_v37, 2  ;;  %v1357_v42 = vadd.f32 %v1356_v36, %v7118_v56  ;;  %v1358_v43 = vpop.f32.mrb[27].mxu1  ;;  %2042 = vmatprep.subr.bf16.mxu1 %v5489_v26  ;;  %v2149_v55 = vpack.c.bf16 %v1417_v32, %v1417_v32 }
 0x4c2   : > { %v1435_v47 = vrot.slane %v1434_v35, 2  ;;  %v1359_v52 = vadd.f32 %v1358_v43, %v7121_v54  ;;  %v2150_v59 = vpack.c.bf16 %v1424_v33, %v1424_v33 }
 0x4c3   : > { %v1429_v57 = vmax.f32 %v1427_v37, %v1428_v38  ;;  %v1439_v40 = vmax.f32 %v1353_v39, %v1357_v42  ;;  %v7147_v58 = vpack.c.bf16 %v1357_v42, %v1353_v39  ;;  %v2245_v60 = vunpack.c.l.b16 %v2149_v55 }
 0x4c4   : > { %v1436_v62 = vmax.f32 %v1434_v35, %v1435_v47  ;;  %v1446_v13 = vmax.f32 %v1355_v51, %v1359_v52  ;;  %v7149_v63 = vpack.c.bf16 %v1359_v52, %v1355_v51  ;;  %2043 = vmatpush1.bf16.msra.mxu1 %v5487_v31  ;;  %v2246_v34 = vunpack.c.l.b16 %v2150_v59  ;;  %v5513_v31 = vld [vmem:[#allocation17 + $0xec] ss:$16 sps:$4 sm:$0xff]  }
 0x4c5   : > { %v1430_v0 = vrot.slane %v1429_v57, 1  ;;  %v1440_v61 = vrot.slane %v1439_v40, 4  ;;  %2044 = vmatprep.subr.bf16.mxu1 %v5495_v46 }
 0x4c6   : > { %v1437_v3 = vrot.slane %v1436_v62, 1  ;;  %v1447_v6 = vrot.slane %v1446_v13, 4  ;;  %v1362_v44 = vpop.f32.mrb[28].mxu1  ;;  %1975 = vmatprep.mubr.bf16.mxu1 %v7149_v63 }
 0x4c7   : > { %v1431_v7 = vmax.f32 %v1429_v57, %v1430_v0  ;;  %v1441_v8 = vmax.f32 %v1439_v40, %v1440_v61  ;;  %v1364_v9 = vpop.f32.mrb[29].mxu1  ;;  %1976 = vmatmul.mubr.bf16.gmra.mrb[56].mxu1 %v7147_v58  ;;  %v1363_v15 = vadd.f32 %v1362_v44, %v7118_v56  ;;  %v5511_v40 = vld [vmem:[#allocation17 + $0xe8] ss:$16 sps:$4 sm:$0xff]   ;;  %v5519_v61 = vld [vmem:[#allocation17 + $0x10c] ss:$16 sps:$4 sm:$0xff]  }
 0x4c8   : > { %v1438_v10 = vmax.f32 %v1436_v62, %v1437_v3  ;;  %v1448_v30 = vmax.f32 %v1446_v13, %v1447_v6  ;;  %2045 = vmatpush1.bf16.msra.mxu1 %v5493_v48  ;;  %v1366_v11 = vpop.f32.mrb[30].mxu1  ;;  %v1365_v22 = vadd.f32 %v1364_v9, %v7121_v54 }
 0x4c9   : > { %v2151_v50 = vpack.c.bf16 %v1431_v7, %v1431_v7  ;;  %v1442_v49 = vrot.slane %v1441_v8, 2  ;;  %v1367_v4 = vadd.f32 %v1366_v11, %v7118_v56  ;;  %v1368_v16 = vpop.f32.mrb[31].mxu1  ;;  %2046 = vmatprep.subr.bf16.mxu1 %v5501_v2 }
 0x4ca   : > { %v2152_v21 = vpack.c.bf16 %v1438_v10, %v1438_v10  ;;  %v1449_v19 = vrot.slane %v1448_v30, 2  ;;  %v1369_v24 = vadd.f32 %v1368_v16, %v7121_v54 }
 0x4cb   : > { %v2247_v25 = vunpack.c.l.b16 %v2151_v50  ;;  %v1443_v12 = vmax.f32 %v1441_v8, %v1442_v49  ;;  %v1453_v26 = vmax.f32 %v1363_v15, %v1367_v4  ;;  %v7157_v27 = vpack.c.bf16 %v1367_v4, %v1363_v15  ;;  %v5525_v4 = vld [vmem:[#allocation17 + $0x12c] ss:$16 sps:$4 sm:$0xff]  }
 0x4cc   : > { %v2248_v28 = vunpack.c.l.b16 %v2152_v21  ;;  %v1450_v29 = vmax.f32 %v1448_v30, %v1449_v19  ;;  %v1460_v32 = vmax.f32 %v1365_v22, %v1369_v24  ;;  %v7159_v37 = vpack.c.bf16 %v1369_v24, %v1365_v22  ;;  %2047 = vmatpush1.bf16.msra.mxu1 %v5499_v14  ;;  %v5517_v14 = vld [vmem:[#allocation17 + $0x108] ss:$16 sps:$4 sm:$0xff]  }
 0x4cd   : > { %v2262_v33 = vsel %vm2261_vm1, %v2247_v25, %v2245_v60  ;;  %v1444_v35 = vrot.slane %v1443_v12, 1  ;;  %v1454_v36 = vrot.slane %v1453_v26, 4  ;;  %2048 = vmatprep.subr.bf16.mxu1 %v5507_v17 }
 0x4ce   : > { %v2275_v38 = vsel %vm2261_vm1, %v2248_v28, %v2246_v34  ;;  %v1451_v39 = vrot.slane %v1450_v29, 1  ;;  %v1461_v42 = vrot.slane %v1460_v32, 4  ;;  %v1372_v43 = vpop.f32.mrb[32].mxu1  ;;  %1985 = vmatprep.mubr.bf16.mxu1 %v7159_v37 }
 0x4cf   : > { %v1445_v46 = vmax.f32 %v1443_v12, %v1444_v35  ;;  %v1455_v47 = vmax.f32 %v1453_v26, %v1454_v36  ;;  %v1374_v51 = vpop.f32.mrb[33].mxu1  ;;  %1986 = vmatmul.mubr.bf16.gmra.mrb[60].mxu1 %v7157_v27  ;;  %v1373_v13 = vadd.f32 %v1372_v43, %v7118_v56 }
 0x4d0   : > { %v1452_v52 = vmax.f32 %v1450_v29, %v1451_v39  ;;  %v1462_v55 = vmax.f32 %v1460_v32, %v1461_v42  ;;  %2049 = vmatpush1.bf16.msra.mxu1 %v5505_v5  ;;  %v1376_v57 = vpop.f32.mrb[34].mxu1  ;;  %v1375_v6 = vadd.f32 %v1374_v51, %v7121_v54  ;;  %v5523_v29 = vld [vmem:[#allocation17 + $0x128] ss:$16 sps:$4 sm:$0xff]  }
 0x4d1   : > { %v2153_v59 = vpack.c.bf16 %v1445_v46, %v1445_v46  ;;  %v1456_v62 = vrot.slane %v1455_v47, 2  ;;  %v1377_v48 = vadd.f32 %v1376_v57, %v7118_v56  ;;  %v1378_v0 = vpop.f32.mrb[35].mxu1  ;;  %2050 = vmatprep.subr.bf16.mxu1 %v5513_v31  ;;  %v5531_v31 = vld [vmem:[#allocation17 + $0x14c] ss:$16 sps:$4 sm:$0xff]  }
 0x4d2   : > { %v2154_v2 = vpack.c.bf16 %v1452_v52, %v1452_v52  ;;  %v1463_v3 = vrot.slane %v1462_v55, 2  ;;  %v1379_v44 = vadd.f32 %v1378_v0, %v7121_v54  ;;  %v5537_v0 = vld [vmem:[#allocation17 + $0x16c] ss:$16 sps:$4 sm:$0xff]  }
 0x4d3   : > { %v2249_v7 = vunpack.c.l.b16 %v2153_v59  ;;  %v1457_v8 = vmax.f32 %v1455_v47, %v1456_v62  ;;  %v1467_v9 = vmax.f32 %v1373_v13, %v1377_v48  ;;  %v7169_v60 = vpack.c.bf16 %v1377_v48, %v1373_v13  ;;  %v5529_v62 = vld [vmem:[#allocation17 + $0x148] ss:$16 sps:$4 sm:$0xff]  }
 0x4d4   : > { %v2250_v34 = vunpack.c.l.b16 %v2154_v2  ;;  %v1464_v10 = vmax.f32 %v1462_v55, %v1463_v3  ;;  %v1474_v30 = vmax.f32 %v1375_v6, %v1379_v44  ;;  %v7171_v11 = vpack.c.bf16 %v1379_v44, %v1375_v6  ;;  %2051 = vmatpush1.bf16.msra.mxu1 %v5511_v40 }
 0x4d5   : > { %v2264_v50 = vsel %vm2263_vm2, %v2249_v7, %v2262_v33  ;;  %v1458_v49 = vrot.slane %v1457_v8, 1  ;;  %v1468_v15 = vrot.slane %v1467_v9, 4  ;;  %2052 = vmatprep.subr.bf16.mxu1 %v5519_v61 }
 0x4d6   : > { %v1465_v16 = vrot.slane %v1464_v10, 1  ;;  %v1475_v17 = vrot.slane %v1474_v30, 4  ;;  %v1382_v21 = vpop.f32.mrb[36].mxu1  ;;  %1995 = vmatprep.mubr.bf16.mxu1 %v7171_v11  ;;  %v2276_v19 = vsel %vm2263_vm2, %v2250_v34, %v2275_v38 }
 0x4d7   : > { %v1459_v22 = vmax.f32 %v1457_v8, %v1458_v49  ;;  %v1469_v24 = vmax.f32 %v1467_v9, %v1468_v15  ;;  %v1384_v25 = vpop.f32.mrb[37].mxu1  ;;  %1996 = vmatmul.mubr.bf16.gmra.mrb[64].mxu1 %v7169_v60  ;;  %v1383_v33 = vadd.f32 %v1382_v21, %v7118_v56 }
 0x4d8   : > { %v1466_v12 = vmax.f32 %v1464_v10, %v1465_v16  ;;  %v1476_v26 = vmax.f32 %v1474_v30, %v1475_v17  ;;  %2053 = vmatpush1.bf16.msra.mxu1 %v5517_v14  ;;  %v1386_v28 = vpop.f32.mrb[38].mxu1  ;;  %v1385_v42 = vadd.f32 %v1384_v25, %v7121_v54  ;;  %v5535_v14 = vld [vmem:[#allocation17 + $0x168] ss:$16 sps:$4 sm:$0xff]   ;;  %v5543_v17 = vld [vmem:[#allocation17 + $0x18c] ss:$16 sps:$4 sm:$0xff]  }
 0x4d9   : > { %v2155_v32 = vpack.c.bf16 %v1459_v22, %v1459_v22  ;;  %v1470_v5 = vrot.slane %v1469_v24, 2  ;;  %v1387_v35 = vadd.f32 %v1386_v28, %v7118_v56  ;;  %v1388_v36 = vpop.f32.mrb[39].mxu1  ;;  %2054 = vmatprep.subr.bf16.mxu1 %v5525_v4 }
 0x4da   : > { %v2156_v38 = vpack.c.bf16 %v1466_v12, %v1466_v12  ;;  %v1477_v39 = vrot.slane %v1476_v26, 2  ;;  %v1389_v43 = vadd.f32 %v1388_v36, %v7121_v54 }
 0x4db   : > { %v2251_v46 = vunpack.c.l.b16 %v2155_v32  ;;  %v1471_v47 = vmax.f32 %v1469_v24, %v1470_v5  ;;  %v1481_v51 = vmax.f32 %v1383_v33, %v1387_v35  ;;  %v7181_v52 = vpack.c.bf16 %v1387_v35, %v1383_v33  ;;  %v5541_v35 = vld [vmem:[#allocation17 + $0x188] ss:$16 sps:$4 sm:$0xff]  }
 0x4dc   : > { %v2252_v55 = vunpack.c.l.b16 %v2156_v38  ;;  %v1478_v57 = vmax.f32 %v1476_v26, %v1477_v39  ;;  %v1488_v40 = vmax.f32 %v1385_v42, %v1389_v43  ;;  %v7183_v59 = vpack.c.bf16 %v1389_v43, %v1385_v42  ;;  %2055 = vmatpush1.bf16.msra.mxu1 %v5523_v29  ;;  %v5549_v38 = vld [vmem:[#allocation17 + $0x1ac] ss:$16 sps:$4 sm:$0xff]  }
 0x4dd   : > { %v1472_v13 = vrot.slane %v1471_v47, 1  ;;  %v1482_v48 = vrot.slane %v1481_v51, 4  ;;  %2056 = vmatprep.subr.bf16.mxu1 %v5531_v31  ;;  %v2266_v61 = vsel %vm2265_vm3, %v2251_v46, %v2264_v50 }
 0x4de   : > { %v1479_v2 = vrot.slane %v1478_v57, 1  ;;  %v1489_v3 = vrot.slane %v1488_v40, 4  ;;  %v1392_v6 = vpop.f32.mrb[40].mxu1  ;;  %2005 = vmatprep.mubr.bf16.mxu1 %v7183_v59  ;;  %v2277_v44 = vsel %vm2265_vm3, %v2252_v55, %v2276_v19 }
 0x4df   : > { %v1473_v7 = vmax.f32 %v1471_v47, %v1472_v13  ;;  %v1483_v8 = vmax.f32 %v1481_v51, %v1482_v48  ;;  %v1394_v9 = vpop.f32.mrb[41].mxu1  ;;  %2006 = vmatmul.mubr.bf16.gmra.mrb[68].mxu1 %v7181_v52  ;;  %v1393_v15 = vadd.f32 %v1392_v6, %v7118_v56  ;;  %v5547_v48 = vld [vmem:[#allocation17 + $0x1a8] ss:$16 sps:$4 sm:$0xff]  }
 0x4e0   : > { %v1480_v34 = vmax.f32 %v1478_v57, %v1479_v2  ;;  %v1490_v10 = vmax.f32 %v1488_v40, %v1489_v3  ;;  %2057 = vmatpush1.bf16.msra.mxu1 %v5529_v62  ;;  %v1396_v30 = vpop.f32.mrb[42].mxu1  ;;  %v1395_v22 = vadd.f32 %v1394_v9, %v7121_v54 }
 0x4e1   : > { %v2157_v49 = vpack.c.bf16 %v1473_v7, %v1473_v7  ;;  %v1484_v50 = vrot.slane %v1483_v8, 2  ;;  %v1397_v4 = vadd.f32 %v1396_v30, %v7118_v56  ;;  %v1398_v16 = vpop.f32.mrb[43].mxu1  ;;  %2058 = vmatprep.subr.bf16.mxu1 %v5537_v0 }
 0x4e2   : > { %v2158_v21 = vpack.c.bf16 %v1480_v34, %v1480_v34  ;;  %v1491_v19 = vrot.slane %v1490_v10, 2  ;;  %v1399_v24 = vadd.f32 %v1398_v16, %v7121_v54 }
 0x4e3   : > { %v2253_v25 = vunpack.c.l.b16 %v2157_v49  ;;  %v1485_v12 = vmax.f32 %v1483_v8, %v1484_v50  ;;  %v1495_v26 = vmax.f32 %v1393_v15, %v1397_v4  ;;  %v7193_v28 = vpack.c.bf16 %v1397_v4, %v1393_v15 }
 0x4e4   : > { %v2254_v29 = vunpack.c.l.b16 %v2158_v21  ;;  %v1492_v32 = vmax.f32 %v1490_v10, %v1491_v19  ;;  %v1502_v5 = vmax.f32 %v1395_v22, %v1399_v24  ;;  %v7195_v33 = vpack.c.bf16 %v1399_v24, %v1395_v22  ;;  %2059 = vmatpush1.bf16.msra.mxu1 %v5535_v14  ;;  %v5561_v19 = vld [vmem:[#allocation17 + $0x1ec] ss:$16 sps:$4 sm:$0xff]  }
 0x4e5   : > { %v1486_v36 = vrot.slane %v1485_v12, 1  ;;  %v1496_v31 = vrot.slane %v1495_v26, 4  ;;  %2060 = vmatprep.subr.bf16.mxu1 %v5543_v17  ;;  %v2268_v39 = vsel %vm2267_vm4, %v2253_v25, %v2266_v61 }
 0x4e6   : > { %v1493_v42 = vrot.slane %v1492_v32, 1  ;;  %v1503_v43 = vrot.slane %v1502_v5, 4  ;;  %v1402_v46 = vpop.f32.mrb[44].mxu1  ;;  %2015 = vmatprep.mubr.bf16.mxu1 %v7195_v33  ;;  %v2278_v47 = vsel %vm2267_vm4, %v2254_v29, %v2277_v44  ;;  %v5555_v44 = vld [vmem:[#allocation17 + $0x1cc] ss:$16 sps:$4 sm:$0xff]  }
 0x4e7   : > { %v1487_v51 = vmax.f32 %v1485_v12, %v1486_v36  ;;  %v1497_v55 = vmax.f32 %v1495_v26, %v1496_v31  ;;  %v1404_v57 = vpop.f32.mrb[45].mxu1  ;;  %2016 = vmatmul.mubr.bf16.gmra.mrb[72].mxu1 %v7193_v28  ;;  %v1403_v2 = vadd.f32 %v1402_v46, %v7118_v56  ;;  %v5569_v31 = vld [vmem:[#allocation16 + $0xc] ss:$16 sps:$4 sm:$0xff]  }
 0x4e8   : > { %v1494_v40 = vmax.f32 %v1492_v32, %v1493_v42  ;;  %v1504_v62 = vmax.f32 %v1502_v5, %v1503_v43  ;;  %2061 = vmatpush1.bf16.msra.mxu1 %v5541_v35  ;;  %v1406_v13 = vpop.f32.mrb[46].mxu1  ;;  %v1405_v9 = vadd.f32 %v1404_v57, %v7121_v54  ;;  %v5559_v5 = vld [vmem:[#allocation17 + $0x1e8] ss:$16 sps:$4 sm:$0xff]   ;;  %v5575_v57 = vld [vmem:[#allocation16 + $0x2c] ss:$16 sps:$4 sm:$0xff]  }
 0x4e9   : > { %v2159_v0 = vpack.c.bf16 %v1487_v51, %v1487_v51  ;;  %v1498_v61 = vrot.slane %v1497_v55, 2  ;;  %v1407_v3 = vadd.f32 %v1406_v13, %v7118_v56  ;;  %v1408_v6 = vpop.f32.mrb[47].mxu1  ;;  %2062 = vmatprep.subr.bf16.mxu1 %v5549_v38  ;;  %v5553_v56 = vld [vmem:[#allocation17 + $0x1c8] ss:$16 sps:$4 sm:$0xff]  }
 0x4ea   : > { %v2160_v7 = vpack.c.bf16 %v1494_v40, %v1494_v40  ;;  %v1505_v8 = vrot.slane %v1504_v62, 2  ;;  %v1409_v34 = vadd.f32 %v1408_v6, %v7121_v54 }
 0x4eb   : > { %v2255_v10 = vunpack.c.l.b16 %v2159_v0  ;;  %v1499_v30 = vmax.f32 %v1497_v55, %v1498_v61  ;;  %v1509_v14 = vmax.f32 %v1403_v2, %v1407_v3  ;;  %v7205_v49 = vpack.c.bf16 %v1407_v3, %v1403_v2  ;;  %v5581_v2 = vld [vmem:[#allocation16 + $0x4c] ss:$16 sps:$4 sm:$0xff]  }
 0x4ec   : > { %v2256_v50 = vunpack.c.l.b16 %v2160_v7  ;;  %v1506_v15 = vmax.f32 %v1504_v62, %v1505_v8  ;;  %v1516_v4 = vmax.f32 %v1405_v9, %v1409_v34  ;;  %v7207_v16 = vpack.c.bf16 %v1409_v34, %v1405_v9  ;;  %2063 = vmatpush1.bf16.msra.mxu1 %v5547_v48  ;;  %v5573_v48 = vld [vmem:[#allocation16 + $0x28] ss:$16 sps:$4 sm:$0xff]   ;;  %v5585_v9 = vld [vmem:[#allocation16 + $0x6c] ss:$16 sps:$4 sm:$0xff]  }
 0x4ed   : > { %v1500_v17 = vrot.slane %v1499_v30, 1  ;;  %v1510_v21 = vrot.slane %v1509_v14, 4  ;;  %2064 = vmatprep.subr.bf16.mxu1 %v5555_v44  ;;  %v2270_v22 = vsel %vm2269_vm5, %v2255_v10, %v2268_v39  ;;  %v5579_v44 = vld [vmem:[#allocation16 + $0x48] ss:$16 sps:$4 sm:$0xff]  }
 0x4ee   : > { %v1507_v24 = vrot.slane %v1506_v15, 1  ;;  %v1517_v54 = vrot.slane %v1516_v4, 4  ;;  %2025 = vmatprep.mubr.bf16.mxu1 %v7207_v16  ;;  %v2279_v25 = vsel %vm2269_vm5, %v2256_v50, %v2278_v47  ;;  %v5567_v47 = vld [vmem:[#allocation16 + $0x8] ss:$16 sps:$4 sm:$0xff]   ;;  %v5591_v50 = vld [vmem:[#allocation16 + $0xac] ss:$16 sps:$4 sm:$0xff]  }
 0x4ef   : > { %v1501_v12 = vmax.f32 %v1499_v30, %v1500_v17  ;;  %v1511_v26 = vmax.f32 %v1509_v14, %v1510_v21  ;;  %2026 = vmatmul.mubr.bf16.gmra.mrb[76].mxu1 %v7205_v49  ;;  %v5583_v10 = vld [vmem:[#allocation16 + $0x68] ss:$16 sps:$4 sm:$0xff]   ;;  %v5588_v30 = vld [vmem:[#allocation16 + $0x8c] ss:$16 sps:$4 sm:$0xff]  }
 0x4f0   : > { %v1508_v29 = vmax.f32 %v1506_v15, %v1507_v24  ;;  %v1518_v32 = vmax.f32 %v1516_v4, %v1517_v54  ;;  %2065 = vmatpush1.bf16.msra.mxu1 %v5553_v56  ;;  %2068 = vmatprep.mubr.bf16.mxu1 %v7129_v45  ;;  %v5586_v14 = vld [vmem:[#allocation16 + $0x88] ss:$16 sps:$4 sm:$0xff]   ;;  %v5597_v4 = vld [vmem:[#allocation16 + $0xec] ss:$16 sps:$4 sm:$0xff]  }
 0x4f1   : > { %v2161_v35 = vpack.c.bf16 %v1501_v12, %v1501_v12  ;;  %v1512_v36 = vrot.slane %v1511_v26, 2  ;;  %2066 = vmatprep.subr.bf16.mxu1 %v5561_v19  ;;  %v5592_v15 = vld [vmem:[#allocation16 + $0xc8] ss:$16 sps:$4 sm:$0xff]   ;;  %v5600_v17 = vld [vmem:[#allocation16 + $0x10c] ss:$16 sps:$4 sm:$0xff]  }
 0x4f2   : > { %v1519_v38 = vrot.slane %v1518_v32, 2  ;;  %v2162_v39 = vpack.c.bf16 %v1508_v29, %v1508_v29  ;;  %v5595_v56 = vld [vmem:[#allocation16 + $0xe8] ss:$16 sps:$4 sm:$0xff]   ;;  %v5603_v21 = vld [vmem:[#allocation16 + $0x12c] ss:$16 sps:$4 sm:$0xff]  }
 0x4f3   : > { %v2257_v42 = vunpack.c.l.b16 %v2161_v35  ;;  %v1513_v43 = vmax.f32 %v1511_v26, %v1512_v36  ;;  %v5606_v19 = vld [vmem:[#allocation16 + $0x14c] ss:$16 sps:$4 sm:$0xff]  }
 0x4f4   : > { %v1520_v46 = vmax.f32 %v1518_v32, %v1519_v38  ;;  %2067 = vmatpush1.bf16.msra.mxu1 %v5559_v5  ;;  %v2258_v51 = vunpack.c.l.b16 %v2162_v39  ;;  %v5612_v24 = vld [vmem:[#allocation16 + $0x18c] ss:$16 sps:$4 sm:$0xff]  }
 0x4f5   : > { %v1514_v55 = vrot.slane %v1513_v43, 1  ;;  %2647 = vmatprep.subr.bf16.mxu1 %v5569_v31  ;;  %v2272_v40 = vsel %vm2271_vm6, %v2257_v42, %v2270_v22  ;;  %v5609_v22 = vld [vmem:[#allocation16 + $0x16c] ss:$16 sps:$4 sm:$0xff]  }
 0x4f6   : > { %v1521_v45 = vrot.slane %v1520_v46, 1  ;;  %v2280_v62 = vsel %vm2271_vm6, %v2258_v51, %v2279_v25  ;;  %v5615_v54 = vld [vmem:[#allocation16 + $0x1ac] ss:$16 sps:$4 sm:$0xff]  }
 0x4f7   : > { %v1515_v13 = vmax.f32 %v1513_v43, %v1514_v55  ;;  %2069 = vmatmul.mubr.bf16.vlgmr.msra.gmra.mrb[80].mxu1 %v7127_v1  ;;  %v5618_v25 = vld [vmem:[#allocation16 + $0x1cc] ss:$16 sps:$4 sm:$0xff]  }
 0x4f8   : > { %2648 = vmatpush1.bf16.msra.mxu1 %v5567_v47  ;;  %2078 = vmatprep.mubr.bf16.mxu1 %v7139_v23  ;;  %v1522_v0 = vmax.f32 %v1520_v46, %v1521_v45  ;;  %v5621_v12 = vld [vmem:[#allocation16 + $0x1ec] ss:$16 sps:$4 sm:$0xff]  }
 0x4f9   : > { %v2163_v61 = vpack.c.bf16 %v1515_v13, %v1515_v13  ;;  %2649 = vmatprep.subr.bf16.mxu1 %v5575_v57 }
 0x4fa   : > { %v2164_v3 = vpack.c.bf16 %v1522_v0, %v1522_v0 }
 0x4fb   : > { %v2259_v6 = vunpack.c.l.b16 %v2163_v61 }
 0x4fc   : > { %2650 = vmatpush1.bf16.msra.mxu1 %v5573_v48  ;;  %v2260_v7 = vunpack.c.l.b16 %v2164_v3 }
 0x4fd   : > { %2651 = vmatprep.subr.bf16.mxu1 %v5581_v2  ;;  %v2274_v8 = vsel %vm2273_vm7, %v2259_v6, %v2272_v40 }
 0x4fe   : > { %v2281_v1 = vsel %vm2273_vm7, %v2260_v7, %v2280_v62  ;;  %v7224_v34 = vpack.c.b16 %v2274_v8, %v2274_v8 }
 0x4ff   : > { %2079 = vmatmul.mubr.bf16.gmra.mrb[84].mxu1 %v7137_v18  ;;  %v7221_v23 = vpack.c.b16 %v2281_v1, %v2281_v1  ;;  %v5589_v18 = vld [vmem:[#allocation16 + $0xa8] ss:$16 sps:$4 sm:$0xff]  }
 0x500   : > { %2652 = vmatpush1.bf16.msra.mxu1 %v5579_v44  ;;  %2088 = vmatprep.mubr.bf16.mxu1 %v7149_v63  ;;  %v5594_v63 = vld [vmem:[#allocation16 + $0xcc] ss:$16 sps:$4 sm:$0xff]  }
 0x501   : > { %2638 = vmatprep.mubr.bf16.mxu0 %v7221_v23  ;;  %2653 = vmatprep.subr.bf16.mxu1 %v5585_v9 }
 0x502   : > { %2639 = vmatmul.mubr.bf16.vlgmr.msra.gmra.mrb[0].mxu0 %v7224_v34 }
 0x504   : > { %2654 = vmatpush1.bf16.msra.mxu1 %v5583_v10 }
 0x505   : > { %2655 = vmatprep.subr.bf16.mxu1 %v5588_v30 }
 0x507   : > { %2089 = vmatmul.mubr.bf16.gmra.mrb[88].mxu1 %v7147_v58  ;;  %v5598_v58 = vld [vmem:[#allocation16 + $0x108] ss:$16 sps:$4 sm:$0xff]  }
 0x508   : > { %2656 = vmatpush1.bf16.msra.mxu1 %v5586_v14  ;;  %2098 = vmatprep.mubr.bf16.mxu1 %v7159_v37  ;;  %v5601_v37 = vld [vmem:[#allocation16 + $0x128] ss:$16 sps:$4 sm:$0xff]  }
 0x509   : > { %2657 = vmatprep.subr.bf16.mxu1 %v5591_v50 }
 0x50c   : > { %2658 = vmatpush1.bf16.msra.mxu1 %v5589_v18 }
 0x50d   : > { %2659 = vmatprep.subr.bf16.mxu1 %v5594_v63 }
 0x50f   : > { %2099 = vmatmul.mubr.bf16.gmra.mrb[92].mxu1 %v7157_v27  ;;  %v5604_v27 = vld [vmem:[#allocation16 + $0x148] ss:$16 sps:$4 sm:$0xff]  }
 0x510   : > { %2660 = vmatpush1.bf16.msra.mxu1 %v5592_v15  ;;  %2108 = vmatprep.mubr.bf16.mxu1 %v7171_v11  ;;  %v5607_v11 = vld [vmem:[#allocation16 + $0x168] ss:$16 sps:$4 sm:$0xff]  }
 0x511   : > { %2661 = vmatprep.subr.bf16.mxu1 %v5597_v4 }
 0x514   : > { %2662 = vmatpush1.bf16.msra.mxu1 %v5595_v56 }
 0x515   : > { %2663 = vmatprep.subr.bf16.mxu1 %v5600_v17 }
 0x517   : > { %2109 = vmatmul.mubr.bf16.gmra.mrb[96].mxu1 %v7169_v60  ;;  %v5610_v60 = vld [vmem:[#allocation16 + $0x188] ss:$16 sps:$4 sm:$0xff]  }
 0x518   : > { %2664 = vmatpush1.bf16.msra.mxu1 %v5598_v58  ;;  %2118 = vmatprep.mubr.bf16.mxu1 %v7183_v59  ;;  %v5613_v59 = vld [vmem:[#allocation16 + $0x1a8] ss:$16 sps:$4 sm:$0xff]  }
 0x519   : > { %2665 = vmatprep.subr.bf16.mxu1 %v5603_v21 }
 0x51c   : > { %2666 = vmatpush1.bf16.msra.mxu1 %v5601_v37 }
 0x51d   : > { %2667 = vmatprep.subr.bf16.mxu1 %v5606_v19 }
 0x51f   : > { %2119 = vmatmul.mubr.bf16.gmra.mrb[100].mxu1 %v7181_v52  ;;  %v5616_v52 = vld [vmem:[#allocation16 + $0x1c8] ss:$16 sps:$4 sm:$0xff]  }
 0x520   : > { %2668 = vmatpush1.bf16.msra.mxu1 %v5604_v27  ;;  %2128 = vmatprep.mubr.bf16.mxu1 %v7195_v33  ;;  %v5619_v33 = vld [vmem:[#allocation16 + $0x1e8] ss:$16 sps:$4 sm:$0xff]  }
 0x521   : > { %2669 = vmatprep.subr.bf16.mxu1 %v5609_v22 }
 0x524   : > { %2670 = vmatpush1.bf16.msra.mxu1 %v5607_v11 }
 0x525   : > { %2671 = vmatprep.subr.bf16.mxu1 %v5612_v24 }
 0x527   : > { %2129 = vmatmul.mubr.bf16.gmra.mrb[104].mxu1 %v7193_v28 }
 0x528   : > { %2672 = vmatpush1.bf16.msra.mxu1 %v5610_v60  ;;  %2138 = vmatprep.mubr.bf16.mxu1 %v7207_v16 }
 0x529   : > { %2673 = vmatprep.subr.bf16.mxu1 %v5615_v54 }
 0x52c   : > { %2674 = vmatpush1.bf16.msra.mxu1 %v5613_v59 }
 0x52d   : > { %2675 = vmatprep.subr.bf16.mxu1 %v5618_v25 }
 0x52f   : > { %2139 = vmatmul.mubr.bf16.gmra.mrb[108].mxu1 %v7205_v49 }
 0x530   : > { %2676 = vmatpush1.bf16.msra.mxu1 %v5616_v52  ;;  %2679 = vmatprep.mubr.bf16.mxu1 %v7221_v23 }
 0x531   : > { %2677 = vmatprep.subr.bf16.mxu1 %v5621_v12 }
 0x534   : > { %2678 = vmatpush1.bf16.msra.mxu1 %v5619_v33 }
 0x537   : > { %2680 = vmatmul.mubr.bf16.vlgmr.msra.gmra.mrb[112].mxu1 %v7224_v34 }
 0x58a   : > { %v7241_v28 = vpop.f32.mrb[48].mxu1 }
 0x58b   : > { %v7243_v16 = vpop.f32.mrb[49].mxu1 }
 0x58c   : > { %v7245_v26 = vpop.f32.mrb[50].mxu1 }
 0x58d   : > { %v7247_v29 = vpop.f32.mrb[51].mxu1 }
 0x592   : > { %v7249_v32 = vpop.f32.mrb[52].mxu1 }
 0x593   : > { %v7251_v5 = vpop.f32.mrb[53].mxu1 }
 0x594   : > { %v7253_v49 = vpop.f32.mrb[54].mxu1 }
 0x595   : > { %v7255_v35 = vpop.f32.mrb[55].mxu1 }
 0x59a   : > { %v7257_v36 = vpop.f32.mrb[56].mxu1 }
 0x59b   : > { %v7259_v31 = vpop.f32.mrb[57].mxu1 }
 0x59c   : > { %v7261_v38 = vpop.f32.mrb[58].mxu1 }
 0x59d   : > { %v7263_v39 = vpop.f32.mrb[59].mxu1 }
 0x5a2   : > { %v7265_v42 = vpop.f32.mrb[60].mxu1 }
 0x5a3   : > { %v7267_v43 = vpop.f32.mrb[61].mxu1 }
 0x5a4   : > { %v7269_v46 = vpop.f32.mrb[62].mxu1 }
 0x5a5   : > { %v7271_v47 = vpop.f32.mrb[63].mxu1 }
 0x5aa   : > { %v7273_v51 = vpop.f32.mrb[64].mxu1 }
 0x5ab   : > { %8676 = vst [vmem:[#allocation43_spill] sm:$0xff] %v7273_v51  ;;  %v7275_v55 = vpop.f32.mrb[65].mxu1 }
 0x5ac   : > { %8677 = vst [vmem:[#allocation44_spill] sm:$0xff] %v7275_v55  ;;  %v7277_v57 = vpop.f32.mrb[66].mxu1 }
 0x5ad   : > { %v7279_v40 = vpop.f32.mrb[67].mxu1 }
 0x5b2   : > { %v7281_v45 = vpop.f32.mrb[68].mxu1 }
 0x5b3   : > { %8678 = vst [vmem:[#allocation45_spill] sm:$0xff] %v7281_v45  ;;  %v7283_v62 = vpop.f32.mrb[69].mxu1 }
 0x5b4   : > { %8679 = vst [vmem:[#allocation46_spill] sm:$0xff] %v7283_v62  ;;  %v7285_v13 = vpop.f32.mrb[70].mxu1 }
 0x5b5   : > { %8680 = vst [vmem:[#allocation47_spill] sm:$0xff] %v7285_v13  ;;  %v7287_v48 = vpop.f32.mrb[71].mxu1 }
 0x5b6   : > { %8681 = vst [vmem:[#allocation48_spill] sm:$0xff] %v7287_v48 }
 0x5ba   : > { %v7289_v0 = vpop.f32.mrb[72].mxu1 }
 0x5bb   : > { %8682 = vst [vmem:[#allocation49_spill] sm:$0xff] %v7289_v0  ;;  %v7291_v61 = vpop.f32.mrb[73].mxu1 }
 0x5bc   : > { %8683 = vst [vmem:[#allocation50_spill] sm:$0xff] %v7291_v61  ;;  %v7293_v2 = vpop.f32.mrb[74].mxu1 }
 0x5bd   : > { %8684 = vst [vmem:[#allocation51_spill] sm:$0xff] %v7293_v2  ;;  %v7295_v3 = vpop.f32.mrb[75].mxu1 }
 0x5be   : > { %8685 = vst [vmem:[#allocation52_spill] sm:$0xff] %v7295_v3 }
 0x5c2   : > { %v7297_v6 = vpop.f32.mrb[76].mxu1 }
 0x5c3   : > { %8686 = vst [vmem:[#allocation53_spill] sm:$0xff] %v7297_v6  ;;  %v7299_v44 = vpop.f32.mrb[77].mxu1  ;;  %v6336_v6 = vmov 1966171168  }
 0x5c4   : > { %8687 = vst [vmem:[#allocation54_spill] sm:$0xff] %v7299_v44  ;;  %v7301_v7 = vpop.f32.mrb[78].mxu1 }
 0x5c5   : > { %8688 = vst [vmem:[#allocation55_spill] sm:$0xff] %v7301_v7  ;;  %v7303_v8 = vpop.f32.mrb[79].mxu1 }
 0x5c6   : > { %8689 = vst [vmem:[#allocation56_spill] sm:$0xff] %v7303_v8  ;;  %v2697_v8 = vunpack.c.l.s4 %v6336_v6 }
 0x5c8   : > { %v2698_v2 = vunpack.c.0.s8 %v2697_v8 }
 0x5ca   : > { %v7305_v9 = vpop.f32.mrb[80].mxu1 }
 0x5cb   : > { %v7307_v1 = vpop.f32.mrb[81].mxu1 }
 0x5cc   : > { %v7309_v23 = vpop.f32.mrb[82].mxu1 }
 0x5cd   : > { %v7311_v34 = vpop.f32.mrb[83].mxu1 }
 0x5d2   : > { %v7313_v10 = vpop.f32.mrb[84].mxu1 }
 0x5d3   : > { %v7315_v30 = vpop.f32.mrb[85].mxu1 }
 0x5d4   : > { %v7317_v14 = vpop.f32.mrb[86].mxu1 }
 0x5d5   : > { %v7319_v50 = vpop.f32.mrb[87].mxu1  ;;  %v2640_v18 = vpop.f32.mrb[0].mxu0 }
 0x5d6   : > { %v2642_v63 = vpop.f32.mrb[1].mxu0 }
 0x5d7   : > { %v2692_v15 = vcombine.low %v2640_v18, %v2642_v63  ;;  %v2693_v4 = vcombine.high %v2640_v18, %v2642_v63  ;;  %v2644_v56 = vpop.f32.mrb[2].mxu0 }
 0x5d8   : > { %v2645_v17 = vpop.f32.mrb[3].mxu0 }
 0x5da   : > { %v7321_v58 = vpop.f32.mrb[88].mxu1 }
 0x5db   : > { %v7323_v21 = vpop.f32.mrb[89].mxu1 }
 0x5dc   : > { %v7325_v37 = vpop.f32.mrb[90].mxu1 }
 0x5dd   : > { %v7327_v19 = vpop.f32.mrb[91].mxu1 }
 0x5e2   : > { %v7329_v27 = vpop.f32.mrb[92].mxu1 }
 0x5e3   : > { %v7331_v22 = vpop.f32.mrb[93].mxu1 }
 0x5e4   : > { %v7333_v11 = vpop.f32.mrb[94].mxu1 }
 0x5e5   : > { %v7335_v24 = vpop.f32.mrb[95].mxu1 }
 0x5ea   : > { %v7337_v60 = vpop.f32.mrb[96].mxu1 }
 0x5eb   : > { %8690 = vst [vmem:[#allocation57_spill] sm:$0xff] %v7337_v60  ;;  %v7339_v54 = vpop.f32.mrb[97].mxu1 }
 0x5ec   : > { %8691 = vst [vmem:[#allocation58_spill] sm:$0xff] %v7339_v54  ;;  %v7341_v59 = vpop.f32.mrb[98].mxu1 }
 0x5ed   : > { %v7343_v25 = vpop.f32.mrb[99].mxu1 }
 0x5ee   : > { %8692 = vst [vmem:[#allocation59_spill] sm:$0xff] %v7343_v25 }
 0x5f2   : > { %v7345_v52 = vpop.f32.mrb[100].mxu1 }
 0x5f3   : > { %8693 = vst [vmem:[#allocation60_spill] sm:$0xff] %v7345_v52  ;;  %v7347_v12 = vpop.f32.mrb[101].mxu1 }
 0x5f4   : > { %8694 = vst [vmem:[#allocation61_spill] sm:$0xff] %v7347_v12  ;;  %v7349_v33 = vpop.f32.mrb[102].mxu1  ;;  %v2701_v12 = vsub.s32 %v2698_v2, %v7109_v53 }
 0x5f5   : > { %8695 = vst [vmem:[#allocation62_spill] sm:$0xff] %v7349_v33  ;;  %v7351_v18 = vpop.f32.mrb[103].mxu1 }
 0x5f6   : > { %8696 = vst [vmem:[#allocation63_spill] sm:$0xff] %v7351_v18  ;;  %v2709_v33 = vrot.slane %v2693_v4, %v2701_v12 }
 0x5fa   : > { %v7353_v63 = vpop.f32.mrb[104].mxu1 }
 0x5fb   : > { %8697 = vst [vmem:[#allocation64_spill] sm:$0xff] %v7353_v63  ;;  %v7355_v56 = vpop.f32.mrb[105].mxu1 }
 0x5fc   : > { %8698 = vst [vmem:[#allocation65_spill] sm:$0xff] %v7355_v56  ;;  %v7357_v17 = vpop.f32.mrb[106].mxu1 }
 0x5fd   : > { %8699 = vst [vmem:[#allocation66_spill] sm:$0xff] %v7357_v17  ;;  %v7359_v44 = vpop.f32.mrb[107].mxu1 }
 0x5fe   : > { %8700 = vst [vmem:[#allocation67_spill] sm:$0xff] %v7359_v44  ;;  %v2702_v44 = vrot.slane %v2692_v15, %v2701_v12 }
 0x602   : > { %v7361_v7 = vpop.f32.mrb[108].mxu1 }
 0x603   : > { %8701 = vst [vmem:[#allocation68_spill] sm:$0xff] %v7361_v7  ;;  %v7363_v61 = vpop.f32.mrb[109].mxu1  ;;  %v7371_v7 = vsub.s32 2, %v7109_v53 }
 0x604   : > { %8702 = vst [vmem:[#allocation69_spill] sm:$0xff] %v7363_v61  ;;  %v7365_v0 = vpop.f32.mrb[110].mxu1  ;;  %v7374_v61 = vsub.s32 3, %v7109_v53 }
 0x605   : > { %8703 = vst [vmem:[#allocation70_spill] sm:$0xff] %v7365_v0  ;;  %v7367_v3 = vpop.f32.mrb[111].mxu1  ;;  %8705 = vst [vmem:[#allocation72_spill] sm:$0xff] %v7371_v7 }
 0x606   : > { %8704 = vst [vmem:[#allocation71_spill] sm:$0xff] %v7367_v3  ;;  %8706 = vst [vmem:[#allocation73_spill] sm:$0xff] %v7374_v61  ;;  %v2984_v3 = vld [vmem:[#allocation19] sm:$0xf] }
 0x607   : > { %v7380_v15 = vrot.slane %v2984_v3, %v7115_v20  ;;  %v7387_v53 = vrot.slane %v2984_v3, %v7371_v7 }
 0x60a   : > { %v2681_v63 = vpop.f32.mrb[112].mxu1 }
 0x60b   : > { %v2683_v52 = vpop.f32.mrb[113].mxu1 }
 0x60c   : > { %v2694_v56 = vcombine.low %v2681_v63, %v2683_v52  ;;  %v2695_v62 = vcombine.high %v2681_v63, %v2683_v52  ;;  %v2685_v17 = vpop.f32.mrb[114].mxu1  ;;  %v7377_v52 = vrot.slane %v2984_v3, %v7112_v41 }
 0x60d   : > { %v2686_v18 = vpop.f32.mrb[115].mxu1 }
 0x60e   : > { %v2716_v6 = vrot.slane %v2694_v56, %v2701_v12  ;;  %v2723_v48 = vrot.slane %v2695_v62, %v2701_v12  ;;  %v7390_v18 = vrot.slane %v2984_v3, %v7374_v61 }
 0x610   : > { %v2724_v8 = vcombine.low %v2702_v44, %v2716_v6  ;;  %v2725_v0 = vcombine.high %v2702_v44, %v2716_v6  ;;  %v2726_v2 = vcombine.low %v2709_v33, %v2723_v48  ;;  %v2727_v45 = vcombine.high %v2709_v33, %v2723_v48 }
 0x612   : > { %v2734_v13 = vrot.slane %v2724_v8, %v2701_v12  ;;  %v2748_v54 = vrot.slane %v2725_v0, %v2701_v12  ;;  %v7382_v62 = vrot.slane %v2726_v2, %v2701_v12  ;;  %v7384_v4 = vrot.slane %v2727_v45, %v2701_v12 }
 0x614   : > { %8707 = vst [vmem:[#allocation74_spill] sm:$0xff] %v7384_v4  ;;  %v2763_v48 = vrot.slane %v2734_v13, %v7112_v41  ;;  %v2767_v0 = vrot.slane %v2734_v13, %v7115_v20  ;;  %v2771_v44 = vrot.slane %v2734_v13, %v7371_v7  ;;  %v2775_v33 = vrot.slane %v2734_v13, %v7374_v61 }
 0x615   : > { %v2779_v63 = vrot.slane %v2748_v54, %v7112_v41  ;;  %v2783_v56 = vrot.slane %v2748_v54, %v7115_v20  ;;  %v2787_v45 = vrot.slane %v2748_v54, %v7371_v7  ;;  %v2791_v12 = vrot.slane %v2748_v54, %v7374_v61 }
 0x616   : > { %v2924_v17 = vadd.f32 %v2763_v48, %v7245_v26  ;;  %v2925_v3 = vadd.f32 %v2767_v0, %v7247_v29  ;;  %v2926_v6 = vadd.f32 %v2771_v44, %v7309_v23  ;;  %v2927_v8 = vadd.f32 %v2775_v33, %v7311_v34 }
 0x617   : > { %v2920_v2 = vadd.f32 %v2763_v48, %v7241_v28  ;;  %v2921_v4 = vadd.f32 %v2767_v0, %v7243_v16  ;;  %v2922_v60 = vadd.f32 %v2771_v44, %v7305_v9  ;;  %v2923_v25 = vadd.f32 %v2775_v33, %v7307_v1 }
 0x618   : > { %v7409_v55 = vadd.f32 %v7377_v52, %v2924_v17  ;;  %v7412_v51 = vadd.f32 %v7380_v15, %v2925_v3  ;;  %v7415_v26 = vadd.f32 %v7387_v53, %v2926_v6  ;;  %v7418_v29 = vadd.f32 %v7390_v18, %v2927_v8 }
 0x619   : > { %v7421_v28 = vadd.f32 %v7377_v52, %v2920_v2  ;;  %v7424_v16 = vadd.f32 %v7380_v15, %v2921_v4  ;;  %v7427_v9 = vadd.f32 %v7387_v53, %v2922_v60  ;;  %v7430_v1 = vadd.f32 %v7390_v18, %v2923_v25 }
 0x61a   : > { %v3077_v23 = vadd.f32 %v7412_v51, %v7409_v55  ;;  %v2932_v34 = vadd.f32 %v2779_v63, %v7253_v49  ;;  %v2933_v48 = vadd.f32 %v2783_v56, %v7255_v35  ;;  %v2934_v0 = vadd.f32 %v2787_v45, %v7317_v14 }
 0x61b   : > { %v3072_v44 = vadd.f32 %v7424_v16, %v7421_v28  ;;  %v2935_v4 = vadd.f32 %v2791_v12, %v7319_v50  ;;  %v2928_v60 = vadd.f32 %v2779_v63, %v7249_v32  ;;  %v2929_v33 = vadd.f32 %v2783_v56, %v7251_v5 }
 0x61c   : > { %v3078_v25 = vadd.f32 %v3077_v23, %v7415_v26  ;;  %v7444_v17 = vadd.f32 %v7377_v52, %v2932_v34  ;;  %v7447_v49 = vadd.f32 %v7380_v15, %v2933_v48  ;;  %v7450_v35 = vadd.f32 %v7387_v53, %v2934_v0 }
 0x61d   : > { %v3073_v14 = vadd.f32 %v3072_v44, %v7427_v9  ;;  %v7454_v3 = vadd.f32 %v7390_v18, %v2935_v4  ;;  %v2930_v32 = vadd.f32 %v2787_v45, %v7313_v10  ;;  %v2931_v5 = vadd.f32 %v2791_v12, %v7315_v30 }
 0x61e   : > { %v3079_v50 = vadd.f32 %v3078_v25, %v7418_v29  ;;  %v3087_v63 = vadd.f32 %v7447_v49, %v7444_v17  ;;  %v7462_v56 = vadd.f32 %v7377_v52, %v2928_v60  ;;  %v7465_v6 = vadd.f32 %v7380_v15, %v2929_v33 }
 0x61f   : > { %v3074_v8 = vadd.f32 %v3073_v14, %v7430_v1  ;;  %v7469_v2 = vadd.f32 %v7387_v53, %v2930_v32  ;;  %v7472_v10 = vadd.f32 %v7390_v18, %v2931_v5  ;;  %v2756_v30 = vcombine.high %v2734_v13, %v2734_v13 }
 0x620   : > { %3080 = vadd.xlane.f32.xlu1 %v3079_v50  ;;  %v3088_v45 = vadd.f32 %v3087_v63, %v7450_v35  ;;  %v3082_v12 = vadd.f32 %v7465_v6, %v7462_v56  ;;  %v2758_v23 = vcombine.high %v2748_v54, %v2748_v54  ;;  %v7479_v34 = vrot.slane %v7382_v62, %v7112_v41 }
 0x621   : > { %3075 = vadd.xlane.f32.xlu0 %v3074_v8  ;;  %v2795_v48 = vrot.slane %v2756_v30, %v7112_v41  ;;  %v2799_v0 = vrot.slane %v2756_v30, %v7115_v20  ;;  %v2803_v44 = vrot.slane %v2756_v30, %v7371_v7  ;;  %v2807_v13 = vrot.slane %v2756_v30, %v7374_v61 }
 0x622   : > { %v3089_v4 = vadd.f32 %v3088_v45, %v7454_v3  ;;  %v3083_v60 = vadd.f32 %v3082_v12, %v7469_v2  ;;  %v2811_v33 = vrot.slane %v2758_v23, %v7112_v41  ;;  %v2815_v54 = vrot.slane %v2758_v23, %v7115_v20 }
 0x623   : > { %v2940_v25 = vadd.f32 %v2795_v48, %v7261_v38  ;;  %v2941_v14 = vadd.f32 %v2799_v0, %v7263_v39  ;;  %v2942_v32 = vadd.f32 %v2803_v44, %v7325_v37  ;;  %v2943_v5 = vadd.f32 %v2807_v13, %v7327_v19 }
 0x624   : > { %3090 = vadd.xlane.f32.xlu1 %v3089_v4  ;;  %v3084_v50 = vadd.f32 %v3083_v60, %v7472_v10  ;;  %v2936_v63 = vadd.f32 %v2795_v48, %v7257_v36  ;;  %v2937_v8 = vadd.f32 %v2799_v0, %v7259_v31  ;;  %v2938_v30 = vadd.f32 %v2803_v44, %v7321_v58 }
 0x625   : > { %v7498_v45 = vadd.f32 %v7377_v52, %v2940_v25  ;;  %v7501_v38 = vadd.f32 %v7380_v15, %v2941_v14  ;;  %v7504_v39 = vadd.f32 %v7387_v53, %v2942_v32  ;;  %v7507_v37 = vadd.f32 %v7390_v18, %v2943_v5 }
 0x626   : > { %3085 = vadd.xlane.f32.xlu0 %v3084_v50  ;;  %v2939_v19 = vadd.f32 %v2807_v13, %v7323_v21  ;;  %v7511_v36 = vadd.f32 %v7377_v52, %v2936_v63  ;;  %v7514_v31 = vadd.f32 %v7380_v15, %v2937_v8  ;;  %v7517_v58 = vadd.f32 %v7387_v53, %v2938_v30 }
 0x627   : > { %v3097_v12 = vadd.f32 %v7501_v38, %v7498_v45  ;;  %v2819_v48 = vrot.slane %v2758_v23, %v7371_v7  ;;  %v2823_v0 = vrot.slane %v2758_v23, %v7374_v61  ;;  %v2948_v44 = vadd.f32 %v2811_v33, %v7269_v46 }
 0x628   : > { %v7525_v21 = vadd.f32 %v7390_v18, %v2939_v19  ;;  %v3092_v13 = vadd.f32 %v7514_v31, %v7511_v36  ;;  %v2949_v4 = vadd.f32 %v2815_v54, %v7271_v47  ;;  %v2944_v60 = vadd.f32 %v2811_v33, %v7265_v42 }
 0x629   : > { %v3098_v25 = vadd.f32 %v3097_v12, %v7504_v39  ;;  %v2950_v14 = vadd.f32 %v2819_v48, %v7333_v11  ;;  %v2951_v32 = vadd.f32 %v2823_v0, %v7335_v24  ;;  %v7535_v23 = vadd.f32 %v7377_v52, %v2948_v44 }
 0x62a   : > { %v3093_v46 = vadd.f32 %v3092_v13, %v7517_v58  ;;  %v7539_v5 = vadd.f32 %v7380_v15, %v2949_v4  ;;  %v2945_v50 = vadd.f32 %v2815_v54, %v7267_v43  ;;  %v2946_v47 = vadd.f32 %v2819_v48, %v7329_v27 }
 0x62b   : > { %v3099_v42 = vadd.f32 %v3098_v25, %v7507_v37  ;;  %v7545_v33 = vadd.f32 %v7387_v53, %v2950_v14  ;;  %v7548_v11 = vadd.f32 %v7390_v18, %v2951_v32  ;;  %v2947_v24 = vadd.f32 %v2823_v0, %v7331_v22  ;;  %v8712_v14 = vld [vmem:[#allocation44_spill] sm:$0xff] }
 0x62c   : > { %v3094_v63 = vadd.f32 %v3093_v46, %v7525_v21  ;;  %v3107_v8 = vadd.f32 %v7539_v5, %v7535_v23  ;;  %v7555_v30 = vadd.f32 %v7377_v52, %v2944_v60  ;;  %v7558_v43 = vadd.f32 %v7380_v15, %v2945_v50  ;;  %v8711_v60 = vld [vmem:[#allocation43_spill] sm:$0xff] }
 0x62d   : > { %3100 = vadd.xlane.f32.xlu1 %v3099_v42  ;;  %v7561_v27 = vadd.f32 %v7387_v53, %v2946_v47  ;;  %v7564_v54 = vadd.f32 %v7390_v18, %v2947_v24  ;;  %v2831_v22 = vrot.slane %v7382_v62, %v7115_v20  ;;  %v2835_v19 = vrot.slane %v7382_v62, %v7371_v7  ;;  %v8713_v47 = vld [vmem:[#allocation59_spill] sm:$0xff] }
 0x62e   : > { %8708 = vst [vmem:[#allocation75_spill] sm:$0xff] %v7558_v43  ;;  %3095 = vadd.xlane.f32.xlu0 %v3094_v63  ;;  %v3108_v12 = vadd.f32 %v3107_v8, %v7545_v33  ;;  %v3102_v48 = vadd.f32 %v7558_v43, %v7555_v30  ;;  %v2839_v0 = vrot.slane %v7382_v62, %v7374_v61 }
 0x62f   : > { %8709 = vst [vmem:[#allocation76_spill] sm:$0xff] %v7561_v27  ;;  %8710 = vst [vmem:[#allocation77_spill] sm:$0xff] %v7564_v54  ;;  %v2956_v44 = vadd.f32 %v7479_v34, %v7277_v57  ;;  %v2957_v13 = vadd.f32 %v2831_v22, %v7279_v40  ;;  %v2958_v4 = vadd.f32 %v2835_v19, %v7341_v59  ;;  %v8717_v59 = vld [vmem:[#allocation57_spill] sm:$0xff] }
 0x630   : > { %v2952_v25 = vadd.f32 %v7479_v34, %v8711_v60  ;;  %v2953_v32 = vadd.f32 %v2831_v22, %v8712_v14  ;;  %v3109_v46 = vadd.f32 %v3108_v12, %v7548_v11  ;;  %v3103_v50 = vadd.f32 %v3102_v48, %v7561_v27  ;;  %v8718_v34 = vld [vmem:[#allocation58_spill] sm:$0xff] }
 0x631   : > { %v2959_v42 = vadd.f32 %v2839_v0, %v8713_v47  ;;  %v7586_v24 = vadd.f32 %v7377_v52, %v2956_v44  ;;  %v7589_v57 = vadd.f32 %v7380_v15, %v2957_v13  ;;  %v7592_v40 = vadd.f32 %v7387_v53, %v2958_v4  ;;  %v8725_v47 = vld [vmem:[#allocation47_spill] sm:$0xff] }
 0x632   : > { %v2954_v63 = vadd.f32 %v2835_v19, %v8717_v59  ;;  %v2955_v8 = vadd.f32 %v2839_v0, %v8718_v34  ;;  %3110 = vadd.xlane.f32.xlu1 %v3109_v46  ;;  %v3104_v22 = vadd.f32 %v3103_v50, %v7564_v54  ;;  %v7601_v48 = vadd.f32 %v7377_v52, %v2952_v25  ;;  %v8724_v0 = vld [vmem:[#allocation74_spill] sm:$0xff]  ;;  %v8726_v59 = vld [vmem:[#allocation45_spill] sm:$0xff] }
 0x633   : > { %8714 = vst [vmem:[#allocation43_spill] sm:$0xff] %v7586_v24  ;;  %8715 = vst [vmem:[#allocation44_spill] sm:$0xff] %v7589_v57  ;;  %v7598_v12 = vadd.f32 %v7390_v18, %v2959_v42  ;;  %v7604_v44 = vadd.f32 %v7380_v15, %v2953_v32  ;;  %v3117_v13 = vadd.f32 %v7589_v57, %v7586_v24  ;;  %v8729_v24 = vld [vmem:[#allocation63_spill] sm:$0xff] }
 0x634   : > { %8716 = vst [vmem:[#allocation59_spill] sm:$0xff] %v7592_v40  ;;  %8720 = vst [vmem:[#allocation58_spill] sm:$0xff] %v7601_v48  ;;  %v7609_v4 = vadd.f32 %v7387_v53, %v2954_v63  ;;  %v7612_v19 = vadd.f32 %v7390_v18, %v2955_v8  ;;  %v2843_v60 = vrot.slane %v8724_v0, %v7112_v41  ;;  %3105 = vadd.xlane.f32.xlu0 %v3104_v22  ;;  %v8727_v22 = vld [vmem:[#allocation48_spill] sm:$0xff] }
 0x635   : > { %8719 = vst [vmem:[#allocation57_spill] sm:$0xff] %v7598_v12  ;;  %8721 = vst [vmem:[#allocation78_spill] sm:$0xff] %v7604_v44  ;;  %v3112_v25 = vadd.f32 %v7604_v44, %v7601_v48  ;;  %v2847_v14 = vrot.slane %v8724_v0, %v7115_v20  ;;  %v2851_v32 = vrot.slane %v8724_v0, %v7371_v7  ;;  %v8728_v48 = vld [vmem:[#allocation62_spill] sm:$0xff] }
 0x636   : > { %8722 = vst [vmem:[#allocation79_spill] sm:$0xff] %v7609_v4  ;;  %8723 = vst [vmem:[#allocation80_spill] sm:$0xff] %v7612_v19  ;;  %v2855_v46 = vrot.slane %v8724_v0, %v7374_v61  ;;  %v3118_v50 = vadd.f32 %v3117_v13, %v7592_v40  ;;  %v2964_v42 = vadd.f32 %v2843_v60, %v8725_v47  ;;  %v8731_v13 = vld [vmem:[#allocation46_spill] sm:$0xff]  ;;  %v8732_v40 = vld [vmem:[#allocation60_spill] sm:$0xff] }
 0x637   : > { %v2960_v63 = vadd.f32 %v2843_v60, %v8726_v59  ;;  %v2757_v34 = vcombine.high %v7382_v62, %v7382_v62  ;;  %v3113_v8 = vadd.f32 %v3112_v25, %v7609_v4  ;;  %v2965_v44 = vadd.f32 %v2847_v14, %v8727_v22  ;;  %v8741_v4 = vld [vmem:[#allocation49_spill] sm:$0xff] }
 0x638   : > { %v2966_v57 = vadd.f32 %v2851_v32, %v8728_v48  ;;  %v2967_v54 = vadd.f32 %v2855_v46, %v8729_v24  ;;  %v3119_v27 = vadd.f32 %v3118_v50, %v7598_v12  ;;  %v7635_v43 = vadd.f32 %v7377_v52, %v2964_v42  ;;  %v8734_v24 = vld [vmem:[#allocation61_spill] sm:$0xff] }
 0x639   : > { %v2961_v47 = vadd.f32 %v2847_v14, %v8731_v13  ;;  %v2962_v60 = vadd.f32 %v2851_v32, %v8732_v40  ;;  %v3114_v59 = vadd.f32 %v3113_v8, %v7612_v19  ;;  %v7641_v62 = vadd.f32 %v7380_v15, %v2965_v44  ;;  %v8737_v13 = vld [vmem:[#allocation51_spill] sm:$0xff] }
 0x63a   : > { %8730 = vst [vmem:[#allocation74_spill] sm:$0xff] %v7635_v43  ;;  %v7644_v25 = vadd.f32 %v7387_v53, %v2966_v57  ;;  %v7647_v48 = vadd.f32 %v7390_v18, %v2967_v54  ;;  %3120 = vadd.xlane.f32.xlu1 %v3119_v27  ;;  %v2963_v50 = vadd.f32 %v2855_v46, %v8734_v24  ;;  %v8739_v24 = vld [vmem:[#allocation66_spill] sm:$0xff] }
 0x63b   : > { %8733 = vst [vmem:[#allocation47_spill] sm:$0xff] %v7641_v62  ;;  %v7651_v42 = vadd.f32 %v7377_v52, %v2960_v63  ;;  %v7654_v14 = vadd.f32 %v7380_v15, %v2961_v47  ;;  %v7657_v40 = vadd.f32 %v7387_v53, %v2962_v60  ;;  %3115 = vadd.xlane.f32.xlu0 %v3114_v59  ;;  %v8738_v60 = vld [vmem:[#allocation52_spill] sm:$0xff] }
 0x63c   : > { %v3127_v57 = vadd.f32 %v7641_v62, %v7635_v43  ;;  %v2859_v44 = vrot.slane %v2757_v34, %v7112_v41  ;;  %v2863_v54 = vrot.slane %v2757_v34, %v7115_v20  ;;  %v2867_v27 = vrot.slane %v2757_v34, %v7371_v7 }
 0x63d   : > { %8735 = vst [vmem:[#allocation45_spill] sm:$0xff] %v7651_v42  ;;  %8736 = vst [vmem:[#allocation48_spill] sm:$0xff] %v7654_v14  ;;  %v7665_v32 = vadd.f32 %v7390_v18, %v2963_v50  ;;  %v3122_v46 = vadd.f32 %v7654_v14, %v7651_v42  ;;  %v2871_v63 = vrot.slane %v2757_v34, %v7374_v61  ;;  %v8740_v50 = vld [vmem:[#allocation67_spill] sm:$0xff]  ;;  %v8742_v14 = vld [vmem:[#allocation50_spill] sm:$0xff] }
 0x63e   : > { %v2759_v8 = vcombine.high %v8724_v0, %v8724_v0  ;;  %v3128_v22 = vadd.f32 %v3127_v57, %v7644_v25  ;;  %v2972_v47 = vadd.f32 %v2859_v44, %v8737_v13  ;;  %v2973_v59 = vadd.f32 %v2863_v54, %v8738_v60 }
 0x63f   : > { %v2974_v62 = vadd.f32 %v2867_v27, %v8739_v24  ;;  %v3123_v43 = vadd.f32 %v3122_v46, %v7657_v40  ;;  %v2975_v19 = vadd.f32 %v2871_v63, %v8740_v50  ;;  %v2968_v12 = vadd.f32 %v2859_v44, %v8741_v4  ;;  %v8746_v24 = vld [vmem:[#allocation64_spill] sm:$0xff]  ;;  %v8747_v44 = vld [vmem:[#allocation65_spill] sm:$0xff]  ;;  %v8749_v50 = vld [vmem:[#allocation55_spill] sm:$0xff] }
 0x640   : > { %v2969_v42 = vadd.f32 %v2863_v54, %v8742_v14  ;;  %v3129_v34 = vadd.f32 %v3128_v22, %v7647_v48  ;;  %v7682_v0 = vadd.f32 %v7377_v52, %v2972_v47  ;;  %v7685_v57 = vadd.f32 %v7380_v15, %v2973_v59 }
 0x641   : > { %v7688_v13 = vadd.f32 %v7387_v53, %v2974_v62  ;;  %v3124_v60 = vadd.f32 %v3123_v43, %v7665_v32  ;;  %v7692_v46 = vadd.f32 %v7390_v18, %v2975_v19  ;;  %v2970_v4 = vadd.f32 %v2867_v27, %v8746_v24 }
 0x642   : > { %8743 = vst [vmem:[#allocation62_spill] sm:$0xff] %v7682_v0  ;;  %8744 = vst [vmem:[#allocation63_spill] sm:$0xff] %v7685_v57  ;;  %v2971_v14 = vadd.f32 %v2871_v63, %v8747_v44  ;;  %3130 = vadd.xlane.f32.xlu1 %v3129_v34  ;;  %v3137_v54 = vadd.f32 %v7685_v57, %v7682_v0  ;;  %v7699_v22 = vadd.f32 %v7377_v52, %v2968_v12  ;;  %v8753_v57 = vld [vmem:[#allocation54_spill] sm:$0xff] }
 0x643   : > { %8745 = vst [vmem:[#allocation46_spill] sm:$0xff] %v7688_v13  ;;  %v7702_v47 = vadd.f32 %v7380_v15, %v2969_v42  ;;  %v2875_v62 = vrot.slane %v2759_v8, %v7112_v41  ;;  %3125 = vadd.xlane.f32.xlu0 %v3124_v60  ;;  %v7706_v43 = vadd.f32 %v7387_v53, %v2970_v4  ;;  %v8750_v60 = vld [vmem:[#allocation56_spill] sm:$0xff]  ;;  %v8751_v4 = vld [vmem:[#allocation70_spill] sm:$0xff]  ;;  %v8752_v41 = vld [vmem:[#allocation53_spill] sm:$0xff] }
 0x644   : > { %v7709_v19 = vadd.f32 %v7390_v18, %v2971_v14  ;;  %v2879_v27 = vrot.slane %v2759_v8, %v7115_v20  ;;  %v2883_v63 = vrot.slane %v2759_v8, %v7371_v7  ;;  %v3138_v59 = vadd.f32 %v3137_v54, %v7688_v13  ;;  %v8754_v54 = vld [vmem:[#allocation71_spill] sm:$0xff] }
 0x645   : > { %8748 = vst [vmem:[#allocation60_spill] sm:$0xff] %v7702_v47  ;;  %v3132_v12 = vadd.f32 %v7702_v47, %v7699_v22  ;;  %v2887_v42 = vrot.slane %v2759_v8, %v7374_v61  ;;  %v2980_v34 = vadd.f32 %v2875_v62, %v8749_v50  ;;  %v2976_v14 = vadd.f32 %v2875_v62, %v8752_v41  ;;  %v8755_v50 = vld [vmem:[#allocation68_spill] sm:$0xff]  ;;  %v8756_v61 = vld [vmem:[#allocation69_spill] sm:$0xff] }
 0x646   : > { %v2981_v24 = vadd.f32 %v2879_v27, %v8750_v60  ;;  %v2982_v44 = vadd.f32 %v2883_v63, %v8751_v4  ;;  %v2977_v0 = vadd.f32 %v2879_v27, %v8753_v57  ;;  %v3139_v20 = vadd.f32 %v3138_v59, %v7692_v46 }
 0x647   : > { %v3133_v7 = vadd.f32 %v3132_v12, %v7706_v43  ;;  %v2983_v13 = vadd.f32 %v2887_v42, %v8754_v54  ;;  %v7726_v47 = vadd.f32 %v7377_v52, %v2980_v34  ;;  %v2978_v60 = vadd.f32 %v2883_v63, %v8755_v50  ;;  %v5627_v34 = vld [vmem:[#allocation23 + $0x14] ss:$8 sps:$4 sm:$0xff]   ;;  %v5636_v54 = vld [vmem:[#allocation23 + $0x44] ss:$8 sps:$4 sm:$0xff]   ;;  %v5634_v50 = vld [vmem:[#allocation23 + $0x40] ss:$8 sps:$4 sm:$0xff]  }
 0x648   : > { %v7729_v8 = vadd.f32 %v7380_v15, %v2981_v24  ;;  %v2979_v4 = vadd.f32 %v2887_v42, %v8756_v61  ;;  %3140 = vadd.xlane.f32.xlu1 %v3139_v20  ;;  %v7735_v57 = vadd.f32 %v7377_v52, %v2976_v14  ;;  %v7738_v62 = vadd.f32 %v7380_v15, %v2977_v0  ;;  %v5624_v42 = vld [vmem:[#allocation23 + $0x4] ss:$8 sps:$4 sm:$0xff]   ;;  %v5631_v14 = vld [vmem:[#allocation23 + $0x30] ss:$8 sps:$4 sm:$0xff]  }
 0x649   : > { %v3134_v41 = vadd.f32 %v3133_v7, %v7709_v19  ;;  %v7741_v27 = vadd.f32 %v7387_v53, %v2982_v44  ;;  %v7746_v63 = vadd.f32 %v7387_v53, %v2978_v60  ;;  %v7751_v61 = vadd.f32 %v7390_v18, %v2983_v13  ;;  %v5622_v53 = vld [vmem:[#allocation23] ss:$8 sps:$4 sm:$0xff]   ;;  %4151 = vmatprep.subr.bf16.mxu0 %v5624_v42  ;;  %v5625_v13 = vld [vmem:[#allocation23 + $0x10] ss:$8 sps:$4 sm:$0xff]   ;;  %v5630_v24 = vld [vmem:[#allocation23 + $0x24] ss:$8 sps:$4 sm:$0xff]  }
 0x64a   : > { %v3147_v59 = vadd.f32 %v7729_v8, %v7726_v47  ;;  %v3142_v20 = vadd.f32 %v7738_v62, %v7735_v57  ;;  %v7755_v52 = vadd.f32 %v7390_v18, %v2979_v4  ;;  %4152 = vmatpush1.bf16.msra.mxu0 %v5622_v53  ;;  %v5628_v44 = vld [vmem:[#allocation23 + $0x20] ss:$8 sps:$4 sm:$0xff]   ;;  %v5633_v18 = vld [vmem:[#allocation23 + $0x34] ss:$8 sps:$4 sm:$0xff]   ;;  %v5637_v4 = vld [vmem:[#allocation23 + $0x50] ss:$8 sps:$4 sm:$0xff]  }
 0x64b   : > { %3135 = vadd.xlane.f32.xlu0 %v3134_v41  ;;  %4153 = vmatprep.subr.bf16.mxu0 %v5627_v34  ;;  %v5639_v60 = vld [vmem:[#allocation23 + $0x54] ss:$8 sps:$4 sm:$0xff]   ;;  %v5642_v41 = vld [vmem:[#allocation23 + $0x64] ss:$8 sps:$4 sm:$0xff]   ;;  %v5649_v53 = vld [vmem:[#allocation23 + $0x90] ss:$8 sps:$4 sm:$0xff]  }
 0x64c   : > { %v3148_v7 = vadd.f32 %v3147_v59, %v7741_v27  ;;  %v3143_v15 = vadd.f32 %v3142_v20, %v7746_v63  ;;  %v5640_v59 = vld [vmem:[#allocation23 + $0x60] ss:$8 sps:$4 sm:$0xff]   ;;  %v5645_v20 = vld [vmem:[#allocation23 + $0x74] ss:$8 sps:$4 sm:$0xff]  }
 0x64e   : > { %v3149_v0 = vadd.f32 %v3148_v7, %v7751_v61  ;;  %v3144_v12 = vadd.f32 %v3143_v15, %v7755_v52  ;;  %4154 = vmatpush1.bf16.msra.mxu0 %v5625_v13  ;;  %v5643_v7 = vld [vmem:[#allocation23 + $0x70] ss:$8 sps:$4 sm:$0xff]   ;;  %v5648_v15 = vld [vmem:[#allocation23 + $0x84] ss:$8 sps:$4 sm:$0xff]  }
 0x64f   : > { %4155 = vmatprep.subr.bf16.mxu0 %v5630_v24 }
 0x650   : > { %3150 = vadd.xlane.f32.xlu1 %v3149_v0  ;;  %3145 = vadd.xlane.f32.xlu0 %v3144_v12  ;;  %v5646_v0 = vld [vmem:[#allocation23 + $0x80] ss:$8 sps:$4 sm:$0xff]   ;;  %v5651_v12 = vld [vmem:[#allocation23 + $0x94] ss:$8 sps:$4 sm:$0xff]  }
 0x652   : > { %4156 = vmatpush1.bf16.msra.mxu0 %v5628_v44 }
 0x653   : > { %4157 = vmatprep.subr.bf16.mxu0 %v5633_v18 }
 0x656   : > { %4158 = vmatpush1.bf16.msra.mxu0 %v5631_v14 }
 0x657   : > { %4159 = vmatprep.subr.bf16.mxu0 %v5636_v54 }
 0x65a   : > { %4160 = vmatpush1.bf16.msra.mxu0 %v5634_v50 }
 0x65b   : > { %4161 = vmatprep.subr.bf16.mxu0 %v5639_v60 }
 0x65e   : > { %4162 = vmatpush1.bf16.msra.mxu0 %v5637_v4 }
 0x65f   : > { %4163 = vmatprep.subr.bf16.mxu0 %v5642_v41 }
 0x662   : > { %4164 = vmatpush1.bf16.msra.mxu0 %v5640_v59 }
 0x663   : > { %4165 = vmatprep.subr.bf16.mxu0 %v5645_v20 }
 0x666   : > { %4166 = vmatpush1.bf16.msra.mxu0 %v5643_v7 }
 0x667   : > { %4167 = vmatprep.subr.bf16.mxu0 %v5648_v15 }
 0x66a   : > { %4168 = vmatpush1.bf16.msra.mxu0 %v5646_v0 }
 0x66b   : > { %4169 = vmatprep.subr.bf16.mxu0 %v5651_v12 }
 0x66e   : > { %4170 = vmatpush1.bf16.msra.mxu0 %v5649_v53 }
 0x6ad   : > { %v3081_v42 = vpop.xlane.xlu1 %3080 }
 0x6ae   : > { %v3154_v34 = vmul.f32 0.001953125, %v3081_v42  ;;  %v3076_v13 = vpop.xlane.xlu0 %3075 }
 0x6af   : > { %v3153_v24 = vmul.f32 0.001953125, %v3076_v13 }
 0x6b0   : > { %v7761_v44 = vsub.f32 %v7409_v55, %v3154_v34  ;;  %v7764_v18 = vsub.f32 %v7412_v51, %v3154_v34  ;;  %v7767_v14 = vsub.f32 %v7415_v26, %v3154_v34  ;;  %v7770_v54 = vsub.f32 %v7418_v29, %v3154_v34 }
 0x6b1   : > { %v7773_v50 = vsub.f32 %v7421_v28, %v3153_v24  ;;  %v7776_v60 = vsub.f32 %v7424_v16, %v3153_v24  ;;  %v3091_v4 = vpop.xlane.xlu1 %3090  ;;  %v7779_v41 = vsub.f32 %v7427_v9, %v3153_v24  ;;  %v7786_v29 = vsub.f32 %v7430_v1, %v3153_v24 }
 0x6b2   : > { %v3156_v55 = vmul.f32 0.001953125, %v3091_v4  ;;  %v3237_v51 = vmul.f32 %v7761_v44, %v7761_v44  ;;  %v3238_v26 = vmul.f32 %v7764_v18, %v7764_v18  ;;  %v3239_v28 = vmul.f32 %v7767_v14, %v7767_v14 }
 0x6b3   : > { %v3086_v59 = vpop.xlane.xlu0 %3085  ;;  %v3240_v16 = vmul.f32 %v7770_v54, %v7770_v54  ;;  %v3233_v9 = vmul.f32 %v7773_v50, %v7773_v50  ;;  %v3234_v20 = vmul.f32 %v7776_v60, %v7776_v60  ;;  %v3235_v12 = vmul.f32 %v7779_v41, %v7779_v41 }
 0x6b4   : > { %v7797_v7 = vsub.f32 %v7444_v17, %v3156_v55  ;;  %v7800_v15 = vsub.f32 %v7447_v49, %v3156_v55  ;;  %v3155_v1 = vmul.f32 0.001953125, %v3086_v59  ;;  %v3302_v0 = vadd.f32 %v3238_v26, %v3237_v51 }
 0x6b5   : > { %v3297_v53 = vadd.f32 %v3234_v20, %v3233_v9  ;;  %v7805_v42 = vsub.f32 %v7450_v35, %v3156_v55  ;;  %v7808_v34 = vsub.f32 %v7454_v3, %v3156_v55  ;;  %v3236_v4 = vmul.f32 %v7786_v29, %v7786_v29 }
 0x6b6   : > { %v7811_v13 = vsub.f32 %v7462_v56, %v3155_v1  ;;  %v7814_v17 = vsub.f32 %v7465_v6, %v3155_v1  ;;  %v3303_v49 = vadd.f32 %v3302_v0, %v3239_v28  ;;  %v3245_v24 = vmul.f32 %v7797_v7, %v7797_v7 }
 0x6b7   : > { %8757 = vst [vmem:[#allocation61_spill] sm:$0xff] %v7805_v42  ;;  %8758 = vst [vmem:[#allocation51_spill] sm:$0xff] %v7808_v34  ;;  %v3298_v51 = vadd.f32 %v3297_v53, %v3235_v12  ;;  %v3246_v35 = vmul.f32 %v7800_v15, %v7800_v15  ;;  %v7823_v3 = vsub.f32 %v7469_v2, %v3155_v1 }
 0x6b8   : > { %v3304_v26 = vadd.f32 %v3303_v49, %v3240_v16  ;;  %v7826_v56 = vsub.f32 %v7472_v10, %v3155_v1  ;;  %v3241_v6 = vmul.f32 %v7811_v13, %v7811_v13  ;;  %v3247_v59 = vmul.f32 %v7805_v42, %v7805_v42 }
 0x6b9   : > { %8759 = vst [vmem:[#allocation52_spill] sm:$0xff] %v7823_v3  ;;  %v3299_v55 = vadd.f32 %v3298_v51, %v3236_v4  ;;  %v3312_v28 = vadd.f32 %v3246_v35, %v3245_v24  ;;  %v3242_v9 = vmul.f32 %v7814_v17, %v7814_v17  ;;  %v3248_v2 = vmul.f32 %v7808_v34, %v7808_v34 }
 0x6ba   : > { %8760 = vst [vmem:[#allocation66_spill] sm:$0xff] %v7826_v56  ;;  %v3101_v20 = vpop.xlane.xlu1 %3100  ;;  %3305 = vadd.xlane.f32.xlu1 %v3304_v26  ;;  %v3243_v1 = vmul.f32 %v7823_v3, %v7823_v3  ;;  %v3244_v49 = vmul.f32 %v7826_v56, %v7826_v56  ;;  %v8785_v3 = vld [vmem:[#allocation47_spill] sm:$0xff] }
 0x6bb   : > { %v3158_v16 = vmul.f32 0.001953125, %v3101_v20  ;;  %v3096_v0 = vpop.xlane.xlu0 %3095  ;;  %3300 = vadd.xlane.f32.xlu0 %v3299_v55  ;;  %v3313_v10 = vadd.f32 %v3312_v28, %v3247_v59  ;;  %v3307_v12 = vadd.f32 %v3242_v9, %v3241_v6 }
 0x6bc   : > { %v3157_v53 = vmul.f32 0.001953125, %v3096_v0 }
 0x6bd   : > { %v7841_v24 = vsub.f32 %v7498_v45, %v3158_v16  ;;  %v7844_v4 = vsub.f32 %v7501_v38, %v3158_v16  ;;  %v3314_v51 = vadd.f32 %v3313_v10, %v3248_v2  ;;  %v3308_v35 = vadd.f32 %v3307_v12, %v3243_v1 }
 0x6be   : > { %v7847_v26 = vsub.f32 %v7511_v36, %v3157_v53  ;;  %v7850_v55 = vsub.f32 %v7514_v31, %v3157_v53  ;;  %v7853_v6 = vsub.f32 %v7504_v39, %v3158_v16  ;;  %v7856_v59 = vsub.f32 %v7507_v37, %v3158_v16 }
 0x6bf   : > { %v3111_v28 = vpop.xlane.xlu1 %3110  ;;  %3315 = vadd.xlane.f32.xlu1 %v3314_v51  ;;  %v3309_v45 = vadd.f32 %v3308_v35, %v3244_v49  ;;  %v3253_v38 = vmul.f32 %v7841_v24, %v7841_v24  ;;  %v3254_v9 = vmul.f32 %v7844_v4, %v7844_v4  ;;  %v7863_v36 = vsub.f32 %v7517_v58, %v3157_v53 }
 0x6c0   : > { %8761 = vst [vmem:[#allocation67_spill] sm:$0xff] %v7853_v6  ;;  %8762 = vst [vmem:[#allocation49_spill] sm:$0xff] %v7856_v59  ;;  %v3160_v31 = vmul.f32 0.001953125, %v3111_v28  ;;  %v3255_v39 = vmul.f32 %v7853_v6, %v7853_v6  ;;  %v3256_v37 = vmul.f32 %v7856_v59, %v7856_v59  ;;  %v7870_v16 = vsub.f32 %v7525_v21, %v3157_v53  ;;  %v8777_v59 = vld [vmem:[#allocation78_spill] sm:$0xff] }
 0x6c1   : > { %8763 = vst [vmem:[#allocation50_spill] sm:$0xff] %v7863_v36  ;;  %v3106_v20 = vpop.xlane.xlu0 %3105  ;;  %3310 = vadd.xlane.f32.xlu0 %v3309_v45  ;;  %v3322_v2 = vadd.f32 %v3254_v9, %v3253_v38  ;;  %v3249_v0 = vmul.f32 %v7847_v26, %v7847_v26  ;;  %v3250_v58 = vmul.f32 %v7850_v55, %v7850_v55 }
 0x6c2   : > { %8764 = vst [vmem:[#allocation64_spill] sm:$0xff] %v7870_v16  ;;  %v7877_v10 = vsub.f32 %v7535_v23, %v3160_v31  ;;  %v7880_v1 = vsub.f32 %v7539_v5, %v3160_v31  ;;  %v3159_v12 = vmul.f32 0.001953125, %v3106_v20  ;;  %v3251_v49 = vmul.f32 %v7863_v36, %v7863_v36  ;;  %v8767_v23 = vld [vmem:[#allocation75_spill] sm:$0xff] }
 0x6c3   : > { %v3323_v51 = vadd.f32 %v3322_v2, %v3255_v39  ;;  %v3317_v35 = vadd.f32 %v3250_v58, %v3249_v0  ;;  %v7885_v21 = vsub.f32 %v7545_v33, %v3160_v31  ;;  %v7888_v53 = vsub.f32 %v7548_v11, %v3160_v31  ;;  %v8768_v31 = vld [vmem:[#allocation76_spill] sm:$0xff] }
 0x6c4   : > { %v7891_v28 = vsub.f32 %v7555_v30, %v3159_v12  ;;  %v7894_v45 = vsub.f32 %v8767_v23, %v3159_v12  ;;  %v3261_v5 = vmul.f32 %v7877_v10, %v7877_v10  ;;  %v3262_v38 = vmul.f32 %v7880_v1, %v7880_v1 }
 0x6c5   : > { %8765 = vst [vmem:[#allocation65_spill] sm:$0xff] %v7885_v21  ;;  %8766 = vst [vmem:[#allocation55_spill] sm:$0xff] %v7888_v53  ;;  %v3324_v9 = vadd.f32 %v3323_v51, %v3256_v37  ;;  %v3252_v33 = vmul.f32 %v7870_v16, %v7870_v16  ;;  %v3318_v39 = vadd.f32 %v3317_v35, %v3251_v49  ;;  %v8770_v37 = vld [vmem:[#allocation77_spill] sm:$0xff] }
 0x6c6   : > { %v3263_v11 = vmul.f32 %v7885_v21, %v7885_v21  ;;  %v3332_v30 = vadd.f32 %v3262_v38, %v3261_v5  ;;  %v7905_v2 = vsub.f32 %v8768_v31, %v3159_v12  ;;  %v3257_v0 = vmul.f32 %v7891_v28, %v7891_v28  ;;  %v8772_v21 = vld [vmem:[#allocation43_spill] sm:$0xff] }
 0x6c7   : > { %v3121_v20 = vpop.xlane.xlu1 %3120  ;;  %3325 = vadd.xlane.f32.xlu1 %v3324_v9  ;;  %v3319_v6 = vadd.f32 %v3318_v39, %v3252_v33  ;;  %v7910_v51 = vsub.f32 %v8770_v37, %v3159_v12  ;;  %v3258_v49 = vmul.f32 %v7894_v45, %v7894_v45  ;;  %v3264_v5 = vmul.f32 %v7888_v53, %v7888_v53  ;;  %v8774_v33 = vld [vmem:[#allocation59_spill] sm:$0xff]  ;;  %v8776_v37 = vld [vmem:[#allocation58_spill] sm:$0xff] }
 0x6c8   : > { %8769 = vst [vmem:[#allocation56_spill] sm:$0xff] %v7905_v2  ;;  %v3162_v58 = vmul.f32 0.001953125, %v3121_v20  ;;  %v3116_v23 = vpop.xlane.xlu0 %3115  ;;  %v3333_v38 = vadd.f32 %v3332_v30, %v3263_v11  ;;  %v3259_v31 = vmul.f32 %v7905_v2, %v7905_v2  ;;  %v8773_v20 = vld [vmem:[#allocation44_spill] sm:$0xff]  ;;  %v8778_v30 = vld [vmem:[#allocation57_spill] sm:$0xff] }
 0x6c9   : > { %8771 = vst [vmem:[#allocation70_spill] sm:$0xff] %v7910_v51  ;;  %v3161_v35 = vmul.f32 0.001953125, %v3116_v23  ;;  %3320 = vadd.xlane.f32.xlu0 %v3319_v6  ;;  %v3327_v12 = vadd.f32 %v3258_v49, %v3257_v0  ;;  %v8780_v49 = vld [vmem:[#allocation79_spill] sm:$0xff] }
 0x6ca   : > { %v7919_v36 = vsub.f32 %v8772_v21, %v3162_v58  ;;  %v7922_v9 = vsub.f32 %v8773_v20, %v3162_v58  ;;  %v7925_v39 = vsub.f32 %v8774_v33, %v3162_v58  ;;  %v3334_v11 = vadd.f32 %v3333_v38, %v3264_v5 }
 0x6cb   : > { %v7928_v23 = vsub.f32 %v8776_v37, %v3161_v35  ;;  %v7931_v53 = vsub.f32 %v8777_v59, %v3161_v35  ;;  %v7934_v2 = vsub.f32 %v8778_v30, %v3162_v58  ;;  %v3260_v21 = vmul.f32 %v7910_v51, %v7910_v51  ;;  %v8782_v59 = vld [vmem:[#allocation80_spill] sm:$0xff] }
 0x6cc   : > { %8775 = vst [vmem:[#allocation53_spill] sm:$0xff] %v7925_v39  ;;  %v3328_v20 = vadd.f32 %v3327_v12, %v3259_v31  ;;  %v3269_v6 = vmul.f32 %v7919_v36, %v7919_v36  ;;  %v3270_v0 = vmul.f32 %v7922_v9, %v7922_v9  ;;  %3335 = vadd.xlane.f32.xlu1 %v3334_v11  ;;  %v5652_v51 = vld [vmem:[#allocation23 + $0xa0] ss:$8 sps:$4 sm:$0xff]   ;;  %v5654_v11 = vld [vmem:[#allocation23 + $0xa4] ss:$8 sps:$4 sm:$0xff]  }
 0x6cd   : > { %8779 = vst [vmem:[#allocation54_spill] sm:$0xff] %v7934_v2  ;;  %v7943_v33 = vsub.f32 %v8780_v49, %v3161_v35  ;;  %v7946_v37 = vsub.f32 %v8782_v59, %v3161_v35  ;;  %v3265_v58 = vmul.f32 %v7928_v23, %v7928_v23  ;;  %v3271_v31 = vmul.f32 %v7925_v39, %v7925_v39 }
 0x6ce   : > { %v3329_v38 = vadd.f32 %v3328_v20, %v3260_v21  ;;  %v3342_v12 = vadd.f32 %v3270_v0, %v3269_v6  ;;  %v3266_v30 = vmul.f32 %v7931_v53, %v7931_v53  ;;  %v3272_v35 = vmul.f32 %v7934_v2, %v7934_v2  ;;  %4171 = vmatprep.subr.bf16.mxu0 %v5654_v11  ;;  %v8784_v0 = vld [vmem:[#allocation74_spill] sm:$0xff] }
 0x6cf   : > { %8781 = vst [vmem:[#allocation71_spill] sm:$0xff] %v7943_v33  ;;  %8783 = vst [vmem:[#allocation68_spill] sm:$0xff] %v7946_v37  ;;  %v3131_v5 = vpop.xlane.xlu1 %3130  ;;  %v3267_v59 = vmul.f32 %v7943_v33, %v7943_v33  ;;  %v3268_v20 = vmul.f32 %v7946_v37, %v7946_v37  ;;  %4172 = vmatpush1.bf16.msra.mxu0 %v5652_v51  ;;  %v5655_v51 = vld [vmem:[#allocation23 + $0xb0] ss:$8 sps:$4 sm:$0xff]  }
 0x6d0   : > { %v3164_v16 = vmul.f32 0.001953125, %v3131_v5  ;;  %v3126_v49 = vpop.xlane.xlu0 %3125  ;;  %3330 = vadd.xlane.f32.xlu0 %v3329_v38  ;;  %v3343_v21 = vadd.f32 %v3342_v12, %v3271_v31  ;;  %v3337_v6 = vadd.f32 %v3266_v30, %v3265_v58  ;;  %v8788_v38 = vld [vmem:[#allocation45_spill] sm:$0xff]  ;;  %v8789_v12 = vld [vmem:[#allocation48_spill] sm:$0xff]  ;;  %v8793_v37 = vld [vmem:[#allocation46_spill] sm:$0xff] }
 0x6d1   : > { %v3163_v42 = vmul.f32 0.001953125, %v3126_v49 }
 0x6d2   : > { %v7961_v39 = vsub.f32 %v8784_v0, %v3164_v16  ;;  %v7964_v5 = vsub.f32 %v8785_v3, %v3164_v16  ;;  %v7967_v34 = vsub.f32 %v7644_v25, %v3164_v16  ;;  %v7970_v2 = vsub.f32 %v7647_v48, %v3164_v16 }
 0x6d3   : > { %v7973_v31 = vsub.f32 %v8788_v38, %v3163_v42  ;;  %v7976_v49 = vsub.f32 %v8789_v12, %v3163_v42  ;;  %v3344_v58 = vadd.f32 %v3343_v21, %v3272_v35  ;;  %v3338_v30 = vadd.f32 %v3337_v6, %v3267_v59  ;;  %v5657_v38 = vld [vmem:[#allocation23 + $0xb4] ss:$8 sps:$4 sm:$0xff]  }
 0x6d4   : > { %8786 = vst [vmem:[#allocation69_spill] sm:$0xff] %v7967_v34  ;;  %8787 = vst [vmem:[#allocation75_spill] sm:$0xff] %v7970_v2  ;;  %v3277_v11 = vmul.f32 %v7961_v39, %v7961_v39  ;;  %v3278_v3 = vmul.f32 %v7964_v5, %v7964_v5  ;;  %v7983_v48 = vsub.f32 %v7657_v40, %v3163_v42  ;;  %4173 = vmatprep.subr.bf16.mxu0 %v5657_v38  ;;  %v8796_v38 = vld [vmem:[#allocation60_spill] sm:$0xff] }
 0x6d5   : > { %v3141_v25 = vpop.xlane.xlu1 %3140  ;;  %3345 = vadd.xlane.f32.xlu1 %v3344_v58  ;;  %v3339_v0 = vadd.f32 %v3338_v30, %v3268_v20  ;;  %v3273_v16 = vmul.f32 %v7973_v31, %v7973_v31  ;;  %v3279_v35 = vmul.f32 %v7967_v34, %v7967_v34  ;;  %v3274_v21 = vmul.f32 %v7976_v49, %v7976_v49  ;;  %v8791_v58 = vld [vmem:[#allocation62_spill] sm:$0xff] }
 0x6d6   : > { %8790 = vst [vmem:[#allocation76_spill] sm:$0xff] %v7983_v48  ;;  %v3166_v12 = vmul.f32 0.001953125, %v3141_v25  ;;  %v3352_v59 = vadd.f32 %v3278_v3, %v3277_v11  ;;  %v3280_v20 = vmul.f32 %v7970_v2, %v7970_v2  ;;  %v7994_v40 = vsub.f32 %v7665_v32, %v3163_v42  ;;  %v8792_v25 = vld [vmem:[#allocation63_spill] sm:$0xff]  ;;  %4174 = vmatpush1.bf16.msra.mxu0 %v5655_v51 }
 0x6d7   : > { %3340 = vadd.xlane.f32.xlu0 %v3339_v0  ;;  %v3275_v3 = vmul.f32 %v7983_v48, %v7983_v48  ;;  %v3347_v0 = vadd.f32 %v3274_v21, %v3273_v16 }
 0x6d8   : > { %v3136_v6 = vpop.xlane.xlu0 %3135  ;;  %v7997_v30 = vsub.f32 %v8791_v58, %v3166_v12  ;;  %v8000_v33 = vsub.f32 %v8792_v25, %v3166_v12  ;;  %v3353_v11 = vadd.f32 %v3352_v59, %v3279_v35  ;;  %v8005_v56 = vsub.f32 %v8793_v37, %v3166_v12 }
 0x6d9   : > { %v3165_v34 = vmul.f32 0.001953125, %v3136_v6  ;;  %v8008_v32 = vsub.f32 %v7692_v46, %v3166_v12  ;;  %v3276_v35 = vmul.f32 %v7994_v40, %v7994_v40  ;;  %v3348_v16 = vadd.f32 %v3347_v0, %v3275_v3 }
 0x6da   : > { %8794 = vst [vmem:[#allocation77_spill] sm:$0xff] %v8005_v56  ;;  %v3354_v25 = vadd.f32 %v3353_v11, %v3280_v20  ;;  %v3285_v51 = vmul.f32 %v7997_v30, %v7997_v30  ;;  %v3286_v37 = vmul.f32 %v8000_v33, %v8000_v33  ;;  %v3287_v3 = vmul.f32 %v8005_v56, %v8005_v56 }
 0x6db   : > { %8795 = vst [vmem:[#allocation43_spill] sm:$0xff] %v8008_v32  ;;  %v8011_v42 = vsub.f32 %v7699_v22, %v3165_v34  ;;  %v8014_v58 = vsub.f32 %v8796_v38, %v3165_v34  ;;  %v8023_v46 = vsub.f32 %v7706_v43, %v3165_v34  ;;  %v8026_v22 = vsub.f32 %v7709_v19, %v3165_v34  ;;  %v5658_v38 = vld [vmem:[#allocation23 + $0xc0] ss:$8 sps:$4 sm:$0xff]  }
 0x6dc   : > { %3355 = vadd.xlane.f32.xlu1 %v3354_v25  ;;  %v3349_v11 = vadd.f32 %v3348_v16, %v3276_v35  ;;  %v3362_v0 = vadd.f32 %v3286_v37, %v3285_v51  ;;  %v5660_v25 = vld [vmem:[#allocation23 + $0xc4] ss:$8 sps:$4 sm:$0xff]   ;;  %v3288_v19 = vmul.f32 %v8008_v32, %v8008_v32 }
 0x6dd   : > { %v3151_v59 = vpop.xlane.xlu1 %3150  ;;  %8797 = vst [vmem:[#allocation44_spill] sm:$0xff] %v8023_v46  ;;  %v3281_v12 = vmul.f32 %v8011_v42, %v8011_v42  ;;  %v3282_v21 = vmul.f32 %v8014_v58, %v8014_v58  ;;  %v3146_v20 = vpop.xlane.xlu0 %3145  ;;  %v3283_v34 = vmul.f32 %v8023_v46, %v8023_v46  ;;  %4175 = vmatprep.subr.bf16.mxu0 %v5660_v25 }
 0x6de   : > { %v3168_v6 = vmul.f32 0.001953125, %v3151_v59  ;;  %v3167_v43 = vmul.f32 0.001953125, %v3146_v20  ;;  %3350 = vadd.xlane.f32.xlu0 %v3349_v11  ;;  %v3363_v35 = vadd.f32 %v3362_v0, %v3287_v3  ;;  %4176 = vmatpush1.bf16.msra.mxu0 %v5658_v38  ;;  %v5661_v0 = vld [vmem:[#allocation23 + $0xd0] ss:$8 sps:$4 sm:$0xff]   ;;  %v5663_v38 = vld [vmem:[#allocation23 + $0xd4] ss:$8 sps:$4 sm:$0xff]  }
 0x6df   : > { %v3357_v48 = vadd.f32 %v3282_v21, %v3281_v12  ;;  %v3284_v12 = vmul.f32 %v8026_v22, %v8026_v22  ;;  %4177 = vmatprep.subr.bf16.mxu0 %v5663_v38 }
 0x6e0   : > { %v8039_v2 = vsub.f32 %v7726_v47, %v3168_v6  ;;  %v8042_v59 = vsub.f32 %v7729_v8, %v3168_v6  ;;  %v8045_v51 = vsub.f32 %v7741_v27, %v3168_v6  ;;  %v8048_v16 = vsub.f32 %v7735_v57, %v3167_v43 }
 0x6e1   : > { %v8051_v37 = vsub.f32 %v7738_v62, %v3167_v43  ;;  %v3358_v21 = vadd.f32 %v3357_v48, %v3283_v34  ;;  %v3364_v47 = vadd.f32 %v3363_v35, %v3288_v19  ;;  %v8056_v8 = vsub.f32 %v7751_v61, %v3168_v6 }
 0x6e2   : > { %8798 = vst [vmem:[#allocation59_spill] sm:$0xff] %v8045_v51  ;;  %v3293_v20 = vmul.f32 %v8039_v2, %v8039_v2  ;;  %v3294_v27 = vmul.f32 %v8042_v59, %v8042_v59  ;;  %v3295_v62 = vmul.f32 %v8045_v51, %v8045_v51  ;;  %v8065_v11 = vsub.f32 %v7746_v63, %v3167_v43 }
 0x6e3   : > { %8799 = vst [vmem:[#allocation58_spill] sm:$0xff] %v8056_v8  ;;  %v3359_v57 = vadd.f32 %v3358_v21, %v3284_v12  ;;  %3365 = vadd.xlane.f32.xlu1 %v3364_v47  ;;  %v8068_v3 = vsub.f32 %v7755_v52, %v3167_v43  ;;  %v3289_v61 = vmul.f32 %v8048_v16, %v8048_v16  ;;  %v5664_v21 = vld [vmem:[#allocation23 + $0xe0] ss:$8 sps:$4 sm:$0xff]   ;;  %v5666_v47 = vld [vmem:[#allocation23 + $0xe4] ss:$8 sps:$4 sm:$0xff]  }
 0x6e4   : > { %8800 = vst [vmem:[#allocation78_spill] sm:$0xff] %v8065_v11  ;;  %v3372_v48 = vadd.f32 %v3294_v27, %v3293_v20  ;;  %v3290_v6 = vmul.f32 %v8051_v37, %v8051_v37  ;;  %v3296_v25 = vmul.f32 %v8056_v8, %v8056_v8  ;;  %v3291_v63 = vmul.f32 %v8065_v11, %v8065_v11  ;;  %v5667_v20 = vld [vmem:[#allocation23 + $0xf0] ss:$8 sps:$4 sm:$0xff]   ;;  %v5669_v27 = vld [vmem:[#allocation23 + $0xf4] ss:$8 sps:$4 sm:$0xff]  }
 0x6e5   : > { %8801 = vst [vmem:[#allocation57_spill] sm:$0xff] %v8068_v3  ;;  %3360 = vadd.xlane.f32.xlu0 %v3359_v57  ;;  %4178 = vmatpush1.bf16.msra.mxu0 %v5661_v0  ;;  %v3292_v43 = vmul.f32 %v8068_v3, %v8068_v3  ;;  %v5672_v57 = vld [vmem:[#allocation23 + $0x104] ss:$8 sps:$4 sm:$0xff]  }
 0x6e6   : > { %v3373_v19 = vadd.f32 %v3372_v48, %v3295_v62  ;;  %v3367_v34 = vadd.f32 %v3290_v6, %v3289_v61  ;;  %4179 = vmatprep.subr.bf16.mxu0 %v5666_v47 }
 0x6e8   : > { %v3374_v52 = vadd.f32 %v3373_v19, %v3296_v25  ;;  %v3368_v35 = vadd.f32 %v3367_v34, %v3291_v63 }
 0x6e9   : > { %4180 = vmatpush1.bf16.msra.mxu0 %v5664_v21  ;;  %v8802_v21 = vld [vmem:[#allocation41_spill] sm:$0xff] }
 0x6ea   : > { %3375 = vadd.xlane.f32.xlu1 %v3374_v52  ;;  %v3369_v12 = vadd.f32 %v3368_v35, %v3292_v43  ;;  %4181 = vmatprep.subr.bf16.mxu0 %v5669_v27  ;;  %v3070_v43 = vld [vmem:[#allocation20] sm:$0xf] }
 0x6eb   : > { %v8081_v47 = vrot.slane %v3070_v43, %v8802_v21  ;;  %v8803_v27 = vld [vmem:[#allocation72_spill] sm:$0xff] }
 0x6ec   : > { %3370 = vadd.xlane.f32.xlu0 %v3369_v12  ;;  %v3071_v12 = vld [vmem:[#allocation22] sm:$0xf] }
 0x6ed   : > { %4182 = vmatpush1.bf16.msra.mxu0 %v5667_v20 }
 0x6ee   : > { %4264 = vmatprep.subr.bf16.mxu0 %v5672_v57  ;;  %v8084_v57 = vrot.slane %v3070_v43, %v8803_v27 }
 0x747   : > { %v3306_v62 = vpop.xlane.xlu1 %3305 }
 0x748   : > { %v3378_v48 = vmul.f32 0.001953125, %v3306_v62  ;;  %v3301_v61 = vpop.xlane.xlu0 %3300  ;;  %v8804_v62 = vld [vmem:[#allocation73_spill] sm:$0xff] }
 0x749   : > { %v3377_v6 = vmul.f32 0.001953125, %v3301_v61 }
 0x74a   : > { %v3394_v0 = vadd.f32 1e-05, %v3378_v48  ;;  %v8087_v48 = vrot.slane %v3070_v43, %v8804_v62 }
 0x74b   : > { %v3393_v38 = vadd.f32 1e-05, %v3377_v6  ;;  %v8805_v6 = vld [vmem:[#allocation42_spill] sm:$0xff] }
 0x74c   : > { %5750 = vrsqrt.f32 %v3394_v0  ;;  %v3316_v25 = vpop.xlane.xlu1 %3315  ;;  %v8090_v0 = vrot.slane %v3070_v43, %v8805_v6 }
 0x74d   : > { %5752 = vrsqrt.f32 %v3393_v38  ;;  %v3380_v19 = vmul.f32 0.001953125, %v3316_v25  ;;  %v8095_v25 = vrot.slane %v3071_v12, %v8802_v21 }
 0x74e   : > { %v3311_v63 = vpop.xlane.xlu0 %3310 }
 0x74f   : > { %v3396_v34 = vadd.f32 1e-05, %v3380_v19  ;;  %v3379_v52 = vmul.f32 0.001953125, %v3311_v63  ;;  %v8098_v19 = vrot.slane %v3071_v12, %v8803_v27  ;;  %v8101_v63 = vrot.slane %v3071_v12, %v8804_v62 }
 0x751   : > { %5754 = vrsqrt.f32 %v3396_v34  ;;  %v3395_v35 = vadd.f32 1e-05, %v3379_v52  ;;  %v8104_v52 = vrot.slane %v3071_v12, %v8805_v6 }
 0x753   : > { %5756 = vrsqrt.f32 %v3395_v35 }
 0x754   : > { %v3326_v20 = vpop.xlane.xlu1 %3325 }
 0x755   : > { %v3382_v61 = vmul.f32 0.001953125, %v3326_v20 }
 0x756   : > { %v8092_v38 = vpop.eup %5750  ;;  %v3321_v34 = vpop.xlane.xlu0 %3320 }
 0x757   : > { %v8106_v35 = vpop.eup %5752  ;;  %v3398_v20 = vadd.f32 1e-05, %v3382_v61  ;;  %v3381_v43 = vmul.f32 0.001953125, %v3321_v34  ;;  %v3430_v51 = vmul.f32 %v8092_v38, %v7764_v18  ;;  %v3429_v21 = vmul.f32 %v8092_v38, %v7761_v44 }
 0x758   : > { %v3426_v27 = vmul.f32 %v8106_v35, %v7776_v60  ;;  %v3425_v62 = vmul.f32 %v8106_v35, %v7773_v50  ;;  %v3428_v12 = vmul.f32 %v8106_v35, %v7786_v29  ;;  %v3432_v6 = vmul.f32 %v8092_v38, %v7770_v54 }
 0x759   : > { %5758 = vrsqrt.f32 %v3398_v20  ;;  %v3397_v61 = vadd.f32 1e-05, %v3381_v43  ;;  %v3336_v34 = vpop.xlane.xlu1 %3335  ;;  %v3515_v18 = vmul.f32 %v8090_v0, %v3430_v51  ;;  %v3514_v11 = vmul.f32 %v8081_v47, %v3429_v21 }
 0x75a   : > { %v3384_v44 = vmul.f32 0.001953125, %v3336_v34  ;;  %v3511_v8 = vmul.f32 %v8090_v0, %v3426_v27  ;;  %v3510_v60 = vmul.f32 %v8081_v47, %v3425_v62  ;;  %v3513_v50 = vmul.f32 %v8087_v48, %v3428_v12 }
 0x75b   : > { %v8125_v3 = vpop.eup %5754  ;;  %5760 = vrsqrt.f32 %v3397_v61  ;;  %v3600_v29 = vadd.f32 %v8104_v52, %v3515_v18  ;;  %v3599_v54 = vadd.f32 %v8095_v25, %v3514_v11  ;;  %v3517_v20 = vmul.f32 %v8087_v48, %v3432_v6 }
 0x75c   : > { %v3400_v43 = vadd.f32 1e-05, %v3384_v44  ;;  %v3596_v21 = vadd.f32 %v8104_v52, %v3511_v8  ;;  %v3595_v34 = vadd.f32 %v8095_v25, %v3510_v60  ;;  %v3438_v27 = vmul.f32 %v8125_v3, %v7800_v15 }
 0x75d   : > { %v3331_v51 = vpop.xlane.xlu0 %3330  ;;  %v8134_v62 = vpop.eup %5756  ;;  %v3664_v56 = vmax.f32 %v3600_v29, 0.0  ;;  %v3663_v61 = vmax.f32 %v3599_v54, 0.0  ;;  %v3437_v18 = vmul.f32 %v8125_v3, %v7797_v7  ;;  %v5670_v54 = vld [vmem:[#allocation23 + $0x100] ss:$8 sps:$4 sm:$0xff]  }
 0x75e   : > { %v3383_v12 = vmul.f32 0.001953125, %v3331_v51  ;;  %5762 = vrsqrt.f32 %v3400_v43  ;;  %v3660_v11 = vmax.f32 %v3596_v21, 0.0  ;;  %v3659_v6 = vmax.f32 %v3595_v34, 0.0  ;;  %v5675_v34 = vld [vmem:[#allocation23 + $0x114] ss:$8 sps:$4 sm:$0xff]  }
 0x75f   : > { %v3434_v44 = vmul.f32 %v8134_v62, %v7814_v17  ;;  %v3523_v60 = vmul.f32 %v8090_v0, %v3438_v27  ;;  %v3433_v15 = vmul.f32 %v8134_v62, %v7811_v13  ;;  %v3522_v46 = vmul.f32 %v8081_v47, %v3437_v18 }
 0x760   : > { %v3399_v8 = vadd.f32 1e-05, %v3383_v12  ;;  %v3724_v29 = vpack.c.bf16 %v3664_v56, %v3660_v11  ;;  %v3723_v32 = vpack.c.bf16 %v3663_v61, %v3659_v6  ;;  %v3598_v43 = vadd.f32 %v8101_v63, %v3513_v50 }
 0x761   : > { %v3519_v7 = vmul.f32 %v8090_v0, %v3434_v44  ;;  %v3608_v17 = vadd.f32 %v8104_v52, %v3523_v60  ;;  %v3518_v27 = vmul.f32 %v8081_v47, %v3433_v15  ;;  %v3607_v18 = vadd.f32 %v8095_v25, %v3522_v46  ;;  %v5673_v15 = vld [vmem:[#allocation23 + $0x110] ss:$8 sps:$4 sm:$0xff]  }
 0x762   : > { %v3346_v51 = vpop.xlane.xlu1 %3345  ;;  %5764 = vrsqrt.f32 %v3399_v8  ;;  %4183 = vmatprep.mubr.bf16.mxu0 %v3724_v29  ;;  %v3602_v56 = vadd.f32 %v8101_v63, %v3517_v20  ;;  %v3662_v61 = vmax.f32 %v3598_v43, 0.0  ;;  %v5678_v43 = vld [vmem:[#allocation23 + $0x124] ss:$8 sps:$4 sm:$0xff]  }
 0x763   : > { %v3386_v21 = vmul.f32 0.001953125, %v3346_v51  ;;  %v3604_v13 = vadd.f32 %v8104_v52, %v3519_v7  ;;  %v8151_v11 = vpop.eup %5758  ;;  %4184 = vmatmul.mubr.bf16.vlgmr.msra.gmra.mrb[4].mxu0 %v3723_v32  ;;  %v3672_v44 = vmax.f32 %v3608_v17, 0.0  ;;  %v3603_v8 = vadd.f32 %v8095_v25, %v3518_v27 }
 0x764   : > { %v3341_v12 = vpop.xlane.xlu0 %3340  ;;  %4265 = vmatpush1.bf16.msra.mxu0 %v5670_v54  ;;  %v3671_v51 = vmax.f32 %v3607_v18, 0.0  ;;  %v3446_v29 = vmul.f32 %v8151_v11, %v7844_v4  ;;  %v3445_v46 = vmul.f32 %v8151_v11, %v7841_v24 }
 0x765   : > { %v3402_v6 = vadd.f32 1e-05, %v3386_v21  ;;  %v3385_v50 = vmul.f32 0.001953125, %v3341_v12  ;;  %v3668_v60 = vmax.f32 %v3604_v13, 0.0  ;;  %v8158_v20 = vpop.eup %5760  ;;  %4266 = vmatprep.subr.bf16.mxu0 %v5675_v34  ;;  %v3667_v32 = vmax.f32 %v3603_v8, 0.0 }
 0x766   : > { %v3666_v21 = vmax.f32 %v3602_v56, 0.0  ;;  %v3442_v54 = vmul.f32 %v8158_v20, %v7850_v55  ;;  %v3531_v27 = vmul.f32 %v8090_v0, %v3446_v29  ;;  %v3441_v4 = vmul.f32 %v8158_v20, %v7847_v26  ;;  %v5676_v56 = vld [vmem:[#allocation23 + $0x120] ss:$8 sps:$4 sm:$0xff]   ;;  %v5681_v26 = vld [vmem:[#allocation23 + $0x134] ss:$8 sps:$4 sm:$0xff]  }
 0x767   : > { %5766 = vrsqrt.f32 %v3402_v6  ;;  %v3401_v7 = vadd.f32 1e-05, %v3385_v50  ;;  %v3728_v17 = vpack.c.bf16 %v3672_v44, %v3668_v60  ;;  %v3727_v24 = vpack.c.bf16 %v3671_v51, %v3667_v32 }
 0x768   : > { %v3530_v13 = vmul.f32 %v8081_v47, %v3445_v46  ;;  %v8166_v18 = vpack.c.bf16 %v3666_v21, %v3662_v61  ;;  %v8168_v34 = vpop.eup %5762  ;;  %4267 = vmatpush1.bf16.msra.mxu0 %v5673_v15  ;;  %v3527_v55 = vmul.f32 %v8090_v0, %v3442_v54  ;;  %v3616_v50 = vadd.f32 %v8104_v52, %v3531_v27 }
 0x769   : > { %5768 = vrsqrt.f32 %v3401_v7  ;;  %v3356_v12 = vpop.xlane.xlu1 %3355  ;;  %4193 = vmatprep.mubr.bf16.mxu0 %v3728_v17  ;;  %v3526_v44 = vmul.f32 %v8081_v47, %v3441_v4  ;;  %4268 = vmatprep.subr.bf16.mxu0 %v5678_v43  ;;  %v3454_v61 = vmul.f32 %v8168_v34, %v7880_v1  ;;  %v3453_v60 = vmul.f32 %v8168_v34, %v7877_v10 }
 0x76a   : > { %v3388_v6 = vmul.f32 0.001953125, %v3356_v12  ;;  %v3615_v8 = vadd.f32 %v8095_v25, %v3530_v13  ;;  %v3427_v15 = vmul.f32 %v8106_v35, %v7779_v41  ;;  %v3612_v46 = vadd.f32 %v8104_v52, %v3527_v55  ;;  %v5679_v41 = vld [vmem:[#allocation23 + $0x130] ss:$8 sps:$4 sm:$0xff]   ;;  %v5684_v12 = vld [vmem:[#allocation23 + $0x144] ss:$8 sps:$4 sm:$0xff]  }
 0x76b   : > { %v3351_v29 = vpop.xlane.xlu0 %3350  ;;  %v3680_v7 = vmax.f32 %v3616_v50, 0.0  ;;  %v3611_v32 = vadd.f32 %v8095_v25, %v3526_v44  ;;  %4194 = vmatmul.mubr.bf16.gmra.mrb[8].mxu0 %v3727_v24  ;;  %v3539_v1 = vmul.f32 %v8090_v0, %v3454_v61  ;;  %v3538_v54 = vmul.f32 %v8081_v47, %v3453_v60 }
 0x76c   : > { %v3404_v51 = vadd.f32 1e-05, %v3388_v6  ;;  %v8182_v43 = vpop.eup %5764  ;;  %v3387_v21 = vmul.f32 0.001953125, %v3351_v29  ;;  %v3679_v17 = vmax.f32 %v3615_v8, 0.0  ;;  %4269 = vmatpush1.bf16.msra.mxu0 %v5676_v56  ;;  %v3676_v10 = vmax.f32 %v3612_v46, 0.0 }
 0x76d   : > { %v3675_v35 = vmax.f32 %v3611_v32, 0.0  ;;  %v3450_v27 = vmul.f32 %v8182_v43, %v7894_v45  ;;  %4270 = vmatprep.subr.bf16.mxu0 %v5681_v26  ;;  %v3624_v13 = vadd.f32 %v8104_v52, %v3539_v1  ;;  %v3449_v24 = vmul.f32 %v8182_v43, %v7891_v28  ;;  %v5682_v28 = vld [vmem:[#allocation23 + $0x140] ss:$8 sps:$4 sm:$0xff]  }
 0x76e   : > { %5770 = vrsqrt.f32 %v3404_v51  ;;  %v3403_v4 = vadd.f32 1e-05, %v3387_v21  ;;  %v3623_v6 = vadd.f32 %v8095_v25, %v3538_v54  ;;  %v3732_v50 = vpack.c.bf16 %v3680_v7, %v3676_v10 }
 0x76f   : > { %v3731_v44 = vpack.c.bf16 %v3679_v17, %v3675_v35  ;;  %v3535_v56 = vmul.f32 %v8090_v0, %v3450_v27  ;;  %v3431_v8 = vmul.f32 %v8092_v38, %v7767_v14  ;;  %v3688_v60 = vmax.f32 %v3624_v13, 0.0  ;;  %v5687_v38 = vld [vmem:[#allocation23 + $0x154] ss:$8 sps:$4 sm:$0xff]  }
 0x770   : > { %v3366_v55 = vpop.xlane.xlu1 %3365  ;;  %5772 = vrsqrt.f32 %v3403_v4  ;;  %v3534_v51 = vmul.f32 %v8081_v47, %v3449_v24  ;;  %4203 = vmatprep.mubr.bf16.mxu0 %v3732_v50  ;;  %4271 = vmatpush1.bf16.msra.mxu0 %v5679_v41  ;;  %v3687_v7 = vmax.f32 %v3623_v6, 0.0  ;;  %v3512_v54 = vmul.f32 %v8084_v57, %v3427_v15  ;;  %v5685_v15 = vld [vmem:[#allocation23 + $0x150] ss:$8 sps:$4 sm:$0xff]  }
 0x771   : > { %v8195_v61 = vpop.eup %5766  ;;  %v3390_v45 = vmul.f32 0.001953125, %v3366_v55  ;;  %v3620_v46 = vadd.f32 %v8104_v52, %v3535_v56  ;;  %4272 = vmatprep.subr.bf16.mxu0 %v5684_v12  ;;  %v5690_v55 = vld [vmem:[#allocation23 + $0x164] ss:$8 sps:$4 sm:$0xff]  }
 0x772   : > { %v3361_v26 = vpop.xlane.xlu0 %3360  ;;  %v3462_v32 = vmul.f32 %v8195_v61, %v7922_v9  ;;  %v3619_v17 = vadd.f32 %v8095_v25, %v3534_v51  ;;  %v3461_v1 = vmul.f32 %v8195_v61, %v7919_v36  ;;  %v3516_v51 = vmul.f32 %v8084_v57, %v3431_v8 }
 0x773   : > { %v3389_v29 = vmul.f32 0.001953125, %v3361_v26  ;;  %v8201_v21 = vpop.eup %5768  ;;  %v3406_v14 = vadd.f32 1e-05, %v3390_v45  ;;  %v3684_v41 = vmax.f32 %v3620_v46, 0.0  ;;  %4204 = vmatmul.mubr.bf16.gmra.mrb[12].mxu0 %v3731_v44 }
 0x774   : > { %v3458_v35 = vmul.f32 %v8201_v21, %v7931_v53  ;;  %v3547_v27 = vmul.f32 %v8090_v0, %v3462_v32  ;;  %v3683_v9 = vmax.f32 %v3619_v17, 0.0  ;;  %v3457_v4 = vmul.f32 %v8201_v21, %v7928_v23  ;;  %4273 = vmatpush1.bf16.msra.mxu0 %v5682_v28 }
 0x775   : > { %v3405_v10 = vadd.f32 1e-05, %v3389_v29  ;;  %5774 = vrsqrt.f32 %v3406_v14  ;;  %v3546_v12 = vmul.f32 %v8081_v47, %v3461_v1  ;;  %v3736_v36 = vpack.c.bf16 %v3688_v60, %v3684_v41  ;;  %4274 = vmatprep.subr.bf16.mxu0 %v5687_v38  ;;  %v5688_v14 = vld [vmem:[#allocation23 + $0x160] ss:$8 sps:$4 sm:$0xff]  }
 0x776   : > { %v3543_v24 = vmul.f32 %v8090_v0, %v3458_v35  ;;  %v3632_v6 = vadd.f32 %v8104_v52, %v3547_v27  ;;  %v3735_v50 = vpack.c.bf16 %v3687_v7, %v3683_v9  ;;  %v3542_v44 = vmul.f32 %v8081_v47, %v3457_v4 }
 0x777   : > { %5776 = vrsqrt.f32 %v3405_v10  ;;  %v3376_v13 = vpop.xlane.xlu1 %3375  ;;  %v3631_v56 = vadd.f32 %v8095_v25, %v3546_v12  ;;  %4213 = vmatprep.mubr.bf16.mxu0 %v3736_v36  ;;  %v3597_v29 = vadd.f32 %v8098_v19, %v3512_v54  ;;  %v3601_v10 = vadd.f32 %v8098_v19, %v3516_v51  ;;  %v5693_v54 = vld [vmem:[#allocation23 + $0x174] ss:$8 sps:$4 sm:$0xff]  }
 0x778   : > { %v3392_v53 = vmul.f32 0.001953125, %v3376_v13  ;;  %v8217_v23 = vpop.eup %5770  ;;  %v3628_v26 = vadd.f32 %v8104_v52, %v3543_v24  ;;  %v3696_v60 = vmax.f32 %v3632_v6, 0.0  ;;  %v3627_v32 = vadd.f32 %v8095_v25, %v3542_v44  ;;  %4275 = vmatpush1.bf16.msra.mxu0 %v5685_v15  ;;  %v5691_v15 = vld [vmem:[#allocation23 + $0x170] ss:$8 sps:$4 sm:$0xff]  }
 0x779   : > { %v3371_v45 = vpop.xlane.xlu0 %3370  ;;  %v3695_v7 = vmax.f32 %v3631_v56, 0.0  ;;  %v3470_v17 = vmul.f32 %v8217_v23, %v7964_v5  ;;  %v3469_v1 = vmul.f32 %v8217_v23, %v7961_v39  ;;  %4276 = vmatprep.subr.bf16.mxu0 %v5690_v55  ;;  %v3661_v27 = vmax.f32 %v3597_v29, 0.0  ;;  %v5696_v55 = vld [vmem:[#allocation23 + $0x184] ss:$8 sps:$4 sm:$0xff]  }
 0x77a   : > { %v3408_v28 = vadd.f32 1e-05, %v3392_v53  ;;  %v3391_v46 = vmul.f32 0.001953125, %v3371_v45  ;;  %v3692_v38 = vmax.f32 %v3628_v26, 0.0  ;;  %v8228_v41 = vpop.eup %5772  ;;  %v3691_v35 = vmax.f32 %v3627_v32, 0.0  ;;  %v8806_v44 = vld [vmem:[#allocation66_spill] sm:$0xff] }
 0x77b   : > { %v3466_v4 = vmul.f32 %v8228_v41, %v7976_v49  ;;  %v3555_v12 = vmul.f32 %v8090_v0, %v3470_v17  ;;  %v3465_v5 = vmul.f32 %v8228_v41, %v7973_v31  ;;  %4214 = vmatmul.mubr.bf16.gmra.mrb[16].mxu0 %v3735_v50  ;;  %v3554_v13 = vmul.f32 %v8081_v47, %v3469_v1  ;;  %v8807_v45 = vld [vmem:[#allocation51_spill] sm:$0xff]  ;;  %v5694_v17 = vld [vmem:[#allocation23 + $0x180] ss:$8 sps:$4 sm:$0xff]  }
 0x77c   : > { %5778 = vrsqrt.f32 %v3408_v28  ;;  %v3407_v8 = vadd.f32 1e-05, %v3391_v46  ;;  %v3740_v9 = vpack.c.bf16 %v3696_v60, %v3692_v38  ;;  %v3739_v39 = vpack.c.bf16 %v3695_v7, %v3691_v35  ;;  %4277 = vmatpush1.bf16.msra.mxu0 %v5688_v14 }
 0x77d   : > { %v3665_v36 = vmax.f32 %v3601_v10, 0.0  ;;  %v3551_v24 = vmul.f32 %v8090_v0, %v3466_v4  ;;  %v3640_v6 = vadd.f32 %v8104_v52, %v3555_v12  ;;  %v3550_v49 = vmul.f32 %v8081_v47, %v3465_v5  ;;  %4278 = vmatprep.subr.bf16.mxu0 %v5693_v54 }
 0x77e   : > { %5780 = vrsqrt.f32 %v3407_v8  ;;  %4223 = vmatprep.mubr.bf16.mxu0 %v3740_v9  ;;  %v3639_v31 = vadd.f32 %v8095_v25, %v3554_v13  ;;  %v3436_v56 = vmul.f32 %v8134_v62, %v8806_v44  ;;  %v3440_v26 = vmul.f32 %v8125_v3, %v8807_v45 }
 0x77f   : > { %v8239_v53 = vpop.eup %5774  ;;  %v8242_v50 = vpack.c.bf16 %v3665_v36, %v3661_v27  ;;  %v3636_v51 = vadd.f32 %v8104_v52, %v3551_v24  ;;  %v3704_v29 = vmax.f32 %v3640_v6, 0.0  ;;  %v3635_v28 = vadd.f32 %v8095_v25, %v3550_v49  ;;  %v5697_v6 = vld [vmem:[#allocation23 + $0x190] ss:$8 sps:$4 sm:$0xff]  }
 0x780   : > { %v3478_v46 = vmul.f32 %v8239_v53, %v8000_v33  ;;  %v3703_v32 = vmax.f32 %v3639_v31, 0.0  ;;  %v3477_v38 = vmul.f32 %v8239_v53, %v7997_v30  ;;  %4279 = vmatpush1.bf16.msra.mxu0 %v5691_v15  ;;  %v3521_v54 = vmul.f32 %v8087_v48, %v3436_v56  ;;  %v5699_v33 = vld [vmem:[#allocation23 + $0x194] ss:$8 sps:$4 sm:$0xff]   ;;  %v5702_v56 = vld [vmem:[#allocation23 + $0x1a4] ss:$8 sps:$4 sm:$0xff]  }
 0x781   : > { %v8248_v60 = vpop.eup %5776  ;;  %v3700_v1 = vmax.f32 %v3636_v51, 0.0  ;;  %v3699_v10 = vmax.f32 %v3635_v28, 0.0  ;;  %4280 = vmatprep.subr.bf16.mxu0 %v5696_v55 }
 0x782   : > { %v3474_v7 = vmul.f32 %v8248_v60, %v8014_v58  ;;  %v3473_v14 = vmul.f32 %v8248_v60, %v8011_v42  ;;  %v3563_v8 = vmul.f32 %v8090_v0, %v3478_v46  ;;  %v3562_v27 = vmul.f32 %v8081_v47, %v3477_v38  ;;  %v8808_v38 = vld [vmem:[#allocation52_spill] sm:$0xff] }
 0x783   : > { %v3525_v42 = vmul.f32 %v8087_v48, %v3440_v26  ;;  %v3744_v9 = vpack.c.bf16 %v3704_v29, %v3700_v1  ;;  %v3743_v30 = vpack.c.bf16 %v3703_v32, %v3699_v10  ;;  %v3606_v12 = vadd.f32 %v8101_v63, %v3521_v54  ;;  %4224 = vmatmul.mubr.bf16.gmra.mrb[20].mxu0 %v3739_v39  ;;  %v5700_v1 = vld [vmem:[#allocation23 + $0x1a0] ss:$8 sps:$4 sm:$0xff]  }
 0x784   : > { %v3559_v35 = vmul.f32 %v8090_v0, %v3474_v7  ;;  %v3558_v58 = vmul.f32 %v8081_v47, %v3473_v14  ;;  %v3648_v4 = vadd.f32 %v8104_v52, %v3563_v8  ;;  %v3647_v15 = vadd.f32 %v8095_v25, %v3562_v27  ;;  %4281 = vmatpush1.bf16.msra.mxu0 %v5694_v17  ;;  %v8810_v27 = vld [vmem:[#allocation64_spill] sm:$0xff] }
 0x785   : > { %v3610_v24 = vadd.f32 %v8101_v63, %v3525_v42  ;;  %4233 = vmatprep.mubr.bf16.mxu0 %v3744_v9  ;;  %v3670_v44 = vmax.f32 %v3606_v12, 0.0  ;;  %4282 = vmatprep.subr.bf16.mxu0 %v5699_v33  ;;  %v3435_v17 = vmul.f32 %v8134_v62, %v8808_v38  ;;  %v8809_v33 = vld [vmem:[#allocation61_spill] sm:$0xff]  ;;  %v3444_v62 = vmul.f32 %v8158_v20, %v8810_v27 }
 0x786   : > { %v8268_v5 = vpop.eup %5778  ;;  %v3644_v13 = vadd.f32 %v8104_v52, %v3559_v35  ;;  %v3643_v36 = vadd.f32 %v8095_v25, %v3558_v58  ;;  %v3712_v49 = vmax.f32 %v3648_v4, 0.0  ;;  %v3711_v51 = vmax.f32 %v3647_v15, 0.0  ;;  %v8811_v42 = vld [vmem:[#allocation49_spill] sm:$0xff] }
 0x787   : > { %v3486_v55 = vmul.f32 %v8268_v5, %v8042_v59  ;;  %v3485_v31 = vmul.f32 %v8268_v5, %v8039_v2  ;;  %v3674_v29 = vmax.f32 %v3610_v24, 0.0  ;;  %v3439_v35 = vmul.f32 %v8125_v3, %v8809_v33  ;;  %v5703_v24 = vld [vmem:[#allocation23 + $0x1b0] ss:$8 sps:$4 sm:$0xff]   ;;  %v5706_v38 = vld [vmem:[#allocation23 + $0x1c0] ss:$8 sps:$4 sm:$0xff]  }
 0x788   : > { %v8278_v39 = vpop.eup %5780  ;;  %v3708_v45 = vmax.f32 %v3644_v13, 0.0  ;;  %v3707_v26 = vmax.f32 %v3643_v36, 0.0  ;;  %4283 = vmatpush1.bf16.msra.mxu0 %v5697_v6  ;;  %v3520_v58 = vmul.f32 %v8084_v57, %v3435_v17  ;;  %v3448_v9 = vmul.f32 %v8151_v11, %v8811_v42  ;;  %v8817_v27 = vld [vmem:[#allocation65_spill] sm:$0xff] }
 0x789   : > { %v3482_v28 = vmul.f32 %v8278_v39, %v8051_v37  ;;  %v3571_v46 = vmul.f32 %v8090_v0, %v3486_v55  ;;  %v3481_v59 = vmul.f32 %v8278_v39, %v8048_v16  ;;  %v3570_v32 = vmul.f32 %v8081_v47, %v3485_v31  ;;  %4284 = vmatprep.subr.bf16.mxu0 %v5702_v56  ;;  %v5705_v16 = vld [vmem:[#allocation23 + $0x1b4] ss:$8 sps:$4 sm:$0xff]   ;;  %v8812_v55 = vld [vmem:[#allocation50_spill] sm:$0xff] }
 0x78a   : > { %v3748_v2 = vpack.c.bf16 %v3712_v49, %v3708_v45  ;;  %v3747_v7 = vpack.c.bf16 %v3711_v51, %v3707_v26  ;;  %v8286_v14 = vpack.c.bf16 %v3674_v29, %v3670_v44  ;;  %v3524_v13 = vmul.f32 %v8084_v57, %v3439_v35  ;;  %v8813_v31 = vld [vmem:[#allocation67_spill] sm:$0xff] }
 0x78b   : > { %v3567_v10 = vmul.f32 %v8090_v0, %v3482_v28  ;;  %v3656_v37 = vadd.f32 %v8104_v52, %v3571_v46  ;;  %v3566_v8 = vmul.f32 %v8081_v47, %v3481_v59  ;;  %v3655_v54 = vadd.f32 %v8095_v25, %v3570_v32  ;;  %4234 = vmatmul.mubr.bf16.gmra.mrb[24].mxu0 %v3743_v30  ;;  %v5708_v30 = vld [vmem:[#allocation23 + $0x1c4] ss:$8 sps:$4 sm:$0xff]  }
 0x78c   : > { %v3605_v36 = vadd.f32 %v8098_v19, %v3520_v58  ;;  %v3529_v3 = vmul.f32 %v8087_v48, %v3444_v62  ;;  %v3533_v15 = vmul.f32 %v8087_v48, %v3448_v9  ;;  %4285 = vmatpush1.bf16.msra.mxu0 %v5700_v1  ;;  %4243 = vmatprep.mubr.bf16.mxu0 %v3748_v2 }
 0x78d   : > { %v3652_v0 = vadd.f32 %v8104_v52, %v3567_v10  ;;  %v3720_v4 = vmax.f32 %v3656_v37, 0.0  ;;  %v3651_v47 = vadd.f32 %v8095_v25, %v3566_v8  ;;  %v3719_v12 = vmax.f32 %v3655_v54, 0.0  ;;  %4286 = vmatprep.subr.bf16.mxu0 %v5705_v16  ;;  %v8815_v10 = vld [vmem:[#allocation55_spill] sm:$0xff]  ;;  %v8816_v8 = vld [vmem:[#allocation56_spill] sm:$0xff] }
 0x78e   : > { %v3443_v52 = vmul.f32 %v8158_v20, %v8812_v55  ;;  %v3447_v25 = vmul.f32 %v8151_v11, %v8813_v31  ;;  %v3609_v44 = vadd.f32 %v8098_v19, %v3524_v13  ;;  %v3669_v56 = vmax.f32 %v3605_v36, 0.0  ;;  %v8814_v11 = vld [vmem:[#allocation70_spill] sm:$0xff]  ;;  %v5711_v16 = vld [vmem:[#allocation23 + $0x1d4] ss:$8 sps:$4 sm:$0xff]  }
 0x78f   : > { %v3716_v6 = vmax.f32 %v3652_v0, 0.0  ;;  %v3715_v49 = vmax.f32 %v3651_v47, 0.0  ;;  %v3614_v45 = vadd.f32 %v8101_v63, %v3529_v3  ;;  %v3618_v26 = vadd.f32 %v8101_v63, %v3533_v15  ;;  %v8819_v36 = vld [vmem:[#allocation54_spill] sm:$0xff] }
 0x790   : > { %v3528_v28 = vmul.f32 %v8084_v57, %v3443_v52  ;;  %v3532_v46 = vmul.f32 %v8084_v57, %v3447_v25  ;;  %v3673_v20 = vmax.f32 %v3609_v44, 0.0  ;;  %v3452_v2 = vmul.f32 %v8182_v43, %v8814_v11  ;;  %4287 = vmatpush1.bf16.msra.mxu0 %v5703_v24  ;;  %v8820_v44 = vld [vmem:[#allocation71_spill] sm:$0xff] }
 0x791   : > { %v3752_v51 = vpack.c.bf16 %v3720_v4, %v3716_v6  ;;  %v8314_v29 = vpack.c.bf16 %v3719_v12, %v3715_v49  ;;  %v3678_v59 = vmax.f32 %v3614_v45, 0.0  ;;  %v3682_v32 = vmax.f32 %v3618_v26, 0.0  ;;  %4288 = vmatprep.subr.bf16.mxu0 %v5708_v30  ;;  %v8818_v12 = vld [vmem:[#allocation68_spill] sm:$0xff]  ;;  %v8821_v45 = vld [vmem:[#allocation53_spill] sm:$0xff] }
 0x792   : > { %v3613_v17 = vadd.f32 %v8098_v19, %v3528_v28  ;;  %v3617_v1 = vadd.f32 %v8098_v19, %v3532_v46  ;;  %v3456_v37 = vmul.f32 %v8168_v34, %v8815_v10  ;;  %v3451_v54 = vmul.f32 %v8182_v43, %v8816_v8 }
 0x793   : > { %v8326_v33 = vpack.c.bf16 %v3673_v20, %v3669_v56  ;;  %v8328_v35 = vpack.c.bf16 %v3682_v32, %v3678_v59  ;;  %v3537_v58 = vmul.f32 %v8087_v48, %v3452_v2  ;;  %v3455_v62 = vmul.f32 %v8168_v34, %v8817_v27  ;;  %4244 = vmatmul.mubr.bf16.gmra.mrb[28].mxu0 %v3747_v7  ;;  %v5709_v34 = vld [vmem:[#allocation23 + $0x1d0] ss:$8 sps:$4 sm:$0xff]   ;;  %v5714_v7 = vld [vmem:[#allocation23 + $0x1e4] ss:$8 sps:$4 sm:$0xff]   ;;  %v5712_v59 = vld [vmem:[#allocation23 + $0x1e0] ss:$8 sps:$4 sm:$0xff]  }
 0x794   : > { %v3677_v42 = vmax.f32 %v3613_v17, 0.0  ;;  %v3681_v9 = vmax.f32 %v3617_v1, 0.0  ;;  %v3541_v0 = vmul.f32 %v8087_v48, %v3456_v37  ;;  %v3536_v4 = vmul.f32 %v8084_v57, %v3451_v54  ;;  %4289 = vmatpush1.bf16.msra.mxu0 %v5706_v38  ;;  %4253 = vmatprep.mubr.bf16.mxu0 %v3752_v51 }
 0x795   : > { %v3622_v43 = vadd.f32 %v8101_v63, %v3537_v58  ;;  %v3540_v47 = vmul.f32 %v8084_v57, %v3455_v62  ;;  %v3460_v13 = vmul.f32 %v8201_v21, %v8818_v12  ;;  %v3464_v3 = vmul.f32 %v8195_v61, %v8819_v36  ;;  %4290 = vmatprep.subr.bf16.mxu0 %v5711_v16  ;;  %v8823_v16 = vld [vmem:[#allocation76_spill] sm:$0xff]  ;;  %v8825_v36 = vld [vmem:[#allocation43_spill] sm:$0xff] }
 0x796   : > { %v8341_v15 = vpack.c.bf16 %v3681_v9, %v3677_v42  ;;  %v3626_v24 = vadd.f32 %v8101_v63, %v3541_v0  ;;  %v3621_v6 = vadd.f32 %v8098_v19, %v3536_v4  ;;  %v3459_v56 = vmul.f32 %v8201_v21, %v8820_v44  ;;  %v8822_v21 = vld [vmem:[#allocation75_spill] sm:$0xff]  ;;  %v8824_v42 = vld [vmem:[#allocation69_spill] sm:$0xff] }
 0x797   : > { %v3686_v49 = vmax.f32 %v3622_v43, 0.0  ;;  %v3625_v55 = vadd.f32 %v8098_v19, %v3540_v47  ;;  %v3545_v52 = vmul.f32 %v8087_v48, %v3460_v13  ;;  %v3549_v31 = vmul.f32 %v8087_v48, %v3464_v3  ;;  %v5715_v4 = vld [vmem:[#allocation23 + $0x1f0] ss:$8 sps:$4 sm:$0xff]  }
 0x798   : > { %v3690_v25 = vmax.f32 %v3626_v24, 0.0  ;;  %v3685_v30 = vmax.f32 %v3621_v6, 0.0  ;;  %v3463_v26 = vmul.f32 %v8195_v61, %v8821_v45  ;;  %v3468_v20 = vmul.f32 %v8228_v41, %v7994_v40  ;;  %4291 = vmatpush1.bf16.msra.mxu0 %v5709_v34  ;;  %v5717_v61 = vld [vmem:[#allocation23 + $0x1f4] ss:$8 sps:$4 sm:$0xff]  }
 0x799   : > { %v3689_v51 = vmax.f32 %v3625_v55, 0.0  ;;  %v3630_v28 = vadd.f32 %v8101_v63, %v3545_v52  ;;  %v3634_v46 = vadd.f32 %v8101_v63, %v3549_v31  ;;  %v3544_v11 = vmul.f32 %v8084_v57, %v3459_v56  ;;  %4292 = vmatprep.subr.bf16.mxu0 %v5714_v7  ;;  %v8826_v24 = vld [vmem:[#allocation44_spill] sm:$0xff]  ;;  %v8827_v52 = vld [vmem:[#allocation77_spill] sm:$0xff] }
 0x79a   : > { %v8356_v32 = vpack.c.bf16 %v3690_v25, %v3686_v49  ;;  %v3548_v2 = vmul.f32 %v8084_v57, %v3463_v26  ;;  %v3472_v38 = vmul.f32 %v8217_v23, %v8822_v21  ;;  %v3553_v37 = vmul.f32 %v8087_v48, %v3468_v20  ;;  %v8828_v56 = vld [vmem:[#allocation57_spill] sm:$0xff]  ;;  %v8829_v20 = vld [vmem:[#allocation58_spill] sm:$0xff] }
 0x79b   : > { %v8362_v17 = vpack.c.bf16 %v3689_v51, %v3685_v30  ;;  %v3694_v1 = vmax.f32 %v3630_v28, 0.0  ;;  %v3698_v10 = vmax.f32 %v3634_v46, 0.0  ;;  %v3629_v40 = vadd.f32 %v8098_v19, %v3544_v11  ;;  %4254 = vmatmul.mubr.bf16.gmra.mrb[32].mxu0 %v8314_v29  ;;  %v8830_v11 = vld [vmem:[#allocation78_spill] sm:$0xff] }
 0x79c   : > { %v3633_v8 = vadd.f32 %v8098_v19, %v3548_v2  ;;  %v3557_v54 = vmul.f32 %v8087_v48, %v3472_v38  ;;  %v3467_v58 = vmul.f32 %v8228_v41, %v8823_v16  ;;  %v3638_v62 = vadd.f32 %v8101_v63, %v3553_v37  ;;  %4293 = vmatpush1.bf16.msra.mxu0 %v5712_v59 }
 0x79d   : > { %v8371_v27 = vpack.c.bf16 %v3698_v10, %v3694_v1  ;;  %v3471_v9 = vmul.f32 %v8217_v23, %v8824_v42  ;;  %v3476_v0 = vmul.f32 %v8248_v60, %v8026_v22  ;;  %4296 = vmatprep.mubr.bf16.mxu0 %v8166_v18  ;;  %v3693_v43 = vmax.f32 %v3629_v40, 0.0  ;;  %4294 = vmatprep.subr.bf16.mxu0 %v5717_v61  ;;  %v8831_v1 = vld [vmem:[#allocation59_spill] sm:$0xff] }
 0x79e   : > { %v3697_v47 = vmax.f32 %v3633_v8, 0.0  ;;  %v3642_v41 = vadd.f32 %v8101_v63, %v3557_v54  ;;  %v3552_v29 = vmul.f32 %v8084_v57, %v3467_v58  ;;  %v3702_v12 = vmax.f32 %v3638_v62, 0.0 }
 0x79f   : > { %v3556_v13 = vmul.f32 %v8084_v57, %v3471_v9  ;;  %v3480_v23 = vmul.f32 %v8239_v53, %v8825_v36  ;;  %v3561_v3 = vmul.f32 %v8087_v48, %v3476_v0  ;;  %v3475_v6 = vmul.f32 %v8248_v60, %v8826_v24 }
 0x7a0   : > { %v3741_v22 = vpack.c.bf16 %v3697_v47, %v3693_v43  ;;  %v3706_v34 = vmax.f32 %v3642_v41, 0.0  ;;  %v3637_v18 = vadd.f32 %v8098_v19, %v3552_v29  ;;  %v3479_v31 = vmul.f32 %v8239_v53, %v8827_v52  ;;  %4295 = vmatpush1.bf16.msra.mxu0 %v5715_v4 }
 0x7a1   : > { %v3641_v7 = vadd.f32 %v8098_v19, %v3556_v13  ;;  %v3565_v49 = vmul.f32 %v8087_v48, %v3480_v23  ;;  %v3646_v55 = vadd.f32 %v8101_v63, %v3561_v3  ;;  %v3560_v44 = vmul.f32 %v8084_v57, %v3475_v6 }
 0x7a2   : > { %v3746_v25 = vpack.c.bf16 %v3706_v34, %v3702_v12  ;;  %v3701_v30 = vmax.f32 %v3637_v18, 0.0  ;;  %v3484_v45 = vmul.f32 %v8278_v39, %v8828_v56  ;;  %v3564_v28 = vmul.f32 %v8084_v57, %v3479_v31 }
 0x7a3   : > { %v3705_v26 = vmax.f32 %v3641_v7, 0.0  ;;  %v3650_v60 = vadd.f32 %v8101_v63, %v3565_v49  ;;  %v3710_v51 = vmax.f32 %v3646_v55, 0.0  ;;  %v3645_v46 = vadd.f32 %v8098_v19, %v3560_v44  ;;  %4297 = vmatmul.mubr.bf16.vlgmr.msra.gmra.mrb[4].mxu0 %v8242_v50 }
 0x7a4   : > { %v3488_v59 = vmul.f32 %v8268_v5, %v8829_v20  ;;  %v3569_v53 = vmul.f32 %v8087_v48, %v3484_v45  ;;  %v3483_v2 = vmul.f32 %v8278_v39, %v8830_v11  ;;  %v3649_v61 = vadd.f32 %v8098_v19, %v3564_v28  ;;  %4306 = vmatprep.mubr.bf16.mxu0 %v8286_v14 }
 0x7a5   : > { %v3745_v21 = vpack.c.bf16 %v3705_v26, %v3701_v30  ;;  %v3714_v38 = vmax.f32 %v3650_v60, 0.0  ;;  %v3487_v10 = vmul.f32 %v8268_v5, %v8831_v1  ;;  %v3709_v37 = vmax.f32 %v3645_v46, 0.0 }
 0x7a6   : > { %v3573_v40 = vmul.f32 %v8087_v48, %v3488_v59  ;;  %v3654_v8 = vadd.f32 %v8101_v63, %v3569_v53  ;;  %v3568_v54 = vmul.f32 %v8084_v57, %v3483_v2  ;;  %v3713_v39 = vmax.f32 %v3649_v61, 0.0 }
 0x7a7   : > { %v3750_v16 = vpack.c.bf16 %v3714_v38, %v3710_v51  ;;  %v3572_v50 = vmul.f32 %v8084_v57, %v3487_v10  ;;  %v3819_v57 = vld [vmem:[#allocation25] sm:$0x3] }
 0x7a8   : > { %v3658_v58 = vadd.f32 %v8101_v63, %v3573_v40  ;;  %v3718_v62 = vmax.f32 %v3654_v8, 0.0  ;;  %v3653_v42 = vadd.f32 %v8098_v19, %v3568_v54  ;;  %v3749_v9 = vpack.c.bf16 %v3713_v39, %v3709_v37  ;;  %v8440_v54 = vld [vmem:[#allocation5] sm:$0xff] }
 0x7a9   : > { %v3657_v5 = vadd.f32 %v8098_v19, %v3572_v50  ;;  %v8832_v19 = vld [vmem:[#allocation41_spill] sm:$0xff] }
 0x7aa   : > { %v3722_v14 = vmax.f32 %v3658_v58, 0.0  ;;  %v3717_v0 = vmax.f32 %v3653_v42, 0.0  ;;  %v8423_v63 = vrot.slane %v3819_v57, %v8832_v19  ;;  %v8442_v58 = vld [vmem:[#allocation5 + $0x8] sm:$0xff]  ;;  %v4493_v42 = vrot.slane %v8440_v54, 1 }
 0x7ab   : > { %v3721_v4 = vmax.f32 %v3657_v5, 0.0  ;;  %4307 = vmatmul.mubr.bf16.gmra.mrb[8].mxu0 %v8326_v33 }
 0x7ac   : > { %v3754_v48 = vpack.c.bf16 %v3722_v14, %v3718_v62  ;;  %4316 = vmatprep.mubr.bf16.mxu0 %v8328_v35  ;;  %v8833_v35 = vld [vmem:[#allocation42_spill] sm:$0xff]  ;;  %v4494_v14 = vrot.slane %v8442_v58, 1 }
 0x7ad   : > { %v3753_v43 = vpack.c.bf16 %v3721_v4, %v3717_v0 }
 0x7b3   : > { %4317 = vmatmul.mubr.bf16.gmra.mrb[12].mxu0 %v8341_v15  ;;  %v8426_v15 = vrot.slane %v3819_v57, %v8833_v35 }
 0x7b4   : > { %4326 = vmatprep.mubr.bf16.mxu0 %v8356_v32 }
 0x7bb   : > { %4327 = vmatmul.mubr.bf16.gmra.mrb[16].mxu0 %v8362_v17 }
 0x7bc   : > { %4336 = vmatprep.mubr.bf16.mxu0 %v8371_v27 }
 0x7c3   : > { %4337 = vmatmul.mubr.bf16.gmra.mrb[20].mxu0 %v3741_v22 }
 0x7c4   : > { %4346 = vmatprep.mubr.bf16.mxu0 %v3746_v25 }
 0x7cb   : > { %4347 = vmatmul.mubr.bf16.gmra.mrb[24].mxu0 %v3745_v21 }
 0x7cc   : > { %4356 = vmatprep.mubr.bf16.mxu0 %v3750_v16 }
 0x7d3   : > { %4357 = vmatmul.mubr.bf16.gmra.mrb[28].mxu0 %v3749_v9 }
 0x7d4   : > { %4366 = vmatprep.mubr.bf16.mxu0 %v3754_v48 }
 0x7db   : > { %4367 = vmatmul.mubr.bf16.gmra.mrb[32].mxu0 %v3753_v43 }
 0x876   : > { %v4298_v33 = vpop.f32.mrb[4].mxu0 }
 0x877   : > { %v4300_v32 = vpop.f32.mrb[5].mxu0  ;;  %v5133_v17 = vadd.f32 %v4298_v33, %v8423_v63 }
 0x878   : > { %v4302_v47 = vpop.f32.mrb[6].mxu0  ;;  %v5134_v29 = vadd.f32 %v4300_v32, %v8426_v15 }
 0x879   : > { %v5135_v27 = vadd.f32 %v4302_v47, %v8423_v63  ;;  %v4304_v41 = vpop.f32.mrb[7].mxu0 }
 0x87a   : > { %v5136_v12 = vadd.f32 %v4304_v41, %v8426_v15 }
 0x87b   : > { %v4377_v13 = vmax.f32 %v5133_v17, %v5135_v27 }
 0x87c   : > { %v4384_v36 = vmax.f32 %v5134_v29, %v5136_v12 }
 0x87d   : > { %v4378_v23 = vrot.slane %v4377_v13, 4 }
 0x87e   : > { %v4385_v3 = vrot.slane %v4384_v36, 4  ;;  %v4308_v22 = vpop.f32.mrb[8].mxu0 }
 0x87f   : > { %v4379_v34 = vmax.f32 %v4377_v13, %v4378_v23  ;;  %v4310_v18 = vpop.f32.mrb[9].mxu0  ;;  %v5137_v7 = vadd.f32 %v4308_v22, %v8423_v63 }
 0x880   : > { %v4386_v24 = vmax.f32 %v4384_v36, %v4385_v3  ;;  %v4312_v6 = vpop.f32.mrb[10].mxu0  ;;  %v5138_v52 = vadd.f32 %v4310_v18, %v8426_v15 }
 0x881   : > { %v5139_v49 = vadd.f32 %v4312_v6, %v8423_v63  ;;  %v4314_v55 = vpop.f32.mrb[11].mxu0  ;;  %v4380_v25 = vrot.slane %v4379_v34, 2 }
 0x882   : > { %v5140_v31 = vadd.f32 %v4314_v55, %v8426_v15  ;;  %v4387_v44 = vrot.slane %v4386_v24, 2 }
 0x883   : > { %v4391_v30 = vmax.f32 %v5137_v7, %v5139_v49  ;;  %v4381_v51 = vmax.f32 %v4379_v34, %v4380_v25  ;;  %v4495_v25 = vrot.slane %v8440_v54, 2 }
 0x884   : > { %v4398_v56 = vmax.f32 %v5138_v52, %v5140_v31  ;;  %v4388_v20 = vmax.f32 %v4386_v24, %v4387_v44 }
 0x885   : > { %v4392_v45 = vrot.slane %v4391_v30, 4  ;;  %v4382_v37 = vrot.slane %v4381_v51, 1 }
 0x886   : > { %v4399_v26 = vrot.slane %v4398_v56, 4  ;;  %v4318_v60 = vpop.f32.mrb[12].mxu0  ;;  %v4389_v16 = vrot.slane %v4388_v20, 1 }
 0x887   : > { %v4393_v28 = vmax.f32 %v4391_v30, %v4392_v45  ;;  %v4320_v46 = vpop.f32.mrb[13].mxu0  ;;  %v5141_v2 = vadd.f32 %v4318_v60, %v8423_v63  ;;  %v4383_v48 = vmax.f32 %v4381_v51, %v4382_v37  ;;  %v4496_v45 = vrot.slane %v8442_v58, 2 }
 0x888   : > { %v4400_v59 = vmax.f32 %v4398_v56, %v4399_v26  ;;  %v4322_v53 = vpop.f32.mrb[14].mxu0  ;;  %v5142_v1 = vadd.f32 %v4320_v46, %v8426_v15  ;;  %v4390_v33 = vmax.f32 %v4388_v20, %v4389_v16 }
 0x889   : > { %v4394_v11 = vrot.slane %v4393_v28, 2  ;;  %v5143_v21 = vadd.f32 %v4322_v53, %v8423_v63  ;;  %v4324_v38 = vpop.f32.mrb[15].mxu0  ;;  %v4523_v22 = vadd.f32 %v8440_v54, %v4383_v48 }
 0x88a   : > { %v4401_v61 = vrot.slane %v4400_v59, 2  ;;  %v5144_v10 = vadd.f32 %v4324_v38, %v8426_v15  ;;  %v4524_v6 = vadd.f32 %v8442_v58, %v4390_v33 }
 0x88b   : > { %v4395_v40 = vmax.f32 %v4393_v28, %v4394_v11  ;;  %v4405_v8 = vmax.f32 %v5141_v2, %v5143_v21 }
 0x88c   : > { %v4402_v39 = vmax.f32 %v4400_v59, %v4401_v61  ;;  %v4412_v50 = vmax.f32 %v5142_v1, %v5144_v10 }
 0x88d   : > { %v4396_v62 = vrot.slane %v4395_v40, 1  ;;  %v4406_v9 = vrot.slane %v4405_v8, 4 }
 0x88e   : > { %v4403_v5 = vrot.slane %v4402_v39, 1  ;;  %v4413_v0 = vrot.slane %v4412_v50, 4  ;;  %v4328_v4 = vpop.f32.mrb[16].mxu0 }
 0x88f   : > { %v4397_v43 = vmax.f32 %v4395_v40, %v4396_v62  ;;  %v4407_v57 = vmax.f32 %v4405_v8, %v4406_v9  ;;  %v4330_v19 = vpop.f32.mrb[17].mxu0  ;;  %v5145_v41 = vadd.f32 %v4328_v4, %v8423_v63 }
 0x890   : > { %v4404_v35 = vmax.f32 %v4402_v39, %v4403_v5  ;;  %v4414_v32 = vmax.f32 %v4412_v50, %v4413_v0  ;;  %v4332_v47 = vpop.f32.mrb[18].mxu0  ;;  %v5146_v23 = vadd.f32 %v4330_v19, %v8426_v15 }
 0x891   : > { %v4525_v17 = vadd.f32 %v4493_v42, %v4397_v43  ;;  %v4408_v27 = vrot.slane %v4407_v57, 2  ;;  %v5147_v29 = vadd.f32 %v4332_v47, %v8423_v63  ;;  %v4334_v12 = vpop.f32.mrb[19].mxu0  ;;  %v4498_v43 = vrot.slane %v8442_v58, 3 }
 0x892   : > { %v4526_v13 = vadd.f32 %v4494_v14, %v4404_v35  ;;  %v4415_v36 = vrot.slane %v4414_v32, 2  ;;  %v5148_v3 = vadd.f32 %v4334_v12, %v8426_v15  ;;  %v4497_v14 = vrot.slane %v8440_v54, 3 }
 0x893   : > { %v4555_v34 = vrot.slane %v4525_v17, 7  ;;  %v4409_v18 = vmax.f32 %v4407_v57, %v4408_v27  ;;  %v4419_v24 = vmax.f32 %v5145_v41, %v5147_v29 }
 0x894   : > { %v4569_v7 = vrot.slane %v4526_v13, 7  ;;  %v4416_v49 = vmax.f32 %v4414_v32, %v4415_v36  ;;  %v4426_v55 = vmax.f32 %v5146_v23, %v5148_v3 }
 0x895   : > { %v4556_v52 = vsel %vm2261_vm1, %v4555_v34, %v4523_v22  ;;  %v4410_v31 = vrot.slane %v4409_v18, 1  ;;  %v4420_v30 = vrot.slane %v4419_v24, 4 }
 0x896   : > { %v4570_v44 = vsel %vm2261_vm1, %v4569_v7, %v4524_v6  ;;  %v4417_v56 = vrot.slane %v4416_v49, 1  ;;  %v4427_v26 = vrot.slane %v4426_v55, 4  ;;  %v4338_v60 = vpop.f32.mrb[20].mxu0 }
 0x897   : > { %v4411_v51 = vmax.f32 %v4409_v18, %v4410_v31  ;;  %v4421_v28 = vmax.f32 %v4419_v24, %v4420_v30  ;;  %v4340_v46 = vpop.f32.mrb[21].mxu0  ;;  %v5149_v21 = vadd.f32 %v4338_v60, %v8423_v63 }
 0x898   : > { %v4418_v20 = vmax.f32 %v4416_v49, %v4417_v56  ;;  %v4428_v59 = vmax.f32 %v4426_v55, %v4427_v26  ;;  %v4342_v53 = vpop.f32.mrb[22].mxu0  ;;  %v5150_v37 = vadd.f32 %v4340_v46, %v8426_v15 }
 0x899   : > { %v4527_v11 = vadd.f32 %v4495_v25, %v4411_v51  ;;  %v4422_v2 = vrot.slane %v4421_v28, 2  ;;  %v5151_v38 = vadd.f32 %v4342_v53, %v8423_v63  ;;  %v4344_v61 = vpop.f32.mrb[23].mxu0  ;;  %v4499_v25 = vrot.slane %v8440_v54, 4 }
 0x89a   : > { %v4528_v1 = vadd.f32 %v4496_v45, %v4418_v20  ;;  %v4429_v10 = vrot.slane %v4428_v59, 2  ;;  %v5152_v40 = vadd.f32 %v4344_v61, %v8426_v15  ;;  %v4500_v45 = vrot.slane %v8442_v58, 4 }
 0x89b   : > { %v4557_v8 = vrot.slane %v4527_v11, 6  ;;  %v4423_v16 = vmax.f32 %v4421_v28, %v4422_v2  ;;  %v4433_v39 = vmax.f32 %v5149_v21, %v5151_v38 }
 0x89c   : > { %v4571_v50 = vrot.slane %v4528_v1, 6  ;;  %v4430_v62 = vmax.f32 %v4428_v59, %v4429_v10  ;;  %v4440_v42 = vmax.f32 %v5150_v37, %v5152_v40 }
 0x89d   : > { %v4558_v9 = vsel %vm2263_vm2, %v4557_v8, %v4556_v52  ;;  %v4424_v5 = vrot.slane %v4423_v16, 1  ;;  %v4434_v0 = vrot.slane %v4433_v39, 4 }
 0x89e   : > { %v4572_v4 = vsel %vm2263_vm2, %v4571_v50, %v4570_v44  ;;  %v4431_v48 = vrot.slane %v4430_v62, 1  ;;  %v4441_v57 = vrot.slane %v4440_v42, 4  ;;  %v4348_v19 = vpop.f32.mrb[24].mxu0 }
 0x89f   : > { %v4425_v33 = vmax.f32 %v4423_v16, %v4424_v5  ;;  %v4435_v35 = vmax.f32 %v4433_v39, %v4434_v0  ;;  %v4350_v32 = vpop.f32.mrb[25].mxu0  ;;  %v5153_v12 = vadd.f32 %v4348_v19, %v8423_v63 }
 0x8a0   : > { %v4432_v47 = vmax.f32 %v4430_v62, %v4431_v48  ;;  %v4442_v17 = vmax.f32 %v4440_v42, %v4441_v57  ;;  %v4352_v27 = vpop.f32.mrb[26].mxu0  ;;  %v5154_v22 = vadd.f32 %v4350_v32, %v8426_v15 }
 0x8a1   : > { %v4529_v41 = vadd.f32 %v4497_v14, %v4425_v33  ;;  %v4436_v29 = vrot.slane %v4435_v35, 2  ;;  %v5155_v13 = vadd.f32 %v4352_v27, %v8423_v63  ;;  %v4354_v36 = vpop.f32.mrb[27].mxu0  ;;  %v4501_v14 = vrot.slane %v8440_v54, 5 }
 0x8a2   : > { %v4530_v23 = vadd.f32 %v4498_v43, %v4432_v47  ;;  %v4443_v3 = vrot.slane %v4442_v17, 2  ;;  %v5156_v34 = vadd.f32 %v4354_v36, %v8426_v15  ;;  %v4502_v43 = vrot.slane %v8442_v58, 5 }
 0x8a3   : > { %v4559_v18 = vrot.slane %v4529_v41, 5  ;;  %v4437_v24 = vmax.f32 %v4435_v35, %v4436_v29  ;;  %v4447_v6 = vmax.f32 %v5153_v12, %v5155_v13 }
 0x8a4   : > { %v4573_v7 = vrot.slane %v4530_v23, 5  ;;  %v4444_v49 = vmax.f32 %v4442_v17, %v4443_v3  ;;  %v4454_v55 = vmax.f32 %v5154_v22, %v5156_v34 }
 0x8a5   : > { %v4560_v52 = vsel %vm2265_vm3, %v4559_v18, %v4558_v9  ;;  %v4438_v31 = vrot.slane %v4437_v24, 1  ;;  %v4448_v30 = vrot.slane %v4447_v6, 4 }
 0x8a6   : > { %v4574_v44 = vsel %vm2265_vm3, %v4573_v7, %v4572_v4  ;;  %v4445_v56 = vrot.slane %v4444_v49, 1  ;;  %v4455_v26 = vrot.slane %v4454_v55, 4  ;;  %v4358_v60 = vpop.f32.mrb[28].mxu0 }
 0x8a7   : > { %v4439_v51 = vmax.f32 %v4437_v24, %v4438_v31  ;;  %v4449_v28 = vmax.f32 %v4447_v6, %v4448_v30  ;;  %v4360_v46 = vpop.f32.mrb[29].mxu0  ;;  %v5157_v21 = vadd.f32 %v4358_v60, %v8423_v63  ;;  %v4503_v31 = vrot.slane %v8440_v54, 6 }
 0x8a8   : > { %v4446_v20 = vmax.f32 %v4444_v49, %v4445_v56  ;;  %v4456_v59 = vmax.f32 %v4454_v55, %v4455_v26  ;;  %v4362_v53 = vpop.f32.mrb[30].mxu0  ;;  %v5158_v37 = vadd.f32 %v4360_v46, %v8426_v15 }
 0x8a9   : > { %v4531_v11 = vadd.f32 %v4499_v25, %v4439_v51  ;;  %v4450_v2 = vrot.slane %v4449_v28, 2  ;;  %v5159_v38 = vadd.f32 %v4362_v53, %v8423_v63  ;;  %v4364_v61 = vpop.f32.mrb[31].mxu0 }
 0x8aa   : > { %v4532_v1 = vadd.f32 %v4500_v45, %v4446_v20  ;;  %v4457_v10 = vrot.slane %v4456_v59, 2  ;;  %v5160_v40 = vadd.f32 %v4364_v61, %v8426_v15  ;;  %v4505_v61 = vrot.slane %v8440_v54, 7 }
 0x8ab   : > { %v4561_v8 = vrot.slane %v4531_v11, 4  ;;  %v4451_v16 = vmax.f32 %v4449_v28, %v4450_v2  ;;  %v4461_v39 = vmax.f32 %v5157_v21, %v5159_v38 }
 0x8ac   : > { %v4575_v50 = vrot.slane %v4532_v1, 4  ;;  %v4458_v62 = vmax.f32 %v4456_v59, %v4457_v10  ;;  %v4468_v42 = vmax.f32 %v5158_v37, %v5160_v40  ;;  %v4506_v37 = vrot.slane %v8442_v58, 7 }
 0x8ad   : > { %v4562_v9 = vsel %vm2267_vm4, %v4561_v8, %v4560_v52  ;;  %v4452_v5 = vrot.slane %v4451_v16, 1  ;;  %v4462_v0 = vrot.slane %v4461_v39, 4 }
 0x8ae   : > { %v4576_v4 = vsel %vm2267_vm4, %v4575_v50, %v4574_v44  ;;  %v4459_v48 = vrot.slane %v4458_v62, 1  ;;  %v4469_v57 = vrot.slane %v4468_v42, 4  ;;  %v4368_v19 = vpop.f32.mrb[32].mxu0  ;;  %v4504_v44 = vrot.slane %v8442_v58, 6 }
 0x8af   : > { %v4453_v33 = vmax.f32 %v4451_v16, %v4452_v5  ;;  %v4463_v35 = vmax.f32 %v4461_v39, %v4462_v0  ;;  %v4370_v32 = vpop.f32.mrb[33].mxu0  ;;  %v5161_v12 = vadd.f32 %v4368_v19, %v8423_v63 }
 0x8b0   : > { %v4460_v47 = vmax.f32 %v4458_v62, %v4459_v48  ;;  %v4470_v17 = vmax.f32 %v4468_v42, %v4469_v57  ;;  %v4372_v27 = vpop.f32.mrb[34].mxu0  ;;  %v5162_v22 = vadd.f32 %v4370_v32, %v8426_v15 }
 0x8b1   : > { %v4533_v41 = vadd.f32 %v4501_v14, %v4453_v33  ;;  %v4464_v29 = vrot.slane %v4463_v35, 2  ;;  %v5163_v13 = vadd.f32 %v4372_v27, %v8423_v63  ;;  %v4374_v36 = vpop.f32.mrb[35].mxu0 }
 0x8b2   : > { %v4534_v23 = vadd.f32 %v4502_v43, %v4460_v47  ;;  %v4471_v3 = vrot.slane %v4470_v17, 2  ;;  %v5164_v34 = vadd.f32 %v4374_v36, %v8426_v15 }
 0x8b3   : > { %v4563_v18 = vrot.slane %v4533_v41, 3  ;;  %v4465_v24 = vmax.f32 %v4463_v35, %v4464_v29  ;;  %v4475_v6 = vmax.f32 %v5161_v12, %v5163_v13 }
 0x8b4   : > { %v4577_v7 = vrot.slane %v4534_v23, 3  ;;  %v4472_v49 = vmax.f32 %v4470_v17, %v4471_v3  ;;  %v4482_v55 = vmax.f32 %v5162_v22, %v5164_v34 }
 0x8b5   : > { %v4466_v52 = vrot.slane %v4465_v24, 1  ;;  %v4476_v25 = vrot.slane %v4475_v6, 4  ;;  %v4564_v30 = vsel %vm2269_vm5, %v4563_v18, %v4562_v9 }
 0x8b6   : > { %v4473_v63 = vrot.slane %v4472_v49, 1  ;;  %v4483_v56 = vrot.slane %v4482_v55, 4  ;;  %v4578_v45 = vsel %vm2269_vm5, %v4577_v7, %v4576_v4 }
 0x8b7   : > { %v4467_v15 = vmax.f32 %v4465_v24, %v4466_v52  ;;  %v4477_v26 = vmax.f32 %v4475_v6, %v4476_v25 }
 0x8b8   : > { %v4474_v60 = vmax.f32 %v4472_v49, %v4473_v63  ;;  %v4484_v51 = vmax.f32 %v4482_v55, %v4483_v56 }
 0x8b9   : > { %v4535_v28 = vadd.f32 %v4503_v31, %v4467_v15  ;;  %v4478_v46 = vrot.slane %v4477_v26, 2 }
 0x8ba   : > { %v4536_v20 = vadd.f32 %v4504_v44, %v4474_v60  ;;  %v4485_v59 = vrot.slane %v4484_v51, 2 }
 0x8bb   : > { %v4565_v53 = vrot.slane %v4535_v28, 2  ;;  %v4479_v11 = vmax.f32 %v4477_v26, %v4478_v46 }
 0x8bc   : > { %v4579_v2 = vrot.slane %v4536_v20, 2  ;;  %v4486_v21 = vmax.f32 %v4484_v51, %v4485_v59 }
 0x8bd   : > { %v4480_v38 = vrot.slane %v4479_v11, 1  ;;  %v4566_v1 = vsel %vm2271_vm6, %v4565_v53, %v4564_v30 }
 0x8be   : > { %v4487_v10 = vrot.slane %v4486_v21, 1  ;;  %v4580_v40 = vsel %vm2271_vm6, %v4579_v2, %v4578_v45 }
 0x8bf   : > { %v4481_v8 = vmax.f32 %v4479_v11, %v4480_v38 }
 0x8c0   : > { %v4488_v16 = vmax.f32 %v4486_v21, %v4487_v10 }
 0x8c1   : > { %v4537_v39 = vadd.f32 %v4505_v61, %v4481_v8 }
 0x8c2   : > { %v4538_v50 = vadd.f32 %v4506_v37, %v4488_v16 }
 0x8c3   : > { %v4567_v62 = vrot.slane %v4537_v39, 1 }
 0x8c4   : > { %v4581_v42 = vrot.slane %v4538_v50, 1 }
 0x8c5   : > { %v4568_v54 = vsel %vm2273_vm7, %v4567_v62, %v4566_v1 }
 0x8c6   : > { %v4582_v58 = vsel %vm2273_vm7, %v4581_v42, %v4580_v40  ;;  %4585 = vst [vmem:[%s720_s21] sm:$0xff] %v4568_v54 }
 0x8c7   : > { %4586 = vst [vmem:[%s720_s21 + $0x8] sm:$0xff] %v4582_v58 }
 0x8c8   : > { %6217 = shalt.err (!%p6214_p7)
}
 0x8c9   : > { %s6218_s28 = scalar_lea.hbm %s8498_s30, 256  ;;  %s6222_s29 = scalar_lea.hbm %s8835_s27, 1024 }
 0x8ca   : > { %p6219_p8 = scmp.ne.s32.totalorder %s8498_s30, %s6218_s28  ;;  %p6223_p3 = scmp.lt.u32.totalorder %s8498_s30, %s8835_s27 }
 0x8cb   : > { %p6224_p6 = scmp.lt.u32.totalorder %s6222_s29, %s6218_s28  ;;  %p6226_p11 = scmp.lt.u32.totalorder %s6218_s28, %s8498_s30 }
 0x8cc   : > { %p6220_p9 = pnand %p6219_p8, %p8836_p0 }
 0x8cd   : > { %p6225_p12 = por %p6224_p6, %p6223_p3 }
 0x8ce   : > { %p6221_p5 = pneg %p6220_p9 }
 0x8cf   : > { %p6227_p4 = por %p6226_p11, %p6225_p12 }
 0x8d1   : > { %p6228_p1 = pnand %p6227_p4, %p6221_p5 }
 0x8d3   : > { %6231 = shalt.err (!%p6228_p1)
}
 0x8d4   : > { %5255 = dma.vmem_to_hbm [thread:$0]  (%p8836_p0), %s8500_s16, 256, %s8498_s30, %s4588_s25  }
 0x8d5 PF: > { %s8837_s1 = sld [smem:[#allocation36_spill]]  ;;  %p5337_p10 = scmp.ge.s32.totalorder %s6314_s23, 2 }
 0x8d6   : > { %p8838_p13 = scmp.ne.s32.totalorder %s8665_s15, 0 }
 0x8d8   : > { %p5305_p2 = pnand %p5337_p10, %p8838_p13 }
 0x8db   : > { %s4615_s4 = sand.u32 1, %s8837_s1  }
 0x8dc   : > { %s4616_s19 = scalar_lea.sflag [#allocation4], %s4615_s4 }
 0x8dd   : > { %6289 = dma.done.wait (!%p5305_p2), %s4616_s19, 256  }
 0x8de   : > { %6291 = vsyncadd (!%p5305_p2), %s4616_s19, 4294967040  ;;  %s38_s23 = sadd.s32 1, %s6314_s23   ;;  %s8839_s28 = sld [smem:[#allocation37_spill]] }
 0x8df   : > { %p35_p7 = scmp.ge.s32.totalorder %s38_s23, 6   ;;  %s8840_s0 = smov %s8847_s18 }
 0x8e0   : > { %s8842_s19 = smov %s6302_s20  ;;  %s8843_s20 = smov %s6819_s17 }
 0x8e1   : > { %s8844_s21 = smov %s6310_s22  ;;  %s8845_s22 = smov %s8840_s0 }
 0x8e2   :  { %37 = sbr.rel (!%p35_p7) target bundleno = 20 (0x14), region = 182 }
 0x8e4   : > { %s8841_s18 = smov %s8839_s28 }
 0x8e9   :  { %4621 = vsyncpa [#allocation3], 1 }
 0x8ea   :  { %4623 = vsyncpa [#allocation3 + $0x1], 1 }
 0x8eb   :  { %4624 = vsyncpa [#allocation6], 1 }
 0x8ec   :  { %4625 = vsyncpa [#allocation9], 1 }
 0x8ed   :  { %4626 = vsyncpa [#allocation12], 1 }
 0x8ee   :  { %4627 = vsyncpa [#allocation15], 1 }
 0x8ef   :  { %4628 = vsyncpa [#allocation18], 1 }
 0x8f0   :  { %4629 = vsyncpa [#allocation21], 1 }
 0x8f1   :  { %4630 = vsyncpa [#allocation24], 1 }
 0x8f2   :  { %4631 = vsyncpa [#allocation4], 1 }
 0x8f3   :  { %4633 = vsyncpa [#allocation4 + $0x1], 1 }

</bundles_post_ra>
